<compile_context>
chip_gen: v5e
topology: v5e:2x2
jax: 0.10.0
libtpu: 0.0.40
codegen_flags: <defaults>
</compile_context>

<pallas_src>
import functools

import jax
import jax.numpy as jnp
from jax import lax
from jax.experimental import pallas as pl
from jax.experimental.pallas import tpu as pltpu

ALPHA = 0.2          # leaky_relu slope inside AttentionLayer
LINEAR_SLOPE = 0.01  # F.leaky_relu default slope after tf/target linears
NEG_BIG = -9.0e15    # -9000000000000000.0 mask value from the reference code
NORM_EPS = 1e-12     # F.normalize default eps


def _leaky(x, slope):
    return jnp.where(x > 0, x, slope * x)


def _elu(x):
    return jnp.where(x > 0, x, jnp.exp(jnp.minimum(x, 0.0)) - 1.0)


# -----------------------------------------------------------------------------
# Fused GENELink forward kernel (single gridless invocation, all-VMEM resident)
# -----------------------------------------------------------------------------
def genelink_kernel(adj_ref, x_ref, sel_tf_ref, sel_tg_ref, *refs,
                    layer_meta, out_dim, alpha, lin_slope):
    pred_ref, out_ref = refs[-2], refs[-1]
    param_refs = refs[:-2]

    # adjacency mask computed ONCE (int8 input), reused by every head of every layer
    mask = adj_ref[...] != 0                                          # (N, N) bool

    x = x_ref[...]                                                    # (N, D_in) f32
    ptr = 0
    n_layers = len(layer_meta)

    for li, (num_head, d_out, has_res) in enumerate(layer_meta):
        w_ref, a1_ref, a2_ref, b_ref = param_refs[ptr:ptr + 4]
        ptr += 4
        hd_dim = num_head * d_out

        # One fused, lane-dense matmul for all heads (+ residual linear when present):
        #   (N, Din) @ (Din, H*Dout [+ H*Dout])  with bf16 operands, f32 accumulation.
        fused = jnp.dot(x.astype(jnp.bfloat16), w_ref[...],
                        preferred_element_type=jnp.float32)
        if has_res:
            bres_ref = param_refs[ptr]
            ptr += 1
            h_all = _leaky(fused[:, :hd_dim], alpha)                  # (N, H*Dout)
            res_all = fused[:, hd_dim:] + bres_ref[...]               # residual_linear(x)
        else:
            h_all = _leaky(fused, alpha)
            res_all = None                                            # identity residual

        h_bf = h_all.astype(jnp.bfloat16)

        # Packed attention-vector reductions: two tiny MXU passes instead of
        # 2*H dependent VPU multiply + XLU lane-reduce chains.
        #   wh1_all[:, h] = h_head_h @ a1_h      (columns -> broadcast along rows)
        #   wh2_all[h, :] = a2_h  @ h_head_h^T   (rows    -> broadcast along cols)
        wh1_all = jnp.dot(h_bf, a1_ref[...],
                          preferred_element_type=jnp.float32)         # (N, H)
        wh2_all = jnp.einsum('hd,nd->hn', a2_ref[...], h_bf,
                             preferred_element_type=jnp.float32)      # (H, N)

        acc = None
        for hd in range(num_head):                                    # static unroll
            lo = hd * d_out
            e = _leaky(wh1_all[:, hd:hd + 1] + wh2_all[hd:hd + 1, :], alpha)  # (N, N)
            att = jnp.where(mask, e, jnp.float32(NEG_BIG))
            att = att - jnp.max(att, axis=1, keepdims=True)
            att = jnp.exp(att)
            denom = jnp.sum(att, axis=1, keepdims=True)
            att = att * pl.reciprocal(denom, approx=True)             # EUP, not VPU div
            # F.dropout(p=0.5) is identity in eval mode.
            hp = jnp.dot(att.astype(jnp.bfloat16), h_bf[:, lo:lo + d_out],
                         preferred_element_type=jnp.float32)          # (N, Dout)
            # F.normalize(p=2, dim=1) == x / max(||x||, eps)
            ssq = jnp.sum(hp * hp, axis=1, keepdims=True)
            hp = hp * lax.rsqrt(jnp.maximum(ssq, jnp.float32(NORM_EPS * NORM_EPS)))
            hp = hp + b_ref[0:1, lo:lo + d_out]                       # bias
            hp = hp + (x if res_all is None else res_all[:, lo:lo + d_out])
            acc = hp if acc is None else acc + hp
        x = acc * jnp.float32(1.0 / num_head)                         # reduction='mean'
        if li < n_layers - 1:
            x = _elu(x)

    # packed tf/target MLP branches (dropout p=0.01 is identity in eval mode);
    # second matmul's output dim is zero-padded to a multiple of 128 lanes so
    # the single output slab writes as unmasked lane-dense stores.
    w1_ref, b1_ref, w2_ref, b2_ref = param_refs[ptr:ptr + 4]
    hidden = _leaky(jnp.dot(x.astype(jnp.bfloat16), w1_ref[...],
                            preferred_element_type=jnp.float32) + b1_ref[...],
                    lin_slope)                                        # (N, 2*H4)
    out_cat = _leaky(jnp.dot(hidden.astype(jnp.bfloat16), w2_ref[...],
                             preferred_element_type=jnp.float32) + b2_ref[...],
                     lin_slope)                                       # (N, OUT_PAD)
    out_ref[...] = out_cat

    # decode(type='dot'): one-hot selection matmuls against the in-register
    # VALUE (not the just-written output ref), then VPU multiply + lane reduce.
    tf_val = out_cat[:, :out_dim]                                     # (N, OUT)
    tg_val = out_cat[:, out_dim:2 * out_dim]                          # (N, OUT)
    tf_sel = jnp.dot(sel_tf_ref[...], tf_val, preferred_element_type=jnp.float32)
    tg_sel = jnp.dot(sel_tg_ref[...], tg_val, preferred_element_type=jnp.float32)
    pred_ref[...] = jnp.sum(tf_sel * tg_sel, axis=1, keepdims=True)   # (E, 1)


# -----------------------------------------------------------------------------
# Wrapper: flattens packed params, builds specs / cost estimate, one pallas_call
# -----------------------------------------------------------------------------
def genelink_forward(params, x, adj, train_sample):
    layers = params["layers"]
    n, d_in = x.shape
    n_pairs = train_sample.shape[0]

    # int8 adjacency mask (4x less DMA/VMEM than f32 adj)
    adj_mask = (adj > 0).astype(jnp.int8)
    # one-hot selection matrices for the decode gather (layout plumbing, not compute)
    sel_tf = jax.nn.one_hot(train_sample[:, 0], n, dtype=jnp.float32)  # (E, N)
    sel_tg = jax.nn.one_hot(train_sample[:, 1], n, dtype=jnp.float32)  # (E, N)

    layer_meta = []
    flat_inputs = [adj_mask, x, sel_tf, sel_tg]
    for lp in layers:
        num_head = lp["a1"].shape[1]
        d_out = lp["a1"].shape[0] // num_head
        has_res = "bres" in lp
        layer_meta.append((num_head, d_out, has_res))
        flat_inputs += [lp["w"], lp["a1"], lp["a2"], lp["b"]]
        if has_res:
            flat_inputs.append(lp["bres"])

    out_dim = params["w_mlp2"].shape[1] // 2
    out_pad = ((2 * out_dim + 127) // 128) * 128          # lane-dense output slab
    pad_cols = out_pad - 2 * out_dim
    w_mlp2 = jnp.pad(params["w_mlp2"], ((0, 0), (0, pad_cols)))
    b_mlp2 = jnp.pad(params["b_mlp2"], ((0, 0), (0, pad_cols)))
    flat_inputs += [params["w_mlp1"], params["b_mlp1"], w_mlp2, b_mlp2]

    # rough cost estimate (advisory scheduling hint)
    flops, trans = 0, 0
    cur = d_in
    for (num_head, d_out, has_res) in layer_meta:
        hd_dim = num_head * d_out
        w_cols = hd_dim * (2 if has_res else 1)
        flops += 2 * n * cur * w_cols                      # fused x @ [W | Wres]
        flops += 2 * n * hd_dim * 2 * num_head             # packed a1/a2 reductions
        flops += num_head * 2 * n * n * d_out              # att @ h
        flops += num_head * 10 * n * n                     # logits / mask / softmax
        trans += num_head * (n * n + 2 * n)                # exp / recip / rsqrt
        cur = d_out
    flops += 2 * n * cur * int(params["w_mlp1"].shape[1])
    flops += 2 * n * int(params["w_mlp2"].shape[0]) * out_pad
    flops += 2 * n_pairs * n * out_dim * 2 + 2 * n_pairs * out_dim
    bytes_accessed = (sum(int(a.size) * a.dtype.itemsize for a in flat_inputs)
                      + 4 * (n_pairs + n * out_pad))

    kernel = functools.partial(
        genelink_kernel,
        layer_meta=tuple(layer_meta),
        out_dim=out_dim,
        alpha=ALPHA,
        lin_slope=LINEAR_SLOPE,
    )

    in_specs = [pl.BlockSpec(memory_space=pltpu.MemorySpace.VMEM)] * len(flat_inputs)
    out_specs = (pl.BlockSpec(memory_space=pltpu.MemorySpace.VMEM),) * 2
    out_shape = (jax.ShapeDtypeStruct((n_pairs, 1), jnp.float32),
                 jax.ShapeDtypeStruct((n, out_pad), jnp.float32))

    pred, out_slab = pl.pallas_call(
        kernel,
        out_shape=out_shape,
        in_specs=in_specs,
        out_specs=out_specs,
        compiler_params=pltpu.CompilerParams(vmem_limit_bytes=32 * 1024 * 1024),
        cost_estimate=pl.CostEstimate(flops=int(flops),
                                      transcendentals=int(trans),
                                      bytes_accessed=int(bytes_accessed)),
    )(*flat_inputs)

    tf_embed = out_slab[:, :out_dim]
    target_embed = out_slab[:, out_dim:2 * out_dim]
    return pred, tf_embed, target_embed


# -----------------------------------------------------------------------------
# Deterministic parameter construction (synthetic, no checkpoint loading)
# -----------------------------------------------------------------------------
def xavier(key, shape, gain=1.414):
    fan_in, fan_out = shape
    bound = gain * (6.0 / (fan_in + fan_out)) ** 0.5
    return jax.random.uniform(key, shape, jnp.float32, -bound, bound)


def make_packed_attention_layer(key, d_in, d_out, num_head):
    """Packs per-head W (and residual W) along lanes and a1/a2 into block matrices."""
    hd_dim = num_head * d_out
    ws, wrs = [], []
    a1 = jnp.zeros((hd_dim, num_head), jnp.float32)   # block-column: wh1 as columns
    a2 = jnp.zeros((num_head, hd_dim), jnp.float32)   # block-row:    wh2 as rows
    for hd, k in enumerate(jax.random.split(key, num_head)):
        kw, ka, kr = jax.random.split(k, 3)
        ws.append(xavier(kw, (d_in, d_out)))
        a = xavier(ka, (2 * d_out, 1))
        a1 = a1.at[hd * d_out:(hd + 1) * d_out, hd].set(a[:d_out, 0])
        a2 = a2.at[hd, hd * d_out:(hd + 1) * d_out].set(a[d_out:, 0])
        if d_in != d_out:
            wrs.append(xavier(kr, (d_in, d_out)))     # residual_linear weight (transposed)
    lp = {
        "w": jnp.concatenate(ws + wrs, axis=1).astype(jnp.bfloat16),  # (d_in, (1|2)*H*d_out)
        "a1": a1.astype(jnp.bfloat16),
        "a2": a2.astype(jnp.bfloat16),
        "b": jnp.zeros((1, hd_dim), jnp.float32),                     # bias.fill_(0)
    }
    if d_in != d_out:
        lp["bres"] = jnp.zeros((1, hd_dim), jnp.float32)
    return lp


def make_packed_mlp(key, h3, h4, out_dim):
    """tf/target branches packed: layer1 concatenated, layer2 block-diagonal."""
    k1, k2, k3, k4 = jax.random.split(key, 4)
    w_tf1, w_tg1 = xavier(k1, (h3, h4)), xavier(k2, (h3, h4))
    w_tf2, w_tg2 = xavier(k3, (h4, out_dim)), xavier(k4, (h4, out_dim))
    w1 = jnp.concatenate([w_tf1, w_tg1], axis=1)                       # (h3, 2*h4)
    w2 = jnp.zeros((2 * h4, 2 * out_dim), jnp.float32)
    w2 = w2.at[:h4, :out_dim].set(w_tf2).at[h4:, out_dim:].set(w_tg2)  # block-diag
    return {"w_mlp1": w1.astype(jnp.bfloat16),
            "b_mlp1": jnp.zeros((1, 2 * h4), jnp.float32),
            "w_mlp2": w2.astype(jnp.bfloat16),
            "b_mlp2": jnp.zeros((1, 2 * out_dim), jnp.float32)}


if __name__ == "__main__":
    # Small, forward-consistent shapes.
    N = 64            # number of graph nodes (genes)
    INPUT_DIM = 48
    H1 = H2 = H3 = 32
    H4 = 16
    OUT_DIM = 16
    NUM_HEAD = 2
    E = 8             # number of (tf, target) training pairs

    root = jax.random.PRNGKey(0)
    keys = jax.random.split(root, 8)

    # inputs
    x = jax.random.normal(keys[0], (N, INPUT_DIM), jnp.float32)
    adj = (jax.random.uniform(keys[1], (N, N)) > 0.8).astype(jnp.float32)
    adj = jnp.maximum(adj, jnp.eye(N, dtype=jnp.float32))  # self loops -> non-empty rows
    train_sample = jax.random.randint(keys[2], (E, 2), 0, N, jnp.int32)

    # packed parameters
    params = {
        "layers": [
            make_packed_attention_layer(keys[3], INPUT_DIM, H1, NUM_HEAD),
            make_packed_attention_layer(keys[4], H1, H2, NUM_HEAD),
            make_packed_attention_layer(keys[5], H2, H3, NUM_HEAD),
        ],
    }
    params.update(make_packed_mlp(keys[6], H3, H4, OUT_DIM))

    pred, tf_out, target_out = jax.jit(genelink_forward)(params, x, adj, train_sample)
    jax.block_until_ready((pred, tf_out, target_out))

    assert pred.shape == (E, 1) and pred.dtype == jnp.float32
    assert tf_out.shape == (N, OUT_DIM) and target_out.shape == (N, OUT_DIM)
    assert bool(jnp.all(jnp.isfinite(pred)))
    assert bool(jnp.all(jnp.isfinite(tf_out))) and bool(jnp.all(jnp.isfinite(target_out)))
    print("KERNEL_OK")
</pallas_src>

<mosaic_0001>
module attributes {stable_mosaic.version = 11 : i64} {
  func.func @genelink_kernel(%arg0: memref<64x64xi8, #tpu.memory_space<vmem>>, %arg1: memref<64x48xf32, #tpu.memory_space<vmem>>, %arg2: memref<8x64xf32, #tpu.memory_space<vmem>>, %arg3: memref<8x64xf32, #tpu.memory_space<vmem>>, %arg4: memref<48x128xbf16, #tpu.memory_space<vmem>>, %arg5: memref<64x2xbf16, #tpu.memory_space<vmem>>, %arg6: memref<2x64xbf16, #tpu.memory_space<vmem>>, %arg7: memref<1x64xf32, #tpu.memory_space<vmem>>, %arg8: memref<1x64xf32, #tpu.memory_space<vmem>>, %arg9: memref<32x64xbf16, #tpu.memory_space<vmem>>, %arg10: memref<64x2xbf16, #tpu.memory_space<vmem>>, %arg11: memref<2x64xbf16, #tpu.memory_space<vmem>>, %arg12: memref<1x64xf32, #tpu.memory_space<vmem>>, %arg13: memref<32x64xbf16, #tpu.memory_space<vmem>>, %arg14: memref<64x2xbf16, #tpu.memory_space<vmem>>, %arg15: memref<2x64xbf16, #tpu.memory_space<vmem>>, %arg16: memref<1x64xf32, #tpu.memory_space<vmem>>, %arg17: memref<32x32xbf16, #tpu.memory_space<vmem>>, %arg18: memref<1x32xf32, #tpu.memory_space<vmem>>, %arg19: memref<32x128xbf16, #tpu.memory_space<vmem>>, %arg20: memref<1x128xf32, #tpu.memory_space<vmem>>, %arg21: memref<8x1xf32, #tpu.memory_space<vmem>>, %arg22: memref<64x128xf32, #tpu.memory_space<vmem>>) attributes {dimension_semantics = [], scalar_prefetch = 0 : i64, scratch_operands = 0 : i64, tpu.core_type = #tpu.core_type<tc>} {
    %c0 = arith.constant 0 : index
    %c0_0 = arith.constant 0 : index
    %0 = vector.load %arg0[%c0, %c0_0] : memref<64x64xi8, #tpu.memory_space<vmem>>, vector<64x64xi8>
    %c0_i8 = arith.constant 0 : i8
    %1 = vector.broadcast %c0_i8 : i8 to vector<64x64xi8>
    %2 = arith.cmpi ne, %0, %1 : vector<64x64xi8>
    %c0_1 = arith.constant 0 : index
    %c0_2 = arith.constant 0 : index
    %3 = vector.load %arg1[%c0_1, %c0_2] : memref<64x48xf32, #tpu.memory_space<vmem>>, vector<64x48xf32>
    %4 = arith.truncf %3 : vector<64x48xf32> to vector<64x48xbf16>
    %c0_3 = arith.constant 0 : index
    %c0_4 = arith.constant 0 : index
    %5 = vector.load %arg4[%c0_3, %c0_4] : memref<48x128xbf16, #tpu.memory_space<vmem>>, vector<48x128xbf16>
    %cst = arith.constant dense<0.000000e+00> : vector<64x128xf32>
    %6 = tpu.matmul %4, %5, %cst {dimension_numbers = #tpu.dot_dimension_numbers<[1], [0], [0], [1], [0, 0, 1, 1], [], []>} : vector<64x48xbf16>, vector<48x128xbf16>, vector<64x128xf32> -> vector<64x128xf32>
    %7 = vector.extract_strided_slice %6 {offsets = [0, 0], sizes = [64, 64], strides = [1, 1]} : vector<64x128xf32> to vector<64x64xf32>
    %cst_5 = arith.constant 0.000000e+00 : f32
    %8 = vector.broadcast %cst_5 : f32 to vector<64x64xf32>
    %9 = arith.cmpf ogt, %7, %8 : vector<64x64xf32>
    %cst_6 = arith.constant 2.000000e-01 : f32
    %10 = vector.broadcast %cst_6 : f32 to vector<64x64xf32>
    %11 = arith.mulf %10, %7 : vector<64x64xf32>
    %12 = arith.select %9, %7, %11 : vector<64x64xi1>, vector<64x64xf32>
    %13 = vector.extract_strided_slice %6 {offsets = [0, 64], sizes = [64, 64], strides = [1, 1]} : vector<64x128xf32> to vector<64x64xf32>
    %c0_7 = arith.constant 0 : index
    %c0_8 = arith.constant 0 : index
    %14 = vector.load %arg8[%c0_7, %c0_8] : memref<1x64xf32, #tpu.memory_space<vmem>>, vector<1x64xf32>
    %15 = vector.broadcast %14 : vector<1x64xf32> to vector<64x64xf32>
    %16 = arith.addf %13, %15 : vector<64x64xf32>
    %17 = arith.truncf %12 : vector<64x64xf32> to vector<64x64xbf16>
    %c0_9 = arith.constant 0 : index
    %c0_10 = arith.constant 0 : index
    %18 = vector.load %arg5[%c0_9, %c0_10] : memref<64x2xbf16, #tpu.memory_space<vmem>>, vector<64x2xbf16>
    %cst_11 = arith.constant dense<0.000000e+00> : vector<64x2xf32>
    %19 = tpu.matmul %17, %18, %cst_11 {dimension_numbers = #tpu.dot_dimension_numbers<[1], [0], [0], [1], [0, 0, 1, 1], [], []>} : vector<64x64xbf16>, vector<64x2xbf16>, vector<64x2xf32> -> vector<64x2xf32>
    %c0_12 = arith.constant 0 : index
    %c0_13 = arith.constant 0 : index
    %20 = vector.load %arg6[%c0_12, %c0_13] : memref<2x64xbf16, #tpu.memory_space<vmem>>, vector<2x64xbf16>
    "tpu.trace_start"() <{level = 10 : i32, message = "hd,nd->hn"}> : () -> ()
    %cst_14 = arith.constant dense<0.000000e+00> : vector<2x64xf32>
    %21 = tpu.matmul %20, %17, %cst_14 {dimension_numbers = #tpu.dot_dimension_numbers<[1], [1], [0], [0], [0, 0, 1, 0], [], []>} : vector<2x64xbf16>, vector<64x64xbf16>, vector<2x64xf32> -> vector<2x64xf32>
    "tpu.trace_stop"() : () -> ()
    %22 = vector.extract_strided_slice %19 {offsets = [0, 0], sizes = [64, 1], strides = [1, 1]} : vector<64x2xf32> to vector<64x1xf32>
    %23 = vector.extract_strided_slice %21 {offsets = [0, 0], sizes = [1, 64], strides = [1, 1]} : vector<2x64xf32> to vector<1x64xf32>
    %24 = vector.broadcast %22 : vector<64x1xf32> to vector<64x64xf32>
    %25 = vector.broadcast %23 : vector<1x64xf32> to vector<64x64xf32>
    %26 = arith.addf %24, %25 : vector<64x64xf32>
    %cst_15 = arith.constant 0.000000e+00 : f32
    %27 = vector.broadcast %cst_15 : f32 to vector<64x64xf32>
    %28 = arith.cmpf ogt, %26, %27 : vector<64x64xf32>
    %cst_16 = arith.constant 2.000000e-01 : f32
    %29 = vector.broadcast %cst_16 : f32 to vector<64x64xf32>
    %30 = arith.mulf %29, %26 : vector<64x64xf32>
    %31 = arith.select %28, %26, %30 : vector<64x64xi1>, vector<64x64xf32>
    %cst_17 = arith.constant -9.000000e+15 : f32
    %32 = vector.broadcast %cst_17 : f32 to vector<64x64xf32>
    %33 = arith.select %2, %31, %32 : vector<64x64xi1>, vector<64x64xf32>
    %cst_18 = arith.constant dense<0xFF800000> : vector<64xf32>
    %34 = vector.multi_reduction <maximumf>, %33, %cst_18 [1] : vector<64x64xf32> to vector<64xf32>
    %35 = vector.shape_cast %34 : vector<64xf32> to vector<64x1xf32>
    %36 = vector.broadcast %35 : vector<64x1xf32> to vector<64x64xf32>
    %37 = arith.subf %33, %36 : vector<64x64xf32>
    %38 = math.exp %37 : vector<64x64xf32>
    %cst_19 = arith.constant dense<0.000000e+00> : vector<64xf32>
    %39 = vector.multi_reduction <add>, %38, %cst_19 [1] : vector<64x64xf32> to vector<64xf32>
    %40 = vector.shape_cast %39 : vector<64xf32> to vector<64x1xf32>
    %41 = tpu.reciprocal %40 {approx = true} : vector<64x1xf32> -> vector<64x1xf32>
    %42 = vector.broadcast %41 : vector<64x1xf32> to vector<64x64xf32>
    %43 = arith.mulf %38, %42 : vector<64x64xf32>
    %44 = arith.truncf %43 : vector<64x64xf32> to vector<64x64xbf16>
    %45 = vector.extract_strided_slice %17 {offsets = [0, 0], sizes = [64, 32], strides = [1, 1]} : vector<64x64xbf16> to vector<64x32xbf16>
    %cst_20 = arith.constant dense<0.000000e+00> : vector<64x32xf32>
    %46 = tpu.matmul %44, %45, %cst_20 {dimension_numbers = #tpu.dot_dimension_numbers<[1], [0], [0], [1], [0, 0, 1, 1], [], []>} : vector<64x64xbf16>, vector<64x32xbf16>, vector<64x32xf32> -> vector<64x32xf32>
    %47 = arith.mulf %46, %46 : vector<64x32xf32>
    %cst_21 = arith.constant dense<0.000000e+00> : vector<64xf32>
    %48 = vector.multi_reduction <add>, %47, %cst_21 [1] : vector<64x32xf32> to vector<64xf32>
    %49 = vector.shape_cast %48 : vector<64xf32> to vector<64x1xf32>
    %cst_22 = arith.constant 1.000000e-24 : f32
    %50 = vector.broadcast %cst_22 : f32 to vector<64x1xf32>
    %51 = arith.maximumf %49, %50 : vector<64x1xf32>
    %52 = math.rsqrt %51 : vector<64x1xf32>
    %53 = vector.broadcast %52 : vector<64x1xf32> to vector<64x32xf32>
    %54 = arith.mulf %46, %53 : vector<64x32xf32>
    %c0_23 = arith.constant 0 : index
    %c0_24 = arith.constant 0 : index
    %55 = vector.load %arg7[%c0_23, %c0_24] : memref<1x64xf32, #tpu.memory_space<vmem>>, vector<1x32xf32>
    %56 = vector.broadcast %55 : vector<1x32xf32> to vector<64x32xf32>
    %57 = arith.addf %54, %56 : vector<64x32xf32>
    %58 = vector.extract_strided_slice %16 {offsets = [0, 0], sizes = [64, 32], strides = [1, 1]} : vector<64x64xf32> to vector<64x32xf32>
    %59 = arith.addf %57, %58 : vector<64x32xf32>
    %60 = vector.extract_strided_slice %19 {offsets = [0, 1], sizes = [64, 1], strides = [1, 1]} : vector<64x2xf32> to vector<64x1xf32>
    %61 = vector.extract_strided_slice %21 {offsets = [1, 0], sizes = [1, 64], strides = [1, 1]} : vector<2x64xf32> to vector<1x64xf32>
    %62 = vector.broadcast %60 : vector<64x1xf32> to vector<64x64xf32>
    %63 = vector.broadcast %61 : vector<1x64xf32> to vector<64x64xf32>
    %64 = arith.addf %62, %63 : vector<64x64xf32>
    %cst_25 = arith.constant 0.000000e+00 : f32
    %65 = vector.broadcast %cst_25 : f32 to vector<64x64xf32>
    %66 = arith.cmpf ogt, %64, %65 : vector<64x64xf32>
    %cst_26 = arith.constant 2.000000e-01 : f32
    %67 = vector.broadcast %cst_26 : f32 to vector<64x64xf32>
    %68 = arith.mulf %67, %64 : vector<64x64xf32>
    %69 = arith.select %66, %64, %68 : vector<64x64xi1>, vector<64x64xf32>
    %cst_27 = arith.constant -9.000000e+15 : f32
    %70 = vector.broadcast %cst_27 : f32 to vector<64x64xf32>
    %71 = arith.select %2, %69, %70 : vector<64x64xi1>, vector<64x64xf32>
    %cst_28 = arith.constant dense<0xFF800000> : vector<64xf32>
    %72 = vector.multi_reduction <maximumf>, %71, %cst_28 [1] : vector<64x64xf32> to vector<64xf32>
    %73 = vector.shape_cast %72 : vector<64xf32> to vector<64x1xf32>
    %74 = vector.broadcast %73 : vector<64x1xf32> to vector<64x64xf32>
    %75 = arith.subf %71, %74 : vector<64x64xf32>
    %76 = math.exp %75 : vector<64x64xf32>
    %cst_29 = arith.constant dense<0.000000e+00> : vector<64xf32>
    %77 = vector.multi_reduction <add>, %76, %cst_29 [1] : vector<64x64xf32> to vector<64xf32>
    %78 = vector.shape_cast %77 : vector<64xf32> to vector<64x1xf32>
    %79 = tpu.reciprocal %78 {approx = true} : vector<64x1xf32> -> vector<64x1xf32>
    %80 = vector.broadcast %79 : vector<64x1xf32> to vector<64x64xf32>
    %81 = arith.mulf %76, %80 : vector<64x64xf32>
    %82 = arith.truncf %81 : vector<64x64xf32> to vector<64x64xbf16>
    %83 = vector.extract_strided_slice %17 {offsets = [0, 32], sizes = [64, 32], strides = [1, 1]} : vector<64x64xbf16> to vector<64x32xbf16>
    %cst_30 = arith.constant dense<0.000000e+00> : vector<64x32xf32>
    %84 = tpu.matmul %82, %83, %cst_30 {dimension_numbers = #tpu.dot_dimension_numbers<[1], [0], [0], [1], [0, 0, 1, 1], [], []>} : vector<64x64xbf16>, vector<64x32xbf16>, vector<64x32xf32> -> vector<64x32xf32>
    %85 = arith.mulf %84, %84 : vector<64x32xf32>
    %cst_31 = arith.constant dense<0.000000e+00> : vector<64xf32>
    %86 = vector.multi_reduction <add>, %85, %cst_31 [1] : vector<64x32xf32> to vector<64xf32>
    %87 = vector.shape_cast %86 : vector<64xf32> to vector<64x1xf32>
    %cst_32 = arith.constant 1.000000e-24 : f32
    %88 = vector.broadcast %cst_32 : f32 to vector<64x1xf32>
    %89 = arith.maximumf %87, %88 : vector<64x1xf32>
    %90 = math.rsqrt %89 : vector<64x1xf32>
    %91 = vector.broadcast %90 : vector<64x1xf32> to vector<64x32xf32>
    %92 = arith.mulf %84, %91 : vector<64x32xf32>
    %c0_33 = arith.constant 0 : index
    %c32 = arith.constant 32 : index
    %93 = vector.load %arg7[%c0_33, %c32] : memref<1x64xf32, #tpu.memory_space<vmem>>, vector<1x32xf32>
    %94 = vector.broadcast %93 : vector<1x32xf32> to vector<64x32xf32>
    %95 = arith.addf %92, %94 : vector<64x32xf32>
    %96 = vector.extract_strided_slice %16 {offsets = [0, 32], sizes = [64, 32], strides = [1, 1]} : vector<64x64xf32> to vector<64x32xf32>
    %97 = arith.addf %95, %96 : vector<64x32xf32>
    %98 = arith.addf %59, %97 : vector<64x32xf32>
    %cst_34 = arith.constant 5.000000e-01 : f32
    %99 = vector.broadcast %cst_34 : f32 to vector<64x32xf32>
    %100 = arith.mulf %98, %99 : vector<64x32xf32>
    %cst_35 = arith.constant 0.000000e+00 : f32
    %101 = vector.broadcast %cst_35 : f32 to vector<64x32xf32>
    %102 = arith.cmpf ogt, %100, %101 : vector<64x32xf32>
    %cst_36 = arith.constant 0.000000e+00 : f32
    %103 = vector.broadcast %cst_36 : f32 to vector<64x32xf32>
    %104 = arith.minimumf %100, %103 : vector<64x32xf32>
    %105 = math.exp %104 : vector<64x32xf32>
    %cst_37 = arith.constant 1.000000e+00 : f32
    %106 = vector.broadcast %cst_37 : f32 to vector<64x32xf32>
    %107 = arith.subf %105, %106 : vector<64x32xf32>
    %108 = arith.select %102, %100, %107 : vector<64x32xi1>, vector<64x32xf32>
    %109 = arith.truncf %108 : vector<64x32xf32> to vector<64x32xbf16>
    %c0_38 = arith.constant 0 : index
    %c0_39 = arith.constant 0 : index
    %110 = vector.load %arg9[%c0_38, %c0_39] : memref<32x64xbf16, #tpu.memory_space<vmem>>, vector<32x64xbf16>
    %cst_40 = arith.constant dense<0.000000e+00> : vector<64x64xf32>
    %111 = tpu.matmul %109, %110, %cst_40 {dimension_numbers = #tpu.dot_dimension_numbers<[1], [0], [0], [1], [0, 0, 1, 1], [], []>} : vector<64x32xbf16>, vector<32x64xbf16>, vector<64x64xf32> -> vector<64x64xf32>
    %cst_41 = arith.constant 0.000000e+00 : f32
    %112 = vector.broadcast %cst_41 : f32 to vector<64x64xf32>
    %113 = arith.cmpf ogt, %111, %112 : vector<64x64xf32>
    %cst_42 = arith.constant 2.000000e-01 : f32
    %114 = vector.broadcast %cst_42 : f32 to vector<64x64xf32>
    %115 = arith.mulf %114, %111 : vector<64x64xf32>
    %116 = arith.select %113, %111, %115 : vector<64x64xi1>, vector<64x64xf32>
    %117 = arith.truncf %116 : vector<64x64xf32> to vector<64x64xbf16>
    %c0_43 = arith.constant 0 : index
    %c0_44 = arith.constant 0 : index
    %118 = vector.load %arg10[%c0_43, %c0_44] : memref<64x2xbf16, #tpu.memory_space<vmem>>, vector<64x2xbf16>
    %cst_45 = arith.constant dense<0.000000e+00> : vector<64x2xf32>
    %119 = tpu.matmul %117, %118, %cst_45 {dimension_numbers = #tpu.dot_dimension_numbers<[1], [0], [0], [1], [0, 0, 1, 1], [], []>} : vector<64x64xbf16>, vector<64x2xbf16>, vector<64x2xf32> -> vector<64x2xf32>
    %c0_46 = arith.constant 0 : index
    %c0_47 = arith.constant 0 : index
    %120 = vector.load %arg11[%c0_46, %c0_47] : memref<2x64xbf16, #tpu.memory_space<vmem>>, vector<2x64xbf16>
    "tpu.trace_start"() <{level = 10 : i32, message = "hd,nd->hn"}> : () -> ()
    %cst_48 = arith.constant dense<0.000000e+00> : vector<2x64xf32>
    %121 = tpu.matmul %120, %117, %cst_48 {dimension_numbers = #tpu.dot_dimension_numbers<[1], [1], [0], [0], [0, 0, 1, 0], [], []>} : vector<2x64xbf16>, vector<64x64xbf16>, vector<2x64xf32> -> vector<2x64xf32>
    "tpu.trace_stop"() : () -> ()
    %122 = vector.extract_strided_slice %119 {offsets = [0, 0], sizes = [64, 1], strides = [1, 1]} : vector<64x2xf32> to vector<64x1xf32>
    %123 = vector.extract_strided_slice %121 {offsets = [0, 0], sizes = [1, 64], strides = [1, 1]} : vector<2x64xf32> to vector<1x64xf32>
    %124 = vector.broadcast %122 : vector<64x1xf32> to vector<64x64xf32>
    %125 = vector.broadcast %123 : vector<1x64xf32> to vector<64x64xf32>
    %126 = arith.addf %124, %125 : vector<64x64xf32>
    %cst_49 = arith.constant 0.000000e+00 : f32
    %127 = vector.broadcast %cst_49 : f32 to vector<64x64xf32>
    %128 = arith.cmpf ogt, %126, %127 : vector<64x64xf32>
    %cst_50 = arith.constant 2.000000e-01 : f32
    %129 = vector.broadcast %cst_50 : f32 to vector<64x64xf32>
    %130 = arith.mulf %129, %126 : vector<64x64xf32>
    %131 = arith.select %128, %126, %130 : vector<64x64xi1>, vector<64x64xf32>
    %cst_51 = arith.constant -9.000000e+15 : f32
    %132 = vector.broadcast %cst_51 : f32 to vector<64x64xf32>
    %133 = arith.select %2, %131, %132 : vector<64x64xi1>, vector<64x64xf32>
    %cst_52 = arith.constant dense<0xFF800000> : vector<64xf32>
    %134 = vector.multi_reduction <maximumf>, %133, %cst_52 [1] : vector<64x64xf32> to vector<64xf32>
    %135 = vector.shape_cast %134 : vector<64xf32> to vector<64x1xf32>
    %136 = vector.broadcast %135 : vector<64x1xf32> to vector<64x64xf32>
    %137 = arith.subf %133, %136 : vector<64x64xf32>
    %138 = math.exp %137 : vector<64x64xf32>
    %cst_53 = arith.constant dense<0.000000e+00> : vector<64xf32>
    %139 = vector.multi_reduction <add>, %138, %cst_53 [1] : vector<64x64xf32> to vector<64xf32>
    %140 = vector.shape_cast %139 : vector<64xf32> to vector<64x1xf32>
    %141 = tpu.reciprocal %140 {approx = true} : vector<64x1xf32> -> vector<64x1xf32>
    %142 = vector.broadcast %141 : vector<64x1xf32> to vector<64x64xf32>
    %143 = arith.mulf %138, %142 : vector<64x64xf32>
    %144 = arith.truncf %143 : vector<64x64xf32> to vector<64x64xbf16>
    %145 = vector.extract_strided_slice %117 {offsets = [0, 0], sizes = [64, 32], strides = [1, 1]} : vector<64x64xbf16> to vector<64x32xbf16>
    %cst_54 = arith.constant dense<0.000000e+00> : vector<64x32xf32>
    %146 = tpu.matmul %144, %145, %cst_54 {dimension_numbers = #tpu.dot_dimension_numbers<[1], [0], [0], [1], [0, 0, 1, 1], [], []>} : vector<64x64xbf16>, vector<64x32xbf16>, vector<64x32xf32> -> vector<64x32xf32>
    %147 = arith.mulf %146, %146 : vector<64x32xf32>
    %cst_55 = arith.constant dense<0.000000e+00> : vector<64xf32>
    %148 = vector.multi_reduction <add>, %147, %cst_55 [1] : vector<64x32xf32> to vector<64xf32>
    %149 = vector.shape_cast %148 : vector<64xf32> to vector<64x1xf32>
    %cst_56 = arith.constant 1.000000e-24 : f32
    %150 = vector.broadcast %cst_56 : f32 to vector<64x1xf32>
    %151 = arith.maximumf %149, %150 : vector<64x1xf32>
    %152 = math.rsqrt %151 : vector<64x1xf32>
    %153 = vector.broadcast %152 : vector<64x1xf32> to vector<64x32xf32>
    %154 = arith.mulf %146, %153 : vector<64x32xf32>
    %c0_57 = arith.constant 0 : index
    %c0_58 = arith.constant 0 : index
    %155 = vector.load %arg12[%c0_57, %c0_58] : memref<1x64xf32, #tpu.memory_space<vmem>>, vector<1x32xf32>
    %156 = vector.broadcast %155 : vector<1x32xf32> to vector<64x32xf32>
    %157 = arith.addf %154, %156 : vector<64x32xf32>
    %158 = arith.addf %157, %108 : vector<64x32xf32>
    %159 = vector.extract_strided_slice %119 {offsets = [0, 1], sizes = [64, 1], strides = [1, 1]} : vector<64x2xf32> to vector<64x1xf32>
    %160 = vector.extract_strided_slice %121 {offsets = [1, 0], sizes = [1, 64], strides = [1, 1]} : vector<2x64xf32> to vector<1x64xf32>
    %161 = vector.broadcast %159 : vector<64x1xf32> to vector<64x64xf32>
    %162 = vector.broadcast %160 : vector<1x64xf32> to vector<64x64xf32>
    %163 = arith.addf %161, %162 : vector<64x64xf32>
    %cst_59 = arith.constant 0.000000e+00 : f32
    %164 = vector.broadcast %cst_59 : f32 to vector<64x64xf32>
    %165 = arith.cmpf ogt, %163, %164 : vector<64x64xf32>
    %cst_60 = arith.constant 2.000000e-01 : f32
    %166 = vector.broadcast %cst_60 : f32 to vector<64x64xf32>
    %167 = arith.mulf %166, %163 : vector<64x64xf32>
    %168 = arith.select %165, %163, %167 : vector<64x64xi1>, vector<64x64xf32>
    %cst_61 = arith.constant -9.000000e+15 : f32
    %169 = vector.broadcast %cst_61 : f32 to vector<64x64xf32>
    %170 = arith.select %2, %168, %169 : vector<64x64xi1>, vector<64x64xf32>
    %cst_62 = arith.constant dense<0xFF800000> : vector<64xf32>
    %171 = vector.multi_reduction <maximumf>, %170, %cst_62 [1] : vector<64x64xf32> to vector<64xf32>
    %172 = vector.shape_cast %171 : vector<64xf32> to vector<64x1xf32>
    %173 = vector.broadcast %172 : vector<64x1xf32> to vector<64x64xf32>
    %174 = arith.subf %170, %173 : vector<64x64xf32>
    %175 = math.exp %174 : vector<64x64xf32>
    %cst_63 = arith.constant dense<0.000000e+00> : vector<64xf32>
    %176 = vector.multi_reduction <add>, %175, %cst_63 [1] : vector<64x64xf32> to vector<64xf32>
    %177 = vector.shape_cast %176 : vector<64xf32> to vector<64x1xf32>
    %178 = tpu.reciprocal %177 {approx = true} : vector<64x1xf32> -> vector<64x1xf32>
    %179 = vector.broadcast %178 : vector<64x1xf32> to vector<64x64xf32>
    %180 = arith.mulf %175, %179 : vector<64x64xf32>
    %181 = arith.truncf %180 : vector<64x64xf32> to vector<64x64xbf16>
    %182 = vector.extract_strided_slice %117 {offsets = [0, 32], sizes = [64, 32], strides = [1, 1]} : vector<64x64xbf16> to vector<64x32xbf16>
    %cst_64 = arith.constant dense<0.000000e+00> : vector<64x32xf32>
    %183 = tpu.matmul %181, %182, %cst_64 {dimension_numbers = #tpu.dot_dimension_numbers<[1], [0], [0], [1], [0, 0, 1, 1], [], []>} : vector<64x64xbf16>, vector<64x32xbf16>, vector<64x32xf32> -> vector<64x32xf32>
    %184 = arith.mulf %183, %183 : vector<64x32xf32>
    %cst_65 = arith.constant dense<0.000000e+00> : vector<64xf32>
    %185 = vector.multi_reduction <add>, %184, %cst_65 [1] : vector<64x32xf32> to vector<64xf32>
    %186 = vector.shape_cast %185 : vector<64xf32> to vector<64x1xf32>
    %cst_66 = arith.constant 1.000000e-24 : f32
    %187 = vector.broadcast %cst_66 : f32 to vector<64x1xf32>
    %188 = arith.maximumf %186, %187 : vector<64x1xf32>
    %189 = math.rsqrt %188 : vector<64x1xf32>
    %190 = vector.broadcast %189 : vector<64x1xf32> to vector<64x32xf32>
    %191 = arith.mulf %183, %190 : vector<64x32xf32>
    %c0_67 = arith.constant 0 : index
    %c32_68 = arith.constant 32 : index
    %192 = vector.load %arg12[%c0_67, %c32_68] : memref<1x64xf32, #tpu.memory_space<vmem>>, vector<1x32xf32>
    %193 = vector.broadcast %192 : vector<1x32xf32> to vector<64x32xf32>
    %194 = arith.addf %191, %193 : vector<64x32xf32>
    %195 = arith.addf %194, %108 : vector<64x32xf32>
    %196 = arith.addf %158, %195 : vector<64x32xf32>
    %cst_69 = arith.constant 5.000000e-01 : f32
    %197 = vector.broadcast %cst_69 : f32 to vector<64x32xf32>
    %198 = arith.mulf %196, %197 : vector<64x32xf32>
    %cst_70 = arith.constant 0.000000e+00 : f32
    %199 = vector.broadcast %cst_70 : f32 to vector<64x32xf32>
    %200 = arith.cmpf ogt, %198, %199 : vector<64x32xf32>
    %cst_71 = arith.constant 0.000000e+00 : f32
    %201 = vector.broadcast %cst_71 : f32 to vector<64x32xf32>
    %202 = arith.minimumf %198, %201 : vector<64x32xf32>
    %203 = math.exp %202 : vector<64x32xf32>
    %cst_72 = arith.constant 1.000000e+00 : f32
    %204 = vector.broadcast %cst_72 : f32 to vector<64x32xf32>
    %205 = arith.subf %203, %204 : vector<64x32xf32>
    %206 = arith.select %200, %198, %205 : vector<64x32xi1>, vector<64x32xf32>
    %207 = arith.truncf %206 : vector<64x32xf32> to vector<64x32xbf16>
    %c0_73 = arith.constant 0 : index
    %c0_74 = arith.constant 0 : index
    %208 = vector.load %arg13[%c0_73, %c0_74] : memref<32x64xbf16, #tpu.memory_space<vmem>>, vector<32x64xbf16>
    %cst_75 = arith.constant dense<0.000000e+00> : vector<64x64xf32>
    %209 = tpu.matmul %207, %208, %cst_75 {dimension_numbers = #tpu.dot_dimension_numbers<[1], [0], [0], [1], [0, 0, 1, 1], [], []>} : vector<64x32xbf16>, vector<32x64xbf16>, vector<64x64xf32> -> vector<64x64xf32>
    %cst_76 = arith.constant 0.000000e+00 : f32
    %210 = vector.broadcast %cst_76 : f32 to vector<64x64xf32>
    %211 = arith.cmpf ogt, %209, %210 : vector<64x64xf32>
    %cst_77 = arith.constant 2.000000e-01 : f32
    %212 = vector.broadcast %cst_77 : f32 to vector<64x64xf32>
    %213 = arith.mulf %212, %209 : vector<64x64xf32>
    %214 = arith.select %211, %209, %213 : vector<64x64xi1>, vector<64x64xf32>
    %215 = arith.truncf %214 : vector<64x64xf32> to vector<64x64xbf16>
    %c0_78 = arith.constant 0 : index
    %c0_79 = arith.constant 0 : index
    %216 = vector.load %arg14[%c0_78, %c0_79] : memref<64x2xbf16, #tpu.memory_space<vmem>>, vector<64x2xbf16>
    %cst_80 = arith.constant dense<0.000000e+00> : vector<64x2xf32>
    %217 = tpu.matmul %215, %216, %cst_80 {dimension_numbers = #tpu.dot_dimension_numbers<[1], [0], [0], [1], [0, 0, 1, 1], [], []>} : vector<64x64xbf16>, vector<64x2xbf16>, vector<64x2xf32> -> vector<64x2xf32>
    %c0_81 = arith.constant 0 : index
    %c0_82 = arith.constant 0 : index
    %218 = vector.load %arg15[%c0_81, %c0_82] : memref<2x64xbf16, #tpu.memory_space<vmem>>, vector<2x64xbf16>
    "tpu.trace_start"() <{level = 10 : i32, message = "hd,nd->hn"}> : () -> ()
    %cst_83 = arith.constant dense<0.000000e+00> : vector<2x64xf32>
    %219 = tpu.matmul %218, %215, %cst_83 {dimension_numbers = #tpu.dot_dimension_numbers<[1], [1], [0], [0], [0, 0, 1, 0], [], []>} : vector<2x64xbf16>, vector<64x64xbf16>, vector<2x64xf32> -> vector<2x64xf32>
    "tpu.trace_stop"() : () -> ()
    %220 = vector.extract_strided_slice %217 {offsets = [0, 0], sizes = [64, 1], strides = [1, 1]} : vector<64x2xf32> to vector<64x1xf32>
    %221 = vector.extract_strided_slice %219 {offsets = [0, 0], sizes = [1, 64], strides = [1, 1]} : vector<2x64xf32> to vector<1x64xf32>
    %222 = vector.broadcast %220 : vector<64x1xf32> to vector<64x64xf32>
    %223 = vector.broadcast %221 : vector<1x64xf32> to vector<64x64xf32>
    %224 = arith.addf %222, %223 : vector<64x64xf32>
    %cst_84 = arith.constant 0.000000e+00 : f32
    %225 = vector.broadcast %cst_84 : f32 to vector<64x64xf32>
    %226 = arith.cmpf ogt, %224, %225 : vector<64x64xf32>
    %cst_85 = arith.constant 2.000000e-01 : f32
    %227 = vector.broadcast %cst_85 : f32 to vector<64x64xf32>
    %228 = arith.mulf %227, %224 : vector<64x64xf32>
    %229 = arith.select %226, %224, %228 : vector<64x64xi1>, vector<64x64xf32>
    %cst_86 = arith.constant -9.000000e+15 : f32
    %230 = vector.broadcast %cst_86 : f32 to vector<64x64xf32>
    %231 = arith.select %2, %229, %230 : vector<64x64xi1>, vector<64x64xf32>
    %cst_87 = arith.constant dense<0xFF800000> : vector<64xf32>
    %232 = vector.multi_reduction <maximumf>, %231, %cst_87 [1] : vector<64x64xf32> to vector<64xf32>
    %233 = vector.shape_cast %232 : vector<64xf32> to vector<64x1xf32>
    %234 = vector.broadcast %233 : vector<64x1xf32> to vector<64x64xf32>
    %235 = arith.subf %231, %234 : vector<64x64xf32>
    %236 = math.exp %235 : vector<64x64xf32>
    %cst_88 = arith.constant dense<0.000000e+00> : vector<64xf32>
    %237 = vector.multi_reduction <add>, %236, %cst_88 [1] : vector<64x64xf32> to vector<64xf32>
    %238 = vector.shape_cast %237 : vector<64xf32> to vector<64x1xf32>
    %239 = tpu.reciprocal %238 {approx = true} : vector<64x1xf32> -> vector<64x1xf32>
    %240 = vector.broadcast %239 : vector<64x1xf32> to vector<64x64xf32>
    %241 = arith.mulf %236, %240 : vector<64x64xf32>
    %242 = arith.truncf %241 : vector<64x64xf32> to vector<64x64xbf16>
    %243 = vector.extract_strided_slice %215 {offsets = [0, 0], sizes = [64, 32], strides = [1, 1]} : vector<64x64xbf16> to vector<64x32xbf16>
    %cst_89 = arith.constant dense<0.000000e+00> : vector<64x32xf32>
    %244 = tpu.matmul %242, %243, %cst_89 {dimension_numbers = #tpu.dot_dimension_numbers<[1], [0], [0], [1], [0, 0, 1, 1], [], []>} : vector<64x64xbf16>, vector<64x32xbf16>, vector<64x32xf32> -> vector<64x32xf32>
    %245 = arith.mulf %244, %244 : vector<64x32xf32>
    %cst_90 = arith.constant dense<0.000000e+00> : vector<64xf32>
    %246 = vector.multi_reduction <add>, %245, %cst_90 [1] : vector<64x32xf32> to vector<64xf32>
    %247 = vector.shape_cast %246 : vector<64xf32> to vector<64x1xf32>
    %cst_91 = arith.constant 1.000000e-24 : f32
    %248 = vector.broadcast %cst_91 : f32 to vector<64x1xf32>
    %249 = arith.maximumf %247, %248 : vector<64x1xf32>
    %250 = math.rsqrt %249 : vector<64x1xf32>
    %251 = vector.broadcast %250 : vector<64x1xf32> to vector<64x32xf32>
    %252 = arith.mulf %244, %251 : vector<64x32xf32>
    %c0_92 = arith.constant 0 : index
    %c0_93 = arith.constant 0 : index
    %253 = vector.load %arg16[%c0_92, %c0_93] : memref<1x64xf32, #tpu.memory_space<vmem>>, vector<1x32xf32>
    %254 = vector.broadcast %253 : vector<1x32xf32> to vector<64x32xf32>
    %255 = arith.addf %252, %254 : vector<64x32xf32>
    %256 = arith.addf %255, %206 : vector<64x32xf32>
    %257 = vector.extract_strided_slice %217 {offsets = [0, 1], sizes = [64, 1], strides = [1, 1]} : vector<64x2xf32> to vector<64x1xf32>
    %258 = vector.extract_strided_slice %219 {offsets = [1, 0], sizes = [1, 64], strides = [1, 1]} : vector<2x64xf32> to vector<1x64xf32>
    %259 = vector.broadcast %257 : vector<64x1xf32> to vector<64x64xf32>
    %260 = vector.broadcast %258 : vector<1x64xf32> to vector<64x64xf32>
    %261 = arith.addf %259, %260 : vector<64x64xf32>
    %cst_94 = arith.constant 0.000000e+00 : f32
    %262 = vector.broadcast %cst_94 : f32 to vector<64x64xf32>
    %263 = arith.cmpf ogt, %261, %262 : vector<64x64xf32>
    %cst_95 = arith.constant 2.000000e-01 : f32
    %264 = vector.broadcast %cst_95 : f32 to vector<64x64xf32>
    %265 = arith.mulf %264, %261 : vector<64x64xf32>
    %266 = arith.select %263, %261, %265 : vector<64x64xi1>, vector<64x64xf32>
    %cst_96 = arith.constant -9.000000e+15 : f32
    %267 = vector.broadcast %cst_96 : f32 to vector<64x64xf32>
    %268 = arith.select %2, %266, %267 : vector<64x64xi1>, vector<64x64xf32>
    %cst_97 = arith.constant dense<0xFF800000> : vector<64xf32>
    %269 = vector.multi_reduction <maximumf>, %268, %cst_97 [1] : vector<64x64xf32> to vector<64xf32>
    %270 = vector.shape_cast %269 : vector<64xf32> to vector<64x1xf32>
    %271 = vector.broadcast %270 : vector<64x1xf32> to vector<64x64xf32>
    %272 = arith.subf %268, %271 : vector<64x64xf32>
    %273 = math.exp %272 : vector<64x64xf32>
    %cst_98 = arith.constant dense<0.000000e+00> : vector<64xf32>
    %274 = vector.multi_reduction <add>, %273, %cst_98 [1] : vector<64x64xf32> to vector<64xf32>
    %275 = vector.shape_cast %274 : vector<64xf32> to vector<64x1xf32>
    %276 = tpu.reciprocal %275 {approx = true} : vector<64x1xf32> -> vector<64x1xf32>
    %277 = vector.broadcast %276 : vector<64x1xf32> to vector<64x64xf32>
    %278 = arith.mulf %273, %277 : vector<64x64xf32>
    %279 = arith.truncf %278 : vector<64x64xf32> to vector<64x64xbf16>
    %280 = vector.extract_strided_slice %215 {offsets = [0, 32], sizes = [64, 32], strides = [1, 1]} : vector<64x64xbf16> to vector<64x32xbf16>
    %cst_99 = arith.constant dense<0.000000e+00> : vector<64x32xf32>
    %281 = tpu.matmul %279, %280, %cst_99 {dimension_numbers = #tpu.dot_dimension_numbers<[1], [0], [0], [1], [0, 0, 1, 1], [], []>} : vector<64x64xbf16>, vector<64x32xbf16>, vector<64x32xf32> -> vector<64x32xf32>
    %282 = arith.mulf %281, %281 : vector<64x32xf32>
    %cst_100 = arith.constant dense<0.000000e+00> : vector<64xf32>
    %283 = vector.multi_reduction <add>, %282, %cst_100 [1] : vector<64x32xf32> to vector<64xf32>
    %284 = vector.shape_cast %283 : vector<64xf32> to vector<64x1xf32>
    %cst_101 = arith.constant 1.000000e-24 : f32
    %285 = vector.broadcast %cst_101 : f32 to vector<64x1xf32>
    %286 = arith.maximumf %284, %285 : vector<64x1xf32>
    %287 = math.rsqrt %286 : vector<64x1xf32>
    %288 = vector.broadcast %287 : vector<64x1xf32> to vector<64x32xf32>
    %289 = arith.mulf %281, %288 : vector<64x32xf32>
    %c0_102 = arith.constant 0 : index
    %c32_103 = arith.constant 32 : index
    %290 = vector.load %arg16[%c0_102, %c32_103] : memref<1x64xf32, #tpu.memory_space<vmem>>, vector<1x32xf32>
    %291 = vector.broadcast %290 : vector<1x32xf32> to vector<64x32xf32>
    %292 = arith.addf %289, %291 : vector<64x32xf32>
    %293 = arith.addf %292, %206 : vector<64x32xf32>
    %294 = arith.addf %256, %293 : vector<64x32xf32>
    %cst_104 = arith.constant 5.000000e-01 : f32
    %295 = vector.broadcast %cst_104 : f32 to vector<64x32xf32>
    %296 = arith.mulf %294, %295 : vector<64x32xf32>
    %297 = arith.truncf %296 : vector<64x32xf32> to vector<64x32xbf16>
    %c0_105 = arith.constant 0 : index
    %c0_106 = arith.constant 0 : index
    %298 = vector.load %arg17[%c0_105, %c0_106] : memref<32x32xbf16, #tpu.memory_space<vmem>>, vector<32x32xbf16>
    %cst_107 = arith.constant dense<0.000000e+00> : vector<64x32xf32>
    %299 = tpu.matmul %297, %298, %cst_107 {dimension_numbers = #tpu.dot_dimension_numbers<[1], [0], [0], [1], [0, 0, 1, 1], [], []>} : vector<64x32xbf16>, vector<32x32xbf16>, vector<64x32xf32> -> vector<64x32xf32>
    %c0_108 = arith.constant 0 : index
    %c0_109 = arith.constant 0 : index
    %300 = vector.load %arg18[%c0_108, %c0_109] : memref<1x32xf32, #tpu.memory_space<vmem>>, vector<1x32xf32>
    %301 = vector.broadcast %300 : vector<1x32xf32> to vector<64x32xf32>
    %302 = arith.addf %299, %301 : vector<64x32xf32>
    %cst_110 = arith.constant 0.000000e+00 : f32
    %303 = vector.broadcast %cst_110 : f32 to vector<64x32xf32>
    %304 = arith.cmpf ogt, %302, %303 : vector<64x32xf32>
    %cst_111 = arith.constant 0.00999999977 : f32
    %305 = vector.broadcast %cst_111 : f32 to vector<64x32xf32>
    %306 = arith.mulf %305, %302 : vector<64x32xf32>
    %307 = arith.select %304, %302, %306 : vector<64x32xi1>, vector<64x32xf32>
    %308 = arith.truncf %307 : vector<64x32xf32> to vector<64x32xbf16>
    %c0_112 = arith.constant 0 : index
    %c0_113 = arith.constant 0 : index
    %309 = vector.load %arg19[%c0_112, %c0_113] : memref<32x128xbf16, #tpu.memory_space<vmem>>, vector<32x128xbf16>
    %cst_114 = arith.constant dense<0.000000e+00> : vector<64x128xf32>
    %310 = tpu.matmul %308, %309, %cst_114 {dimension_numbers = #tpu.dot_dimension_numbers<[1], [0], [0], [1], [0, 0, 1, 1], [], []>} : vector<64x32xbf16>, vector<32x128xbf16>, vector<64x128xf32> -> vector<64x128xf32>
    %c0_115 = arith.constant 0 : index
    %c0_116 = arith.constant 0 : index
    %311 = vector.load %arg20[%c0_115, %c0_116] : memref<1x128xf32, #tpu.memory_space<vmem>>, vector<1x128xf32>
    %312 = vector.broadcast %311 : vector<1x128xf32> to vector<64x128xf32>
    %313 = arith.addf %310, %312 : vector<64x128xf32>
    %cst_117 = arith.constant 0.000000e+00 : f32
    %314 = vector.broadcast %cst_117 : f32 to vector<64x128xf32>
    %315 = arith.cmpf ogt, %313, %314 : vector<64x128xf32>
    %cst_118 = arith.constant 0.00999999977 : f32
    %316 = vector.broadcast %cst_118 : f32 to vector<64x128xf32>
    %317 = arith.mulf %316, %313 : vector<64x128xf32>
    %318 = arith.select %315, %313, %317 : vector<64x128xi1>, vector<64x128xf32>
    %c0_119 = arith.constant 0 : index
    %c0_120 = arith.constant 0 : index
    %319 = vector.load %arg22[%c0_119, %c0_120] : memref<64x128xf32, #tpu.memory_space<vmem>>, vector<64x128xf32>
    tpu.vector_store %arg22[%c0_119, %c0_120], %318 {strides = array<i32>} : memref<64x128xf32, #tpu.memory_space<vmem>>, vector<64x128xf32>,
    %320 = vector.extract_strided_slice %318 {offsets = [0, 0], sizes = [64, 16], strides = [1, 1]} : vector<64x128xf32> to vector<64x16xf32>
    %321 = vector.extract_strided_slice %318 {offsets = [0, 16], sizes = [64, 16], strides = [1, 1]} : vector<64x128xf32> to vector<64x16xf32>
    %c0_121 = arith.constant 0 : index
    %c0_122 = arith.constant 0 : index
    %322 = vector.load %arg2[%c0_121, %c0_122] : memref<8x64xf32, #tpu.memory_space<vmem>>, vector<8x64xf32>
    %cst_123 = arith.constant dense<0.000000e+00> : vector<8x16xf32>
    %323 = tpu.matmul %322, %320, %cst_123 {dimension_numbers = #tpu.dot_dimension_numbers<[1], [0], [0], [1], [0, 0, 1, 1], [], []>} : vector<8x64xf32>, vector<64x16xf32>, vector<8x16xf32> -> vector<8x16xf32>
    %c0_124 = arith.constant 0 : index
    %c0_125 = arith.constant 0 : index
    %324 = vector.load %arg3[%c0_124, %c0_125] : memref<8x64xf32, #tpu.memory_space<vmem>>, vector<8x64xf32>
    %cst_126 = arith.constant dense<0.000000e+00> : vector<8x16xf32>
    %325 = tpu.matmul %324, %321, %cst_126 {dimension_numbers = #tpu.dot_dimension_numbers<[1], [0], [0], [1], [0, 0, 1, 1], [], []>} : vector<8x64xf32>, vector<64x16xf32>, vector<8x16xf32> -> vector<8x16xf32>
    %326 = arith.mulf %323, %325 : vector<8x16xf32>
    %cst_127 = arith.constant dense<0.000000e+00> : vector<8xf32>
    %327 = vector.multi_reduction <add>, %326, %cst_127 [1] : vector<8x16xf32> to vector<8xf32>
    %328 = vector.shape_cast %327 : vector<8xf32> to vector<8x1xf32>
    %c0_128 = arith.constant 0 : index
    %c0_129 = arith.constant 0 : index
    %329 = vector.load %arg21[%c0_128, %c0_129] : memref<8x1xf32, #tpu.memory_space<vmem>>, vector<8x1xf32>
    tpu.vector_store %arg21[%c0_128, %c0_129], %328 {strides = array<i32>} : memref<8x1xf32, #tpu.memory_space<vmem>>, vector<8x1xf32>,
    return
  }
}

</mosaic_0001>

<bundles_post_ra>
// kernel: genelink_forward.1
= control target key start
LH: loop header
LB: loop body
LE: loop exit
PB: predicated region body
PF: predicated region fallthrough
CT: control target
= control target key end

     0   :  { %vm113_vm0 = vcmask 392192   ;;  %vm6071_vm3 = vcmask 523264   ;;  %s4027_s28 = smov 64   ;;  %s6044_s4 = inlined_call_operand.vmem [shape: bf16[48,128], index: 4, kind: input, shape index: {}]   ;;  %s6045_s1 = inlined_call_operand.vmem [shape: f32[64,48], index: 1, kind: input, shape index: {}]   ;;  %s6046_s5 = inlined_call_operand.vmem [shape: bf16[64,2], index: 5, kind: input, shape index: {}]   ;;  %s6047_s6 = inlined_call_operand.vmem [shape: bf16[2,64], index: 6, kind: input, shape index: {}]   ;;  %s6048_s0 = inlined_call_operand.vmem [shape: s8[64,64], index: 0, kind: input, shape index: {}]   ;;  %s6049_s8 = inlined_call_operand.vmem [shape: f32[1,64], index: 8, kind: input, shape index: {}]   ;;  %s6050_s7 = inlined_call_operand.vmem [shape: f32[1,64], index: 7, kind: input, shape index: {}]   ;;  %s6051_s9 = inlined_call_operand.vmem [shape: bf16[32,64], index: 9, kind: input, shape index: {}]   ;;  %s6052_s10 = inlined_call_operand.vmem [shape: bf16[64,2], index: 10, kind: input, shape index: {}]   ;;  %s6053_s11 = inlined_call_operand.vmem [shape: bf16[2,64], index: 11, kind: input, shape index: {}]   ;;  %s6054_s12 = inlined_call_operand.vmem [shape: f32[1,64], index: 12, kind: input, shape index: {}]   ;;  %s6055_s13 = inlined_call_operand.vmem [shape: bf16[32,64], index: 13, kind: input, shape index: {}]   ;;  %s6056_s14 = inlined_call_operand.vmem [shape: bf16[64,2], index: 14, kind: input, shape index: {}]   ;;  %s6057_s15 = inlined_call_operand.vmem [shape: bf16[2,64], index: 15, kind: input, shape index: {}]   ;;  %s6058_s16 = inlined_call_operand.vmem [shape: f32[1,64], index: 16, kind: input, shape index: {}]   ;;  %s6059_s18 = inlined_call_operand.vmem [shape: f32[1,32], index: 18, kind: input, shape index: {}]   ;;  %s6060_s17 = inlined_call_operand.vmem [shape: bf16[32,32], index: 17, kind: input, shape index: {}]   ;;  %s6061_s20 = inlined_call_operand.vmem [shape: f32[1,128], index: 20, kind: input, shape index: {}]   ;;  %s6062_s19 = inlined_call_operand.vmem [shape: bf16[32,128], index: 19, kind: input, shape index: {}]   ;;  %s6063_s22 = inlined_call_operand.vmem [shape: f32[64,128], index: 22, kind: output, shape index: {1}]   ;;  %s6064_s2 = inlined_call_operand.vmem [shape: f32[8,64], index: 2, kind: input, shape index: {}]   ;;  %s6065_s3 = inlined_call_operand.vmem [shape: f32[8,64], index: 3, kind: input, shape index: {}]   ;;  %s6066_s21 = inlined_call_operand.vmem [shape: f32[8,1], index: 21, kind: output, shape index: {0}]  }
   0x1   :  { %6072 = sst [smem:[#allocation2_spill]] %s6044_s4  ;;  %s4028_s4 = smov 32  }
   0x2   :  { %6073 = sst [smem:[#allocation3_spill]] %s6045_s1 }
   0x3   :  { %6074 = sst [smem:[#allocation4_spill]] %s6046_s5 }
   0x4   :  { %6075 = sst [smem:[#allocation5_spill]] %s6047_s6 }
   0x5   :  { %6076 = sst [smem:[#allocation6_spill]] %s6048_s0 }
   0x6   :  { %6077 = sst [smem:[#allocation7_spill]] %s6049_s8 }
   0x7   :  { %6078 = sst [smem:[#allocation8_spill]] %s6050_s7 }
   0x8   :  { %s6079_s29 = sld [smem:[#allocation2_spill]] }
   0x9   :  { %s6080_s24 = sld [smem:[#allocation3_spill]] }
   0xa   :  { %s6081_s26 = sld [smem:[#allocation4_spill]] }
   0xb   :  { %s6082_s23 = sld [smem:[#allocation5_spill]] }
   0xc   :  { %s6083_s7 = sld [smem:[#allocation6_spill]] }
   0xd   :  { %s6100_s6 = sld [smem:[#allocation7_spill]] }
   0xe   :  { %v3622_v0 = vld [vmem:[%s6079_s29 + $0x10] sm:$0xff]  ;;  %v3621_v1 = vld [vmem:[%s6079_s29 + $0x8] sm:$0xff]  ;;  %v3620_v2 = vld [vmem:[%s6079_s29] sm:$0xff]  ;;  %s6101_s0 = sld [smem:[#allocation8_spill]] }
   0xf   :  { %131 = vmatpush.bf16.msra.mxu0 %v3622_v0  ;;  %v77_v3 = vld [vmem:[%s6080_s24] sm:$0xff]  ;;  %v78_v4 = vld [vmem:[%s6080_s24 + $0x8] sm:$0xff]  ;;  %v79_v6 = vld [vmem:[%s6080_s24 + $0x10] sm:$0xff]  ;;  %v4025_v0 = vmov 1  }
  0x10   :  { %v85_v5 = vpack.c.bf16 %v78_v4, %v77_v3  ;;  %v80_v7 = vld [vmem:[%s6080_s24 + $0x18] sm:$0xff]  ;;  %v81_v9 = vld [vmem:[%s6080_s24 + $0x20] sm:$0xff]  ;;  %v82_v10 = vld [vmem:[%s6080_s24 + $0x28] sm:$0xff]  ;;  %3650 = vset.pattern.permute.xlu1 %v4025_v0 }
  0x11   :  { %v86_v8 = vpack.c.bf16 %v80_v7, %v79_v6  ;;  %v87_v11 = vpack.c.bf16 %v82_v10, %v81_v9  ;;  %v83_v12 = vld [vmem:[%s6080_s24 + $0x30] sm:$0xff]  ;;  %v84_v13 = vld [vmem:[%s6080_s24 + $0x38] sm:$0xff]  ;;  %v3624_v17 = vld [vmem:[%s6081_s26 + $0x8] sm:$0xff]  ;;  %s4024_s24 = smov 96  }
  0x12   :  { %v88_v14 = vpack.c.bf16 %v84_v13, %v83_v12  ;;  %v3626_v15 = vld [vmem:[%s6081_s26 + $0x18] sm:$0xff]  ;;  %v3625_v16 = vld [vmem:[%s6081_s26 + $0x10] sm:$0xff]  ;;  %v3623_v18 = vld [vmem:[%s6081_s26] sm:$0xff] }
  0x13   :  { %132 = vmatpush.bf16.msra.mxu0 %v3621_v1  ;;  %270 = vmatpush.bf16.msra.mxu1 %v3626_v15  ;;  %v4026_v1 = vmov 0  }
  0x14   :  { %3649 = vset.pattern.permute.xlu0 %v4026_v1  ;;  %3651 = vset.pattern.permute.xlu2 %v4026_v1 }
  0x17   :  { %133 = vmatpush.bf16.msra.mxu0 %v3620_v2  ;;  %271 = vmatpush.bf16.msra.mxu1 %v3625_v16  ;;  %v73_v16 = vld [vmem:[%s6083_s7] sm:$0xff] }
  0x18   :  { %vm75_vm10 = vnez %v73_v16 }
  0x1a   :  { %3463 = vmatmul.msk.bf16.vlgmr.msra.gmra.mxu0 %vm113_vm0, %v85_v5  ;;  %v295_v5 = vld [vmem:[%s6082_s23] sm:$0x1] }
  0x1b   :  { %272 = vmatpush.bf16.msra.mxu1 %v3624_v17  ;;  %v385_v17 = vsel %vm75_vm10, 16843009, %v4026_v1 }
  0x1f   :  { %273 = vmatpush.bf16.msra.mxu1 %v3623_v18 }
  0x2a   :  { %3464 = vmatmul.msk.bf16.gmra.mxu0 %vm113_vm0, %v86_v8 }
  0x3a   :  { %3465 = vmatmul.msk.bf16.gmra.mxu0 %vm113_vm0, %v87_v11 }
  0x4a   :  { %3466 = vmatmul.msk.bf16.gmra.mxu0 %vm113_vm0, %v88_v14 }
  0x97   :  { %v4190_v19 = vpop.f32.mrf.mxu0 }
  0x98   :  { %v163_v20 = vmul.f32 0.2, %v4190_v19  ;;  %vm155_vm1 = vcmp.gt.f32.partialorder %v4190_v19, 0.0 }
  0x9a   :  { %v171_v21 = vsel %vm155_vm1, %v4190_v19, %v163_v20  ;;  %v387_v20 = vunpack.c.0.s8 %v385_v17 }
  0x9b   :  { %v193_v24 = vpack.c.bf16 %v171_v21, %v171_v21 }
  0x9c   :  { %v395_v21 = vpack.c.b16 %v387_v20, %v387_v20 }
  0x9d   :  { %v217_v27 = vunpack.c.l.b16 %v193_v24 }
  0x9e   :  { %v396_v24 = vpack.c.b8 %v395_v21, %v395_v21 }
  0x9f   :  { %v4195_v22 = vpop.f32.mrf.mxu0 }
  0xa0   :  { %vm156_vm2 = vcmp.gt.f32.partialorder %v4195_v22, 0.0  ;;  %v164_v23 = vmul.f32 0.2, %v4195_v22  ;;  %vm411_vm11 = vnez %v396_v24 }
  0xa2   :  { %v172_v25 = vsel %vm156_vm2, %v4195_v22, %v164_v23  ;;  %v389_v23 = vunpack.c.2.s8 %v385_v17 }
  0xa3   :  { %v194_v26 = vpack.c.bf16 %v172_v25, %v172_v25  ;;  %v388_v25 = vunpack.c.1.s8 %v385_v17 }
  0xa5   :  { %v218_v28 = vunpack.c.l.b16 %v194_v26  ;;  %v399_v26 = vpack.c.b16 %v389_v23, %v389_v23 }
  0xa7   :  { %v4200_v29 = vpop.f32.mrf.mxu0  ;;  %v4202_v30 = vpack.c.b16 %v218_v28, %v217_v27  ;;  %v397_v28 = vpack.c.b16 %v388_v25, %v388_v25 }
  0xa8   :  { %v165_v31 = vmul.f32 0.2, %v4200_v29  ;;  %vm157_vm4 = vcmp.gt.f32.partialorder %v4200_v29, 0.0 }
  0xa9   :  { %3483 = vmatmul.msk.bf16.vlgmr.msra.gmra.mxu1 %vm6071_vm3, %v4202_v30  ;;  %v255_v4 = vsel %vm6071_vm3, %v4202_v30, 0 }
  0xaa   :  { %v173_v32 = vsel %vm157_vm4, %v4200_v29, %v165_v31  ;;  %v400_v31 = vpack.c.b8 %v399_v26, %v399_v26 }
  0xab   :  { %v195_v33 = vpack.c.bf16 %v173_v32, %v173_v32  ;;  %v419_v32 = vsel %vm411_vm11, 16843009, %v4026_v1 }
  0xac   :  { %vm413_vm12 = vnez %v400_v31 }
  0xad   :  { %v219_v37 = vunpack.c.l.b16 %v195_v33 }
  0xaf   :  { %v4209_v34 = vpop.f32.mrf.mxu0 }
  0xb0   :  { %vm158_vm5 = vcmp.gt.f32.partialorder %v4209_v34, 0.0  ;;  %v166_v35 = vmul.f32 0.2, %v4209_v34 }
  0xb2   :  { %v174_v36 = vsel %vm158_vm5, %v4209_v34, %v166_v35 }
  0xb3   :  { %v196_v38 = vpack.c.bf16 %v174_v36, %v174_v36  ;;  %v398_v36 = vpack.c.b8 %v397_v28, %v397_v28 }
  0xb5   :  { %v220_v39 = vunpack.c.l.b16 %v196_v38  ;;  %vm412_vm13 = vnez %v398_v36 }
  0xb7   :  { %v4214_v40 = vpop.f32.mrf.mxu0  ;;  %v4216_v41 = vpack.c.b16 %v220_v39, %v219_v37  ;;  %v427_v37 = vunpack.c.0.s8 %v419_v32 }
  0xb8   :  { %v167_v42 = vmul.f32 0.2, %v4214_v40  ;;  %vm159_vm6 = vcmp.gt.f32.partialorder %v4214_v40, 0.0 }
  0xb9   :  { %3484 = vmatmul.msk.bf16.gmra.mxu1 %vm6071_vm3, %v4216_v41  ;;  %v258_v3 = vsel %vm6071_vm3, %v4216_v41, 0  ;;  %vm4283_vm14 = vcmp.ne.s32.totalorder %v427_v37, 0 }
  0xba   :  { %v175_v43 = vsel %vm159_vm6, %v4214_v40, %v167_v42 }
  0xbb   :  { %v197_v44 = vpack.c.bf16 %v175_v43, %v175_v43 }
  0xbd   :  { %v221_v48 = vunpack.c.l.b16 %v197_v44  ;;  %v74_v44 = vld [vmem:[%s6083_s7 + $0x8] sm:$0xff] }
  0xbe   :  { %vm76_vm1 = vnez %v74_v44 }
  0xbf   :  { %v4223_v45 = vpop.f32.mrf.mxu0 }
  0xc0   :  { %vm160_vm7 = vcmp.gt.f32.partialorder %v4223_v45, 0.0  ;;  %v168_v46 = vmul.f32 0.2, %v4223_v45 }
  0xc2   :  { %v176_v47 = vsel %vm160_vm7, %v4223_v45, %v168_v46 }
  0xc3   :  { %v198_v49 = vpack.c.bf16 %v176_v47, %v176_v47 }
  0xc5   :  { %v222_v50 = vunpack.c.l.b16 %v198_v49 }
  0xc7   :  { %v4228_v51 = vpop.f32.mrf.mxu0  ;;  %v4230_v52 = vpack.c.b16 %v222_v50, %v221_v48  ;;  %v421_v48 = vsel %vm413_vm12, 16843009, %v4026_v1 }
  0xc8   :  { %v169_v53 = vmul.f32 0.2, %v4228_v51  ;;  %vm161_vm8 = vcmp.gt.f32.partialorder %v4228_v51, 0.0 }
  0xc9   :  { %3485 = vmatmul.msk.bf16.gmra.mxu1 %vm6071_vm3, %v4230_v52  ;;  %v261_v2 = vsel %vm6071_vm3, %v4230_v52, 0 }
  0xca   :  { %v177_v54 = vsel %vm161_vm8, %v4228_v51, %v169_v53  ;;  %v390_v53 = vunpack.c.3.s8 %v385_v17 }
  0xcb   :  { %v199_v55 = vpack.c.bf16 %v177_v54, %v177_v54 }
  0xcd   :  { %v223_v59 = vunpack.c.l.b16 %v199_v55 }
  0xcf   :  { %v4237_v56 = vpop.f32.mrf.mxu0 }
  0xd0   :  { %vm162_vm9 = vcmp.gt.f32.partialorder %v4237_v56, 0.0  ;;  %v170_v57 = vmul.f32 0.2, %v4237_v56 }
  0xd2   :  { %v178_v58 = vsel %vm162_vm9, %v4237_v56, %v170_v57  ;;  %v420_v57 = vsel %vm412_vm13, 16843009, %v4026_v1 }
  0xd3   :  { %v200_v60 = vpack.c.bf16 %v178_v58, %v178_v58 }
  0xd5   :  { %v224_v61 = vunpack.c.l.b16 %v200_v60 }
  0xd7   :  { %v228_v62 = vpack.c.b16 %v224_v61, %v223_v59  ;;  %v429_v59 = vunpack.c.0.s8 %v421_v48 }
  0xd9   :  { %3486 = vmatmul.msk.bf16.gmra.mxu1 %vm6071_vm3, %v228_v62  ;;  %563 = vmatpush.bf16.msra.mxu3 %v228_v62  ;;  %v264_v63 = vsel %vm6071_vm3, %v228_v62, 0  ;;  %vm4303_vm4 = vcmp.ne.s32.totalorder %v429_v59, 0 }
  0xda   :  { %303 = vmatpush.bf16.xpose.msra.mxu2 %v264_v63  ;;  %940 = vrot.lane.b32.xlu0 %v228_v62, %s4024_s24 }
  0xdd   :  { %564 = vmatpush.bf16.msra.mxu3 %v4230_v52 }
  0xe1   :  { %565 = vmatpush.bf16.msra.mxu3 %v4216_v41 }
  0xe2   :  { %304 = vmatpush.bf16.xpose.msra.mxu2 %v261_v2  ;;  %v401_v2 = vpack.c.b16 %v390_v53, %v390_v53 }
  0xe5   :  { %566 = vmatpush.bf16.msra.mxu3 %v4202_v30 }
  0xea   :  { %305 = vmatpush.bf16.xpose.msra.mxu2 %v258_v3 }
  0xf2   :  { %306 = vmatpush.bf16.xpose.msra.mxu2 %v255_v4 }
  0xf9   :  { %3487 = vmatmul.msk.bf16.vlgmr.msra.gmra.mxu2 %vm6071_vm3, %v295_v5  ;;  %v428_v5 = vunpack.c.0.s8 %v420_v57 }
  0xfb   :  { %vm4310_vm6 = vcmp.ne.s32.totalorder %v428_v5, 0 }
 0x126   :  { %v275_v6 = vpop.f32.mrf.mxu1 }
 0x127   :  { %770 = vperm.xlu1 %3650, %v275_v6   ;;  %314 = vperm.xlu0 %3649, %v275_v6   ;;  %v4301_v6 = vsel %vm76_vm1, 16843009, %v4026_v1 }
 0x128   :  { %v394_v36 = vunpack.c.3.s8 %v4301_v6 }
 0x12e   :  { %v277_v7 = vpop.f32.mrf.mxu1 }
 0x12f   :  { %774 = vperm.xlu1 %3650, %v277_v7   ;;  %319 = vperm.xlu0 %3649, %v277_v7  }
 0x136   :  { %v280_v8 = vpop.f32.mrf.mxu1 }
 0x137   :  { %324 = vperm.xlu2 %3651, %v280_v8   ;;  %3652 = vset.pattern.permute.xlu0 %v4025_v0 }
 0x138   :  { %778 = vperm.xlu0 %3652, %v280_v8  }
 0x13e   :  { %v282_v9 = vpop.f32.mrf.mxu1 }
 0x13f   :  { %782 = vperm.xlu1 %3650, %v282_v9   ;;  %329 = vperm.xlu2 %3651, %v282_v9  }
 0x146   :  { %v285_v10 = vpop.f32.mrf.mxu1 }
 0x147   :  { %334 = vperm.xlu2 %3651, %v285_v10   ;;  %3654 = vset.pattern.permute.xlu1 %v4026_v1 }
 0x14c   :  { %v941_v11 = vpop.permute.xlu0 %940 }
 0x14d   :  { %962 = vmatpush.bf16.msrb.mxu2 %v941_v11 }
 0x14e   :  { %v287_v12 = vpop.f32.mrf.mxu1 }
 0x14f   :  { %3653 = vset.pattern.permute.xlu2 %v4025_v0  ;;  %339 = vperm.xlu1 %3654, %v287_v12  }
 0x150   :  { %790 = vperm.xlu0 %3652, %v287_v12   ;;  %786 = vperm.xlu2 %3653, %v285_v10   ;;  %v402_v12 = vpack.c.b8 %v401_v2, %v401_v2 }
 0x152   :  { %vm414_vm8 = vnez %v402_v12 }
 0x153   :  { %v422_v32 = vsel %vm414_vm8, 16843009, %v4026_v1 }
 0x156   :  { %v290_v13 = vpop.f32.mrf.mxu1 }
 0x157   :  { %344 = vperm.xlu1 %3654, %v290_v13  }
 0x158   :  { %794 = vperm.xlu0 %3652, %v290_v13   ;;  %3655 = vset.pattern.permute.xlu2 %v4026_v1  ;;  %v391_v13 = vunpack.c.0.s8 %v4301_v6 }
 0x15a   :  { %v403_v25 = vpack.c.b16 %v391_v13, %v391_v13 }
 0x15e   :  { %v292_v14 = vpop.f32.mrf.mxu1 }
 0x15f   :  { %3656 = vset.pattern.permute.xlu1 %v4025_v0  ;;  %349 = vperm.xlu2 %3655, %v292_v14  }
 0x160   :  { %798 = vperm.xlu1 %3656, %v292_v14  }
 0x168   :  { %3658 = vset.pattern.permute.xlu1 %v4026_v1 }
 0x17c   :  { %v308_v15 = vpop.f32.mrf.mxu2 }
 0x17d   :  { %v4272_v33 = vperm.slane %v308_v15, 0  ;;  %v4274_v35 = vperm.slane %v308_v15, 1 }
 0x184   :  { %v310_v18 = vpop.f32.mrf.mxu2 }
 0x191   :  { %v325_v27 = vpop.permute.xlu2 %324 }
 0x192   :  { %v355_v43 = vadd.f32 %v4272_v33, %v325_v27 }
 0x194   :  { %v371_v58 = vmul.f32 0.2, %v355_v43  ;;  %vm363_vm2 = vcmp.gt.f32.partialorder %v355_v43, 0.0 }
 0x196   :  { %v379_v8 = vsel %vm363_vm2, %v355_v43, %v371_v58 }
 0x197   :  { %v4316_v17 = vsel %vm4303_vm4, %v379_v8, -9e+15 }
 0x198   :  { %v457_v23 = vsel %vm6071_vm3, %v4316_v17, -inf }
 0x199   :  { %v771_v38 = vpop.permute.xlu1 %770  ;;  %v315_v42 = vpop.permute.xlu0 %314 }
 0x19a   :  { %v802_v39 = vadd.f32 %v4274_v35, %v771_v38  ;;  %v330_v46 = vpop.permute.xlu2 %329  ;;  %v353_v47 = vadd.f32 %v4272_v33, %v315_v42  ;;  %v404_v38 = vpack.c.b8 %v403_v25, %v403_v25  ;;  %v392_v42 = vunpack.c.1.s8 %v4301_v6 }
 0x19b   :  { %v356_v27 = vadd.f32 %v4272_v33, %v330_v46  ;;  %v430_v46 = vunpack.c.0.s8 %v422_v32 }
 0x19c   :  { %v818_v49 = vmul.f32 0.2, %v802_v39  ;;  %vm810_vm15 = vcmp.gt.f32.partialorder %v802_v39, 0.0  ;;  %v369_v54 = vmul.f32 0.2, %v353_v47  ;;  %vm361_vm0 = vcmp.gt.f32.partialorder %v353_v47, 0.0 }
 0x19d   :  { %v372_v43 = vmul.f32 0.2, %v356_v27  ;;  %vm364_vm10 = vcmp.gt.f32.partialorder %v356_v27, 0.0  ;;  %vm415_vm11 = vnez %v404_v38  ;;  %v405_v59 = vpack.c.b16 %v392_v42, %v392_v42 }
 0x19e   :  { %v826_v55 = vsel %vm810_vm15, %v802_v39, %v818_v49  ;;  %v377_v61 = vsel %vm361_vm0, %v353_v47, %v369_v54  ;;  %v409_v49 = vpack.c.b16 %v394_v36, %v394_v36  ;;  %vm4346_vm12 = vcmp.ne.s32.totalorder %v430_v46, 0 }
 0x19f   :  { %v4290_v60 = vsel %vm4283_vm14, %v826_v55, -9e+15  ;;  %v4296_v63 = vsel %vm4283_vm14, %v377_v61, -9e+15  ;;  %v406_v12 = vpack.c.b8 %v405_v59, %v405_v59 }
 0x1a0   :  { %v842_v62 = vsel %vm6071_vm3, %v4290_v60, -inf  ;;  %v451_v4 = vsel %vm6071_vm3, %v4296_v63, -inf  ;;  %v410_v5 = vpack.c.b8 %v409_v49, %v409_v49 }
 0x1a1   :  { %v775_v3 = vpop.permute.xlu1 %774  ;;  %843 = vmax.xlane.f32.xlu0 %v842_v62  ;;  %v320_v7 = vpop.permute.xlu0 %319  ;;  %452 = vmax.xlane.f32.xlu1 %v451_v4  ;;  %v380_v62 = vsel %vm364_vm10, %v356_v27, %v372_v43  ;;  %v423_v4 = vsel %vm415_vm11, 16843009, %v4026_v1  ;;  %vm416_vm2 = vnez %v406_v12 }
 0x1a2   :  { %v803_v10 = vadd.f32 %v4274_v35, %v775_v3  ;;  %v354_v11 = vadd.f32 %v4272_v33, %v320_v7  ;;  %v335_v14 = vpop.permute.xlu2 %334  ;;  %v393_v7 = vunpack.c.2.s8 %v4301_v6  ;;  %vm418_vm1 = vnez %v410_v5 }
 0x1a3   :  { %v357_v61 = vadd.f32 %v4272_v33, %v335_v14  ;;  %v424_v32 = vsel %vm416_vm2, 16843009, %v4026_v1 }
 0x1a4   :  { %v370_v15 = vmul.f32 0.2, %v354_v11  ;;  %vm362_vm5 = vcmp.gt.f32.partialorder %v354_v11, 0.0  ;;  %v819_v18 = vmul.f32 0.2, %v803_v10  ;;  %vm811_vm7 = vcmp.gt.f32.partialorder %v803_v10, 0.0 }
 0x1a5   :  { %v373_v13 = vmul.f32 0.2, %v357_v61  ;;  %vm365_vm0 = vcmp.gt.f32.partialorder %v357_v61, 0.0 }
 0x1a6   :  { %v378_v20 = vsel %vm362_vm5, %v354_v11, %v370_v15  ;;  %v827_v31 = vsel %vm811_vm7, %v803_v10, %v819_v18  ;;  %v4354_v10 = vsel %vm4346_vm12, %v380_v62, -9e+15  ;;  %v431_v15 = vunpack.c.0.s8 %v423_v4 }
 0x1a7   :  { %v4320_v21 = vsel %vm4310_vm6, %v378_v20, -9e+15  ;;  %v4332_v39 = vsel %vm4310_vm6, %v827_v31, -9e+15  ;;  %v460_v20 = vsel %vm6071_vm3, %v4354_v10, -inf }
 0x1a8   :  { %v454_v24 = vsel %vm6071_vm3, %v4320_v21, -inf  ;;  %v845_v54 = vsel %vm6071_vm3, %v4332_v39, -inf  ;;  %vm4365_vm5 = vcmp.ne.s32.totalorder %v431_v15, 0 }
 0x1a9   :  { %458 = vmax.xlane.f32.xlu0 %v457_v23  ;;  %455 = vmax.xlane.f32.xlu2 %v454_v24  ;;  %v407_v23 = vpack.c.b16 %v393_v7, %v393_v7 }
 0x1aa   :  { %v779_v26 = vpop.permute.xlu0 %778  ;;  %v787_v44 = vpop.permute.xlu2 %786 }
 0x1ab   :  { %v804_v28 = vadd.f32 %v4274_v35, %v779_v26  ;;  %v806_v57 = vadd.f32 %v4274_v35, %v787_v44  ;;  %v381_v26 = vsel %vm365_vm0, %v357_v61, %v373_v13  ;;  %v408_v36 = vpack.c.b8 %v407_v23, %v407_v23 }
 0x1ac   :  { %v4377_v38 = vsel %vm4365_vm5, %v381_v26, -9e+15  ;;  %v432_v44 = vunpack.c.0.s8 %v424_v32 }
 0x1ad   :  { %v820_v37 = vmul.f32 0.2, %v804_v28  ;;  %vm812_vm9 = vcmp.gt.f32.partialorder %v804_v28, 0.0  ;;  %v822_v8 = vmul.f32 0.2, %v806_v57  ;;  %vm814_vm15 = vcmp.gt.f32.partialorder %v806_v57, 0.0 }
 0x1ae   :  { %v463_v46 = vsel %vm6071_vm3, %v4377_v38, -inf  ;;  %vm417_vm8 = vnez %v408_v36  ;;  %vm4389_vm10 = vcmp.ne.s32.totalorder %v432_v44, 0 }
 0x1af   :  { %v828_v47 = vsel %vm812_vm9, %v804_v28, %v820_v37  ;;  %v830_v25 = vsel %vm814_vm15, %v806_v57, %v822_v8  ;;  %v426_v28 = vsel %vm418_vm1, 16843009, %v4026_v1  ;;  %v425_v61 = vsel %vm417_vm8, 16843009, %v4026_v1 }
 0x1b0   :  { %v4337_v48 = vsel %vm4303_vm4, %v828_v47, -9e+15  ;;  %v4372_v31 = vsel %vm4365_vm5, %v830_v25, -9e+15  ;;  %v434_v42 = vunpack.c.0.s8 %v426_v28  ;;  %v433_v13 = vunpack.c.0.s8 %v425_v61 }
 0x1b1   :  { %v783_v53 = vpop.permute.xlu1 %782  ;;  %v848_v55 = vsel %vm6071_vm3, %v4337_v48, -inf  ;;  %846 = vmax.xlane.f32.xlu2 %v845_v54  ;;  %v854_v43 = vsel %vm6071_vm3, %v4372_v31, -inf }
 0x1b2   :  { %v805_v58 = vadd.f32 %v4274_v35, %v783_v53  ;;  %849 = vmax.xlane.f32.xlu1 %v848_v55  ;;  %vm4384_vm9 = vcmp.ne.s32.totalorder %v434_v42, 0  ;;  %vm4414_vm15 = vcmp.ne.s32.totalorder %v433_v13, 0 }
 0x1b4   :  { %v821_v3 = vmul.f32 0.2, %v805_v58  ;;  %vm813_vm13 = vcmp.gt.f32.partialorder %v805_v58, 0.0 }
 0x1b6   :  { %v829_v11 = vsel %vm813_vm13, %v805_v58, %v821_v3 }
 0x1b7   :  { %v4358_v14 = vsel %vm4346_vm12, %v829_v11, -9e+15 }
 0x1b8   :  { %v851_v18 = vsel %vm6071_vm3, %v4358_v14, -inf }
 0x1b9   :  { %v350_v6 = vpop.permute.xlu2 %349  ;;  %852 = vmax.xlane.f32.xlu0 %v851_v18  ;;  %461 = vmax.xlane.f32.xlu2 %v460_v20 }
 0x1ba   :  { %v360_v24 = vadd.f32 %v4272_v33, %v350_v6 }
 0x1bc   :  { %v376_v37 = vmul.f32 0.2, %v360_v24  ;;  %vm368_vm7 = vcmp.gt.f32.partialorder %v360_v24, 0.0 }
 0x1be   :  { %v384_v54 = vsel %vm368_vm7, %v360_v24, %v376_v37  ;;  %vm596_vm7 = vcmask 261120  }
 0x1bf   :  { %v4396_v3 = vsel %vm4384_vm9, %v384_v54, -9e+15 }
 0x1c0   :  { %v472_v11 = vsel %vm6071_vm3, %v4396_v3, -inf }
 0x1c1   :  { %v340_v47 = vpop.permute.xlu1 %339  ;;  %855 = vmax.xlane.f32.xlu0 %v854_v43  ;;  %464 = vmax.xlane.f32.xlu2 %v463_v46 }
 0x1c2   :  { %v358_v49 = vadd.f32 %v4272_v33, %v340_v47  ;;  %v791_v53 = vpop.permute.xlu0 %790 }
 0x1c3   :  { %v807_v57 = vadd.f32 %v4274_v35, %v791_v53 }
 0x1c4   :  { %v374_v58 = vmul.f32 0.2, %v358_v49  ;;  %vm366_vm11 = vcmp.gt.f32.partialorder %v358_v49, 0.0 }
 0x1c5   :  { %v823_v62 = vmul.f32 0.2, %v807_v57  ;;  %vm815_vm13 = vcmp.gt.f32.partialorder %v807_v57, 0.0 }
 0x1c6   :  { %v382_v4 = vsel %vm366_vm11, %v358_v49, %v374_v58 }
 0x1c7   :  { %v831_v5 = vsel %vm815_vm13, %v807_v57, %v823_v62  ;;  %v4400_v7 = vsel %vm4389_vm10, %v382_v4, -9e+15 }
 0x1c8   :  { %v4404_v8 = vsel %vm4389_vm10, %v831_v5, -9e+15  ;;  %v466_v12 = vsel %vm6071_vm3, %v4400_v7, -inf }
 0x1c9   :  { %v345_v15 = vpop.permute.xlu1 %344  ;;  %v857_v18 = vsel %vm6071_vm3, %v4404_v8, -inf  ;;  %473 = vmax.xlane.f32.xlu0 %v472_v11  ;;  %467 = vmax.xlane.f32.xlu1 %v466_v12 }
 0x1ca   :  { %v795_v6 = vpop.permute.xlu0 %794  ;;  %v359_v20 = vadd.f32 %v4272_v33, %v345_v15  ;;  %858 = vmax.xlane.f32.xlu2 %v857_v18 }
 0x1cb   :  { %v808_v23 = vadd.f32 %v4274_v35, %v795_v6 }
 0x1cc   :  { %v375_v24 = vmul.f32 0.2, %v359_v20  ;;  %vm367_vm0 = vcmp.gt.f32.partialorder %v359_v20, 0.0 }
 0x1cd   :  { %v824_v26 = vmul.f32 0.2, %v808_v23  ;;  %vm816_vm1 = vcmp.gt.f32.partialorder %v808_v23, 0.0 }
 0x1ce   :  { %v383_v28 = vsel %vm367_vm0, %v359_v20, %v375_v24 }
 0x1cf   :  { %v832_v32 = vsel %vm816_vm1, %v808_v23, %v824_v26  ;;  %v4420_v36 = vsel %vm4414_vm15, %v383_v28, -9e+15 }
 0x1d0   :  { %v4424_v33 = vsel %vm4414_vm15, %v832_v32, -9e+15  ;;  %v469_v37 = vsel %vm6071_vm3, %v4420_v36, -inf }
 0x1d1   :  { %v860_v42 = vsel %vm6071_vm3, %v4424_v33, -inf  ;;  %470 = vmax.xlane.f32.xlu1 %v469_v37 }
 0x1d2   :  { %861 = vmax.xlane.f32.xlu2 %v860_v42  ;;  %v799_v43 = vpop.permute.xlu1 %798 }
 0x1d3   :  { %v809_v44 = vadd.f32 %v4274_v35, %v799_v43 }
 0x1d5   :  { %v825_v47 = vmul.f32 0.2, %v809_v44  ;;  %vm817_vm2 = vcmp.gt.f32.partialorder %v809_v44, 0.0 }
 0x1d7   :  { %v833_v46 = vsel %vm817_vm2, %v809_v44, %v825_v47 }
 0x1d8   :  { %v4433_v49 = vsel %vm4384_vm9, %v833_v46, -9e+15 }
 0x1d9   :  { %v863_v53 = vsel %vm6071_vm3, %v4433_v49, -inf }
 0x1da   :  { %864 = vmax.xlane.f32.xlu1 %v863_v53 }
 0x1dd   :  { %936 = vrot.lane.b32.xlu0 %v4216_v41, %s4024_s24 }
 0x214   :  { %v844_v54 = vpop.xlane.xlu0 %843  ;;  %v453_v57 = vpop.xlane.xlu1 %452 }
 0x215   :  { %v475_v58 = vsub.f32 %v4296_v63, %v453_v57  ;;  %v866_v35 = vsub.f32 %v4290_v60, %v844_v54 }
 0x217   :  { %v483_v61 = vmul.f32 1.442695, %v475_v58  ;;  %v874_v62 = vmul.f32 1.442695, %v866_v35 }
 0x219   :  { %3704 = vpow2.f32 %v483_v61 }
 0x21a   :  { %3706 = vpow2.f32 %v874_v62 }
 0x21c   :  { %v459_v4 = vpop.xlane.xlu0 %458  ;;  %v456_v5 = vpop.xlane.xlu2 %455 }
 0x21d   :  { %v477_v11 = vsub.f32 %v4316_v17, %v459_v4  ;;  %v476_v12 = vsub.f32 %v4320_v21, %v456_v5 }
 0x21f   :  { %v487_v13 = vmul.f32 1.442695, %v477_v11  ;;  %v4443_v15 = vpop.eup %3704  ;;  %v485_v41 = vmul.f32 1.442695, %v476_v12 }
 0x220   :  { %v499_v63 = vsel %vm6071_vm3, %v4443_v15, 0.0  ;;  %v4447_v18 = vpop.eup %3706 }
 0x221   :  { %3708 = vpow2.f32 %v487_v13  ;;  %500 = vadd.xlane.f32.xlu2 %v499_v63  ;;  %v890_v26 = vsel %vm6071_vm3, %v4447_v18, 0.0 }
 0x222   :  { %3710 = vpow2.f32 %v485_v41 }
 0x224   :  { %v847_v60 = vpop.xlane.xlu2 %846 }
 0x225   :  { %v867_v6 = vsub.f32 %v4332_v39, %v847_v60  ;;  %v850_v12 = vpop.xlane.xlu1 %849  ;;  %v3698_v60 = vld [vmem:[%s6100_s6] ss:$0 sm:$0xff]  ;;  %s4029_s6 = smov 112  }
 0x227   :  { %v4450_v20 = vpop.eup %3708  ;;  %v876_v21 = vmul.f32 1.442695, %v867_v6 }
 0x228   :  { %v4452_v17 = vpop.eup %3710  ;;  %v505_v23 = vsel %vm6071_vm3, %v4450_v20, 0.0 }
 0x229   :  { %506 = vadd.xlane.f32.xlu0 %v505_v23  ;;  %v502_v24 = vsel %vm6071_vm3, %v4452_v17, 0.0  ;;  %3712 = vpow2.f32 %v876_v21  ;;  %891 = vadd.xlane.f32.xlu2 %v890_v26 }
 0x22a   :  { %503 = vadd.xlane.f32.xlu1 %v502_v24 }
 0x22c   :  { %v853_v28 = vpop.xlane.xlu0 %852  ;;  %v462_v39 = vpop.xlane.xlu2 %461 }
 0x22d   :  { %v869_v32 = vsub.f32 %v4358_v14, %v853_v28 }
 0x22f   :  { %v880_v37 = vmul.f32 1.442695, %v869_v32  ;;  %v4461_v42 = vpop.eup %3712 }
 0x230   :  { %v893_v43 = vsel %vm6071_vm3, %v4461_v42, 0.0 }
 0x231   :  { %3714 = vpow2.f32 %v880_v37 }
 0x232   :  { %894 = vadd.xlane.f32.xlu1 %v893_v43 }
 0x234   :  { %v856_v44 = vpop.xlane.xlu0 %855  ;;  %v465_v47 = vpop.xlane.xlu2 %464 }
 0x235   :  { %v479_v46 = vsub.f32 %v4377_v38, %v465_v47  ;;  %v870_v57 = vsub.f32 %v4372_v31, %v856_v44 }
 0x237   :  { %v4466_v53 = vpop.eup %3714  ;;  %v491_v54 = vmul.f32 1.442695, %v479_v46  ;;  %v882_v58 = vmul.f32 1.442695, %v870_v57 }
 0x238   :  { %v899_v14 = vsel %vm6071_vm3, %v4466_v53, 0.0 }
 0x239   :  { %900 = vadd.xlane.f32.xlu0 %v899_v14  ;;  %3716 = vpow2.f32 %v491_v54 }
 0x23a   :  { %3718 = vpow2.f32 %v882_v58 }
 0x23c   :  { %v474_v35 = vpop.xlane.xlu0 %473  ;;  %v468_v13 = vpop.xlane.xlu1 %467 }
 0x23d   :  { %v482_v62 = vsub.f32 %v4396_v3, %v474_v35  ;;  %v480_v63 = vsub.f32 %v4400_v7, %v468_v13  ;;  %v859_v23 = vpop.xlane.xlu2 %858 }
 0x23e   :  { %v871_v28 = vsub.f32 %v4404_v8, %v859_v23 }
 0x23f   :  { %v4471_v61 = vpop.eup %3716  ;;  %v497_v31 = vmul.f32 1.442695, %v482_v62  ;;  %v493_v21 = vmul.f32 1.442695, %v480_v63 }
 0x240   :  { %v511_v38 = vsel %vm6071_vm3, %v4471_v61, 0.0  ;;  %v4478_v4 = vpop.eup %3718  ;;  %v884_v37 = vmul.f32 1.442695, %v871_v28 }
 0x241   :  { %512 = vadd.xlane.f32.xlu0 %v511_v38  ;;  %938 = vrot.lane.b32.xlu2 %v4230_v52, %s4024_s24  ;;  %3720 = vpow2.f32 %v497_v31  ;;  %v902_v5 = vsel %vm6071_vm3, %v4478_v4, 0.0  ;;  %v478_v52 = vsub.f32 %v4354_v10, %v462_v39 }
 0x243   :  { %v489_v41 = vmul.f32 1.442695, %v478_v52 }
 0x244   :  { %v471_v6 = vpop.xlane.xlu1 %470 }
 0x245   :  { %3722 = vpow2.f32 %v489_v41  ;;  %v481_v26 = vsub.f32 %v4420_v36, %v471_v6  ;;  %v862_v43 = vpop.xlane.xlu2 %861  ;;  %v4532_v6 = vld [vmem:[%s6101_s0] ss:$0 sm:$0xff] }
 0x246   :  { %3724 = vpow2.f32 %v493_v21  ;;  %v872_v46 = vsub.f32 %v4424_v33, %v862_v43 }
 0x247   :  { %v4484_v11 = vpop.eup %3720 }
 0x248   :  { %v520_v3 = vsel %vm6071_vm3, %v4484_v11, 0.0  ;;  %v886_v14 = vmul.f32 1.442695, %v872_v46 }
 0x249   :  { %903 = vadd.xlane.f32.xlu0 %v902_v5 }
 0x24b   :  { %934 = vrot.lane.b32.xlu1 %v4202_v30, %s4024_s24  ;;  %v868_v30 = vsub.f32 %v4337_v48, %v850_v12  ;;  %v4495_v24 = vpop.eup %3722  ;;  %v495_v48 = vmul.f32 1.442695, %v481_v26 }
 0x24c   :  { %v508_v7 = vsel %vm6071_vm3, %v4495_v24, 0.0  ;;  %v4501_v32 = vpop.eup %3724 }
 0x24d   :  { %v878_v10 = vmul.f32 1.442695, %v868_v30  ;;  %v865_v39 = vpop.xlane.xlu1 %864  ;;  %v514_v36 = vsel %vm6071_vm3, %v4501_v32, 0.0 }
 0x24e   :  { %v873_v47 = vsub.f32 %v4433_v49, %v865_v39 }
 0x24f   :  { %3726 = vpow2.f32 %v878_v10  ;;  %v937_v52 = vpop.permute.xlu0 %936 }
 0x250   :  { %3728 = vpow2.f32 %v495_v48  ;;  %v888_v54 = vmul.f32 1.442695, %v873_v47 }
 0x251   :  { %521 = vadd.xlane.f32.xlu0 %v520_v3  ;;  %3730 = vpow2.f32 %v884_v37 }
 0x252   :  { %3732 = vpow2.f32 %v888_v54 }
 0x253   :  { %3734 = vpow2.f32 %v886_v14 }
 0x255   :  { %v4503_v44 = vpop.eup %3726 }
 0x256   :  { %v896_v8 = vsel %vm6071_vm3, %v4503_v44, 0.0  ;;  %v4511_v57 = vpop.eup %3728 }
 0x257   :  { %v4513_v58 = vpop.eup %3730  ;;  %v517_v49 = vsel %vm6071_vm3, %v4511_v57, 0.0 }
 0x258   :  { %v905_v33 = vsel %vm6071_vm3, %v4513_v58, 0.0  ;;  %v4519_v35 = vpop.eup %3732 }
 0x259   :  { %v4521_v62 = vpop.eup %3734  ;;  %v911_v38 = vsel %vm6071_vm3, %v4519_v35, 0.0 }
 0x25a   :  { %v908_v31 = vsel %vm6071_vm3, %v4521_v62, 0.0 }
 0x265   :  { %182 = vrot.lane.b32.xlu0 %v3698_v60, %s4027_s28 }
 0x26a   :  { %509 = vadd.xlane.f32.xlu2 %v508_v7 }
 0x272   :  { %515 = vadd.xlane.f32.xlu2 %v514_v36 }
 0x275   :  { %897 = vadd.xlane.f32.xlu1 %v896_v8 }
 0x27a   :  { %518 = vadd.xlane.f32.xlu2 %v517_v49 }
 0x27d   :  { %906 = vadd.xlane.f32.xlu1 %v905_v33 }
 0x282   :  { %912 = vadd.xlane.f32.xlu2 %v911_v38 }
 0x285   :  { %909 = vadd.xlane.f32.xlu1 %v908_v31 }
 0x294   :  { %v501_v5 = vpop.xlane.xlu2 %500 }
 0x295   :  { %3736 = vrcp.f32 %v501_v5 }
 0x29a   :  { %1115 = vrot.lane.b32.xlu2 %v4532_v6, %s4024_s24 }
 0x29b   :  { %v3737_v13 = vpop.eup %3736 }
 0x29c   :  { %v892_v3 = vpop.xlane.xlu2 %891  ;;  %v531_v60 = vmul.f32 %v3737_v13, %v4443_v15  ;;  %v507_v23 = vpop.xlane.xlu0 %506 }
 0x29d   :  { %v504_v12 = vpop.xlane.xlu1 %503 }
 0x29e   :  { %3738 = vrcp.f32 %v504_v12 }
 0x2a4   :  { %v3739_v41 = vpop.eup %3738  ;;  %v939_v63 = vpop.permute.xlu2 %938 }
 0x2a5   :  { %963 = vmatpush.bf16.msrb.mxu2 %v939_v63  ;;  %v532_v30 = vmul.f32 %v3739_v41, %v4452_v17  ;;  %v895_v10 = vpop.xlane.xlu1 %894 }
 0x2a6   :  { %3740 = vrcp.f32 %v895_v10 }
 0x2a7   :  { %v539_v21 = vpack.c.bf16 %v532_v30, %v531_v60  ;;  %3742 = vrcp.f32 %v892_v3 }
 0x2a8   :  { %3744 = vrcp.f32 %v507_v23 }
 0x2a9   :  { %3488 = vmatmul.msk.bf16.vlgmr.msra.gmra.mxu3 %vm6071_vm3, %v539_v21  ;;  %964 = vmatpush.bf16.msrb.mxu2 %v937_v52 }
 0x2ac   :  { %v901_v26 = vpop.xlane.xlu0 %900  ;;  %v3741_v15 = vpop.eup %3740 }
 0x2ad   :  { %v3743_v7 = vpop.eup %3742  ;;  %v923_v17 = vmul.f32 %v3741_v15, %v4461_v42 }
 0x2ae   :  { %v922_v48 = vmul.f32 %v3743_v7, %v4447_v18  ;;  %v3745_v14 = vpop.eup %3744 }
 0x2b0   :  { %v930_v37 = vpack.c.bf16 %v923_v17, %v922_v48 }
 0x2b4   :  { %v513_v28 = vpop.xlane.xlu0 %512 }
 0x2bc   :  { %v904_v43 = vpop.xlane.xlu0 %903 }
 0x2bd   :  { %v935_v39 = vpop.permute.xlu1 %934 }
 0x2be   :  { %965 = vmatpush.bf16.msrb.mxu2 %v935_v39 }
 0x2c1   :  { %3492 = vmatmul.msk.bf16.vlgmr.msrb.gmra.mxu2 %vm6071_vm3, %v930_v37 }
 0x2c4   :  { %v522_v47 = vpop.xlane.xlu0 %521 }
 0x2d7   :  { %v4540_v36 = vpop.permute.xlu0 %182 }
 0x2d8   :  { %v187_v46 = vadd.f32 %v4540_v36, %v4200_v29  ;;  %v185_v8 = vadd.f32 %v4540_v36, %v4190_v19  ;;  %v186_v42 = vadd.f32 %v4540_v36, %v4195_v22  ;;  %v188_v54 = vadd.f32 %v4540_v36, %v4209_v34 }
 0x2d9   :  { %v533_v22 = vmul.f32 %v3745_v14, %v4450_v20  ;;  %v190_v34 = vadd.f32 %v4540_v36, %v4223_v45  ;;  %v189_v12 = vadd.f32 %v4540_v36, %v4214_v40 }
 0x2da   :  { %741 = vrot.lane.b32.xlu0 %v187_v46, %s4027_s28  ;;  %737 = vrot.lane.b32.xlu1 %v185_v8, %s4027_s28 }
 0x2db   :  { %739 = vrot.lane.b32.xlu2 %v186_v42, %s4027_s28 }
 0x2dd   :  { %v510_v18 = vpop.xlane.xlu2 %509 }
 0x2de   :  { %3746 = vrcp.f32 %v510_v18 }
 0x2df   :  { %3748 = vrcp.f32 %v901_v26 }
 0x2e2   :  { %743 = vrot.lane.b32.xlu0 %v188_v54, %s4027_s28  ;;  %1126 = vrot.lane.b32.xlu1 %v185_v8, %s4028_s4 }
 0x2e3   :  { %1128 = vrot.lane.b32.xlu2 %v186_v42, %s4028_s4 }
 0x2e4   :  { %v3747_v19 = vpop.eup %3746 }
 0x2e5   :  { %v534_v29 = vmul.f32 %v3747_v19, %v4495_v24  ;;  %v516_v49 = vpop.xlane.xlu2 %515  ;;  %v3749_v20 = vpop.eup %3748 }
 0x2e6   :  { %v925_v5 = vmul.f32 %v3749_v20, %v4466_v53 }
 0x2e7   :  { %v540_v38 = vpack.c.bf16 %v534_v29, %v533_v22 }
 0x2e8   :  { %v898_v33 = vpop.xlane.xlu1 %897 }
 0x2e9   :  { %3750 = vrcp.f32 %v898_v33  ;;  %3489 = vmatmul.msk.bf16.gmra.mxu3 %vm6071_vm3, %v540_v38 }
 0x2ea   :  { %3752 = vrcp.f32 %v516_v49  ;;  %1130 = vrot.lane.b32.xlu0 %v187_v46, %s4028_s4  ;;  %1132 = vrot.lane.b32.xlu1 %v188_v54, %s4028_s4 }
 0x2eb   :  { %747 = vrot.lane.b32.xlu2 %v190_v34, %s4027_s28  ;;  %3754 = vrcp.f32 %v513_v28 }
 0x2ef   :  { %v3751_v24 = vpop.eup %3750 }
 0x2f0   :  { %v924_v31 = vmul.f32 %v3751_v24, %v4503_v44  ;;  %v3753_v3 = vpop.eup %3752  ;;  %v907_v52 = vpop.xlane.xlu1 %906 }
 0x2f1   :  { %v3755_v13 = vpop.eup %3754  ;;  %v536_v41 = vmul.f32 %v3753_v3, %v4501_v32  ;;  %3756 = vrcp.f32 %v907_v52  ;;  %v519_v44 = vpop.xlane.xlu2 %518 }
 0x2f2   :  { %v931_v45 = vpack.c.bf16 %v925_v5, %v924_v31  ;;  %745 = vrot.lane.b32.xlu1 %v189_v12, %s4027_s28  ;;  %v535_v63 = vmul.f32 %v3755_v13, %v4471_v61  ;;  %3758 = vrcp.f32 %v904_v43 }
 0x2f3   :  { %3760 = vrcp.f32 %v519_v44 }
 0x2f4   :  { %3493 = vmatmul.msk.bf16.gmra.mxu2 %vm6071_vm3, %v931_v45  ;;  %v541_v60 = vpack.c.bf16 %v536_v41, %v535_v63  ;;  %3762 = vrcp.f32 %v522_v47 }
 0x2f7   :  { %v3757_v53 = vpop.eup %3756 }
 0x2f8   :  { %v3759_v40 = vpop.eup %3758  ;;  %v927_v30 = vmul.f32 %v3757_v53, %v4513_v58  ;;  %v910_v32 = vpop.xlane.xlu1 %909 }
 0x2f9   :  { %3490 = vmatmul.msk.bf16.gmra.mxu3 %vm6071_vm3, %v541_v60  ;;  %v926_v21 = vmul.f32 %v3759_v40, %v4478_v4  ;;  %v3761_v23 = vpop.eup %3760  ;;  %v913_v61 = vpop.xlane.xlu2 %912  ;;  %3764 = vrcp.f32 %v910_v32 }
 0x2fa   :  { %1134 = vrot.lane.b32.xlu1 %v189_v12, %s4028_s4  ;;  %v3763_v26 = vpop.eup %3762  ;;  %v537_v15 = vmul.f32 %v3761_v23, %v4511_v57  ;;  %3766 = vrcp.f32 %v913_v61 }
 0x2fb   :  { %v932_v10 = vpack.c.bf16 %v927_v30, %v926_v21  ;;  %v538_v7 = vmul.f32 %v3763_v26, %v4484_v11 }
 0x2fd   :  { %v542_v17 = vpack.c.bf16 %v538_v7, %v537_v15 }
 0x2ff   :  { %v3765_v58 = vpop.eup %3764 }
 0x300   :  { %v3767_v4 = vpop.eup %3766  ;;  %v928_v28 = vmul.f32 %v3765_v58, %v4521_v62 }
 0x301   :  { %v929_v48 = vmul.f32 %v3767_v4, %v4519_v35  ;;  %v4639_v60 = vpop.permute.xlu2 %1115 }
 0x302   :  { %1136 = vrot.lane.b32.xlu1 %v190_v34, %s4028_s4 }
 0x303   :  { %v933_v39 = vpack.c.bf16 %v929_v48, %v928_v28 }
 0x304   :  { %3494 = vmatmul.msk.bf16.gmra.mxu2 %vm6071_vm3, %v932_v10 }
 0x309   :  { %3491 = vmatmul.msk.bf16.gmra.mxu3 %vm6071_vm3, %v542_v17 }
 0x314   :  { %3495 = vmatmul.msk.bf16.gmra.mxu2 %vm6071_vm3, %v933_v39 }
 0x32c   :  { %v4584_v37 = vpop.f32.mrf.mxu3 }
 0x32d   :  { %v588_v57 = vmul.f32 %v4584_v37, %v4584_v37 }
 0x32f   :  { %v597_v11 = vsel %vm596_vm7, %v588_v57, 0.0 }
 0x330   :  { %598 = vadd.xlane.f32.xlu1 %v597_v11 }
 0x334   :  { %v4589_v43 = vpop.f32.mrf.mxu3 }
 0x335   :  { %v589_v47 = vmul.f32 %v4589_v43, %v4589_v43  ;;  %v4657_v15 = vpop.permute.xlu2 %739 }
 0x337   :  { %v600_v62 = vsel %vm596_vm7, %v589_v47, 0.0 }
 0x338   :  { %601 = vadd.xlane.f32.xlu2 %v600_v62 }
 0x33d   :  { %v4673_v47 = vpop.permute.xlu2 %1128 }
 0x344   :  { %v4594_v35 = vpop.f32.mrf.mxu2 }
 0x345   :  { %v987_v46 = vmul.f32 %v4594_v35, %v4594_v35 }
 0x347   :  { %v995_v8 = vsel %vm596_vm7, %v987_v46, 0.0 }
 0x348   :  { %996 = vadd.xlane.f32.xlu1 %v995_v8 }
 0x34c   :  { %v4599_v42 = vpop.f32.mrf.mxu2  ;;  %v4604_v14 = vpop.permute.xlu1 %737 }
 0x34d   :  { %v988_v18 = vmul.f32 %v4599_v42, %v4599_v42 }
 0x34f   :  { %v998_v54 = vsel %vm596_vm7, %v988_v18, 0.0 }
 0x350   :  { %999 = vadd.xlane.f32.xlu2 %v998_v54  ;;  %v192_v54 = vadd.f32 %v4540_v36, %v4237_v56 }
 0x354   :  { %v4611_v49 = vpop.permute.xlu1 %1126 }
 0x35c   :  { %v4627_v12 = vpop.permute.xlu1 %1132 }
 0x364   :  { %v4645_v30 = vpop.permute.xlu1 %745 }
 0x36c   :  { %v4606_v19 = vpop.f32.mrf.mxu3  ;;  %v4661_v58 = vpop.permute.xlu1 %1134 }
 0x36d   :  { %v590_v22 = vmul.f32 %v4606_v19, %v4606_v19 }
 0x36f   :  { %v603_v29 = vsel %vm596_vm7, %v590_v22, 0.0  ;;  %v4685_v22 = vpop.permute.xlu2 %747 }
 0x370   :  { %604 = vadd.xlane.f32.xlu1 %v603_v29 }
 0x374   :  { %v4613_v33 = vpop.f32.mrf.mxu3  ;;  %v4675_v62 = vpop.permute.xlu1 %1136 }
 0x375   :  { %v591_v38 = vmul.f32 %v4613_v33, %v4613_v33 }
 0x377   :  { %v4617_v34 = vpop.f32.mrf.mxu2  ;;  %v606_v24 = vsel %vm596_vm7, %v591_v38, 0.0 }
 0x378   :  { %v989_v20 = vmul.f32 %v4617_v34, %v4617_v34  ;;  %607 = vadd.xlane.f32.xlu0 %v606_v24  ;;  %v191_v24 = vadd.f32 %v4540_v36, %v4228_v51 }
 0x37a   :  { %v1001_v31 = vsel %vm596_vm7, %v989_v20, 0.0 }
 0x37b   :  { %1002 = vadd.xlane.f32.xlu2 %v1001_v31 }
 0x37c   :  { %v4623_v5 = vpop.f32.mrf.mxu3 }
 0x37d   :  { %v592_v3 = vmul.f32 %v4623_v5, %v4623_v5 }
 0x37f   :  { %v4629_v52 = vpop.f32.mrf.mxu2  ;;  %v609_v13 = vsel %vm596_vm7, %v592_v3, 0.0 }
 0x380   :  { %v990_v45 = vmul.f32 %v4629_v52, %v4629_v52  ;;  %610 = vadd.xlane.f32.xlu0 %v609_v13 }
 0x382   :  { %v1004_v41 = vsel %vm596_vm7, %v990_v45, 0.0 }
 0x383   :  { %1005 = vadd.xlane.f32.xlu1 %v1004_v41 }
 0x384   :  { %v4635_v63 = vpop.f32.mrf.mxu3 }
 0x385   :  { %v593_v44 = vmul.f32 %v4635_v63, %v4635_v63 }
 0x387   :  { %v4641_v53 = vpop.f32.mrf.mxu2  ;;  %v612_v21 = vsel %vm596_vm7, %v593_v44, 0.0 }
 0x388   :  { %v991_v40 = vmul.f32 %v4641_v53, %v4641_v53 }
 0x38a   :  { %v1007_v23 = vsel %vm596_vm7, %v991_v40, 0.0 }
 0x38b   :  { %613 = vadd.xlane.f32.xlu1 %v612_v21  ;;  %1008 = vadd.xlane.f32.xlu2 %v1007_v23 }
 0x38c   :  { %v4649_v32 = vpop.f32.mrf.mxu3 }
 0x38d   :  { %v594_v10 = vmul.f32 %v4649_v32, %v4649_v32 }
 0x38f   :  { %v4653_v26 = vpop.f32.mrf.mxu2  ;;  %v615_v7 = vsel %vm596_vm7, %v594_v10, 0.0 }
 0x390   :  { %v992_v61 = vmul.f32 %v4653_v26, %v4653_v26 }
 0x392   :  { %v1010_v17 = vsel %vm596_vm7, %v992_v61, 0.0 }
 0x393   :  { %616 = vadd.xlane.f32.xlu2 %v615_v7  ;;  %1011 = vadd.xlane.f32.xlu0 %v1010_v17 }
 0x394   :  { %v4663_v4 = vpop.f32.mrf.mxu3 }
 0x395   :  { %v595_v28 = vmul.f32 %v4663_v4, %v4663_v4 }
 0x397   :  { %v4667_v48 = vpop.f32.mrf.mxu2  ;;  %v618_v57 = vsel %vm596_vm7, %v595_v28, 0.0 }
 0x398   :  { %v993_v39 = vmul.f32 %v4667_v48, %v4667_v48 }
 0x39a   :  { %v1013_v11 = vsel %vm596_vm7, %v993_v39, 0.0 }
 0x39b   :  { %619 = vadd.xlane.f32.xlu0 %v618_v57  ;;  %1014 = vadd.xlane.f32.xlu2 %v1013_v11 }
 0x39f   :  { %v4677_v46 = vpop.f32.mrf.mxu2 }
 0x3a0   :  { %v994_v8 = vmul.f32 %v4677_v46, %v4677_v46 }
 0x3a2   :  { %v1016_v18 = vsel %vm596_vm7, %v994_v8, 0.0 }
 0x3a3   :  { %1017 = vadd.xlane.f32.xlu2 %v1016_v18  ;;  %v599_v29 = vpop.xlane.xlu1 %598  ;;  %v3628_v18 = vld [vmem:[%s6051_s9 + $0x8] sm:$0xff] }
 0x3a4   :  { %751 = vrot.lane.b32.xlu1 %v192_v54, %s4027_s28  ;;  %v621_v38 = vmax.f32 %v599_v29, 1e-24  ;;  %1260 = vmatpush.bf16.msrb.mxu0 %v3628_v18 }
 0x3a6   :  { %3768 = vrsqrt.f32 %v621_v38  ;;  %vm635_vm11 = vweird.f32 %v621_v38 }
 0x3ab   :  { %v602_v20 = vpop.xlane.xlu2 %601 }
 0x3ac   :  { %1140 = vrot.lane.b32.xlu1 %v192_v54, %s4028_s4  ;;  %v622_v31 = vmax.f32 %v602_v20, 1e-24  ;;  %v3769_v3 = vpop.eup %3768 }
 0x3ad   :  { %v630_v56 = vmul.f32 %v3769_v3, %v621_v38  ;;  %vm636_vm8 = vweird.f32 %v3769_v3 }
 0x3ae   :  { %3770 = vrsqrt.f32 %v622_v31  ;;  %vm637_vm13 = vmor %vm635_vm11, %vm636_vm8  ;;  %vm645_vm8 = vweird.f32 %v622_v31 }
 0x3af   :  { %749 = vrot.lane.b32.xlu0 %v191_v24, %s4027_s28  ;;  %v631_v45 = vmul.f32 %v3769_v3, %v630_v56 }
 0x3b1   :  { %v632_v40 = vmul.f32 0.5, %v631_v45 }
 0x3b3   :  { %v633_v23 = vsub.f32 1.5, %v632_v40  ;;  %v4699_v40 = vpop.permute.xlu0 %741 }
 0x3b4   :  { %v3771_v13 = vpop.eup %3770 }
 0x3b5   :  { %v640_v21 = vmul.f32 %v3771_v13, %v622_v31  ;;  %v634_v36 = vmul.f32 %v3769_v3, %v633_v23  ;;  %vm646_vm1 = vweird.f32 %v3771_v13 }
 0x3b6   :  { %vm647_vm11 = vmor %vm645_vm8, %vm646_vm1 }
 0x3b7   :  { %v641_v10 = vmul.f32 %v3771_v13, %v640_v21  ;;  %v638_v57 = vsel %vm637_vm13, %v3769_v3, %v634_v36  ;;  %v3627_v3 = vld [vmem:[%s6051_s9] sm:$0xff] }
 0x3b8   :  { %v709_v20 = vmul.f32 %v638_v57, %v4584_v37  ;;  %1261 = vmatpush.bf16.msrb.mxu0 %v3627_v3 }
 0x3b9   :  { %v642_v17 = vmul.f32 0.5, %v641_v10 }
 0x3ba   :  { %v721_v21 = vadd.f32 %v4532_v6, %v709_v20 }
 0x3bb   :  { %1138 = vrot.lane.b32.xlu2 %v191_v24, %s4028_s4  ;;  %v997_v41 = vpop.xlane.xlu1 %996  ;;  %v643_v11 = vsub.f32 1.5, %v642_v17 }
 0x3bc   :  { %v1019_v44 = vmax.f32 %v997_v41, 1e-24  ;;  %v761_v36 = vadd.f32 %v4604_v14, %v721_v21 }
 0x3bd   :  { %v644_v24 = vmul.f32 %v3771_v13, %v643_v11  ;;  %v4709_v11 = vpop.permute.xlu0 %743 }
 0x3be   :  { %3772 = vrsqrt.f32 %v1019_v44  ;;  %vm1033_vm2 = vweird.f32 %v1019_v44 }
 0x3bf   :  { %v648_v23 = vsel %vm647_vm11, %v3771_v13, %v644_v24 }
 0x3c0   :  { %v710_v31 = vmul.f32 %v648_v23, %v4589_v43 }
 0x3c3   :  { %v1000_v61 = vpop.xlane.xlu2 %999 }
 0x3c4   :  { %v3773_v7 = vpop.eup %3772  ;;  %v1020_v51 = vmax.f32 %v1000_v61, 1e-24 }
 0x3c5   :  { %v1028_v28 = vmul.f32 %v3773_v7, %v1019_v44  ;;  %vm1034_vm0 = vweird.f32 %v3773_v7 }
 0x3c6   :  { %3774 = vrsqrt.f32 %v1020_v51  ;;  %vm1035_vm3 = vmor %vm1033_vm2, %vm1034_vm0 }
 0x3c7   :  { %v1029_v39 = vmul.f32 %v3773_v7, %v1028_v28 }
 0x3c9   :  { %v1030_v8 = vmul.f32 0.5, %v1029_v39 }
 0x3cb   :  { %v1031_v54 = vsub.f32 1.5, %v1030_v8 }
 0x3cc   :  { %v3775_v29 = vpop.eup %3774 }
 0x3cd   :  { %v1032_v56 = vmul.f32 %v3773_v7, %v1031_v54  ;;  %v1038_v38 = vmul.f32 %v3775_v29, %v1020_v51  ;;  %vm1044_vm13 = vweird.f32 %v3775_v29 }
 0x3cf   :  { %v1036_v45 = vsel %vm1035_vm3, %v3773_v7, %v1032_v56  ;;  %v1039_v41 = vmul.f32 %v3775_v29, %v1038_v38  ;;  %vm1043_vm3 = vweird.f32 %v1020_v51 }
 0x3d0   :  { %v1107_v37 = vmul.f32 %v1036_v45, %v4594_v35  ;;  %vm1045_vm0 = vmor %vm1043_vm3, %vm1044_vm13  ;;  %v722_v35 = vadd.f32 %v4532_v6, %v710_v31 }
 0x3d1   :  { %v1040_v10 = vmul.f32 0.5, %v1039_v41 }
 0x3d2   :  { %v1118_v44 = vadd.f32 %v4639_v60, %v1107_v37  ;;  %v762_v14 = vadd.f32 %v4657_v15, %v722_v35 }
 0x3d3   :  { %v1041_v61 = vsub.f32 1.5, %v1040_v10 }
 0x3d4   :  { %v1150_v7 = vadd.f32 %v4611_v49, %v1118_v44 }
 0x3d5   :  { %v1042_v17 = vmul.f32 %v3775_v29, %v1041_v61 }
 0x3d6   :  { %v1158_v28 = vadd.f32 %v1150_v7, %v761_v36 }
 0x3d7   :  { %v1046_v39 = vsel %vm1045_vm0, %v3775_v29, %v1042_v17  ;;  %v4714_v29 = vpop.permute.xlu0 %1130 }
 0x3d8   :  { %v1108_v13 = vmul.f32 %v1046_v39, %v4599_v42  ;;  %v1166_v57 = vmul.f32 0.5, %v1158_v28 }
 0x3da   :  { %v1119_v8 = vadd.f32 %v4639_v60, %v1108_v13  ;;  %v1182_v18 = vmin.f32 %v1166_v57, 0.0  ;;  %vm1174_vm1 = vcmp.gt.f32.partialorder %v1166_v57, 0.0 }
 0x3dc   :  { %v1151_v43 = vadd.f32 %v4673_v47, %v1119_v8  ;;  %v1190_v54 = vmul.f32 1.442695, %v1182_v18 }
 0x3de   :  { %v1159_v49 = vadd.f32 %v1151_v43, %v762_v14  ;;  %3776 = vpow2.f32 %v1190_v54 }
 0x3e0   :  { %v1167_v51 = vmul.f32 0.5, %v1159_v49 }
 0x3e2   :  { %v1183_v20 = vmin.f32 %v1167_v51, 0.0  ;;  %vm1175_vm2 = vcmp.gt.f32.partialorder %v1167_v51, 0.0 }
 0x3e3   :  { %v605_v24 = vpop.xlane.xlu1 %604 }
 0x3e4   :  { %v1192_v56 = vmul.f32 1.442695, %v1183_v20  ;;  %v623_v42 = vmax.f32 %v605_v24, 1e-24  ;;  %v3777_v38 = vpop.eup %3776 }
 0x3e5   :  { %v3496_v3 = vadd.f32 -1.0, %v3777_v38 }
 0x3e6   :  { %3778 = vpow2.f32 %v1192_v56  ;;  %vm655_vm11 = vweird.f32 %v623_v42 }
 0x3e7   :  { %3780 = vrsqrt.f32 %v623_v42  ;;  %v4716_v44 = vsel %vm1174_vm1, %v1166_v57, %v3496_v3 }
 0x3eb   :  { %v608_v41 = vpop.xlane.xlu0 %607 }
 0x3ec   :  { %v3779_v45 = vpop.eup %3778  ;;  %v624_v15 = vmax.f32 %v608_v41, 1e-24 }
 0x3ed   :  { %v3781_v21 = vpop.eup %3780  ;;  %v3497_v37 = vadd.f32 -1.0, %v3779_v45 }
 0x3ee   :  { %v650_v47 = vmul.f32 %v3781_v21, %v623_v42  ;;  %v1003_v23 = vpop.xlane.xlu2 %1002  ;;  %3782 = vrsqrt.f32 %v624_v15  ;;  %vm656_vm8 = vweird.f32 %v3781_v21 }
 0x3ef   :  { %v1021_v10 = vmax.f32 %v1003_v23, 1e-24  ;;  %v4718_v61 = vsel %vm1175_vm2, %v1167_v51, %v3497_v37  ;;  %vm4728_vm13 = vmor %vm655_vm11, %vm656_vm8  ;;  %vm665_vm2 = vweird.f32 %v624_v15 }
 0x3f0   :  { %v651_v36 = vmul.f32 %v3781_v21, %v650_v47  ;;  %v1222_v31 = vpack.c.bf16 %v4718_v61, %v4716_v44 }
 0x3f1   :  { %3784 = vrsqrt.f32 %v1021_v10  ;;  %vm1053_vm1 = vweird.f32 %v1021_v10 }
 0x3f2   :  { %v652_v7 = vmul.f32 0.5, %v651_v36  ;;  %3512 = vmatmul.msk.bf16.vlgmr.msrb.gmra.mxu0 %vm596_vm7, %v1222_v31 }
 0x3f3   :  { %v611_v17 = vpop.xlane.xlu0 %610 }
 0x3f4   :  { %v3783_v28 = vpop.eup %3782  ;;  %v4723_v39 = vmax.f32 %v611_v17, 1e-24  ;;  %v653_v35 = vsub.f32 1.5, %v652_v7 }
 0x3f5   :  { %v660_v13 = vmul.f32 %v3783_v28, %v624_v15  ;;  %vm666_vm0 = vweird.f32 %v3783_v28 }
 0x3f6   :  { %v1006_v8 = vpop.xlane.xlu1 %1005  ;;  %3786 = vrsqrt.f32 %v4723_v39  ;;  %v654_v49 = vmul.f32 %v3781_v21, %v653_v35  ;;  %vm667_vm11 = vmor %vm665_vm2, %vm666_vm0  ;;  %vm675_vm2 = vweird.f32 %v4723_v39 }
 0x3f7   :  { %v3785_v18 = vpop.eup %3784  ;;  %v1022_v57 = vmax.f32 %v1006_v8, 1e-24  ;;  %v661_v14 = vmul.f32 %v3783_v28, %v660_v13 }
 0x3f8   :  { %v1048_v43 = vmul.f32 %v3785_v18, %v1021_v10  ;;  %v658_v3 = vsel %vm4728_vm13, %v3781_v21, %v654_v49  ;;  %vm1054_vm3 = vweird.f32 %v3785_v18 }
 0x3f9   :  { %3788 = vrsqrt.f32 %v1022_v57  ;;  %v662_v54 = vmul.f32 0.5, %v661_v14  ;;  %v711_v21 = vmul.f32 %v658_v3, %v4606_v19  ;;  %vm1055_vm8 = vmor %vm1053_vm1, %vm1054_vm3  ;;  %vm1063_vm3 = vweird.f32 %v1022_v57 }
 0x3fa   :  { %v1049_v51 = vmul.f32 %v3785_v18, %v1048_v43 }
 0x3fb   :  { %v663_v20 = vsub.f32 1.5, %v662_v54  ;;  %v723_v54 = vadd.f32 %v4532_v6, %v711_v21 }
 0x3fc   :  { %v1050_v24 = vmul.f32 0.5, %v1049_v51  ;;  %v4726_v56 = vpop.eup %3786 }
 0x3fd   :  { %v670_v41 = vmul.f32 %v4726_v56, %v4723_v39  ;;  %v664_v42 = vmul.f32 %v3783_v28, %v663_v20  ;;  %vm676_vm1 = vweird.f32 %v4726_v56 }
 0x3fe   :  { %v1051_v45 = vsub.f32 1.5, %v1050_v24  ;;  %v1009_v37 = vpop.xlane.xlu2 %1008  ;;  %v614_v47 = vpop.xlane.xlu1 %613 }
 0x3ff   :  { %v3789_v23 = vpop.eup %3788  ;;  %v4736_v36 = vmax.f32 %v1009_v37, 1e-24  ;;  %v4738_v31 = vmax.f32 %v614_v47, 1e-24  ;;  %v671_v17 = vmul.f32 %v4726_v56, %v670_v41  ;;  %v668_v14 = vsel %vm667_vm11, %v3783_v28, %v664_v42 }
 0x400   :  { %v1052_v7 = vmul.f32 %v3785_v18, %v1051_v45  ;;  %v1058_v35 = vmul.f32 %v3789_v23, %v1022_v57  ;;  %v712_v19 = vmul.f32 %v668_v14, %v4613_v33  ;;  %vm1064_vm13 = vweird.f32 %v3789_v23 }
 0x401   :  { %3790 = vrsqrt.f32 %v4736_v36  ;;  %v672_v49 = vmul.f32 0.5, %v671_v17  ;;  %vm1065_vm0 = vmor %vm1063_vm3, %vm1064_vm13  ;;  %v763_v47 = vadd.f32 %v4699_v40, %v723_v54  ;;  %vm1073_vm11 = vweird.f32 %v4736_v36 }
 0x402   :  { %v1056_v13 = vsel %vm1055_vm8, %v3785_v18, %v1052_v7  ;;  %v1059_v8 = vmul.f32 %v3789_v23, %v1058_v35  ;;  %3792 = vrsqrt.f32 %v4738_v31  ;;  %v724_v42 = vadd.f32 %v4532_v6, %v712_v19  ;;  %vm4769_vm8 = vmor %vm675_vm2, %vm676_vm1 }
 0x403   :  { %v1109_v43 = vmul.f32 %v1056_v13, %v4617_v34  ;;  %v673_v18 = vsub.f32 1.5, %v672_v49  ;;  %vm685_vm1 = vweird.f32 %v4738_v31 }
 0x404   :  { %v1060_v10 = vmul.f32 0.5, %v1059_v8 }
 0x405   :  { %v1120_v51 = vadd.f32 %v4639_v60, %v1109_v43  ;;  %v674_v57 = vmul.f32 %v4726_v56, %v673_v18 }
 0x406   :  { %v1061_v15 = vsub.f32 1.5, %v1060_v10  ;;  %v617_v20 = vpop.xlane.xlu2 %616  ;;  %v1012_v24 = vpop.xlane.xlu0 %1011 }
 0x407   :  { %v3791_v38 = vpop.eup %3790  ;;  %v4749_v3 = vmax.f32 %v617_v20, 1e-24  ;;  %v4751_v45 = vmax.f32 %v1012_v24, 1e-24  ;;  %v1152_v37 = vadd.f32 %v4714_v29, %v1120_v51  ;;  %v678_v39 = vsel %vm4769_vm8, %v4726_v56, %v674_v57 }
 0x408   :  { %v4753_v28 = vpop.eup %3792  ;;  %v1062_v34 = vmul.f32 %v3789_v23, %v1061_v15  ;;  %v1068_v41 = vmul.f32 %v3791_v38, %v4736_v36  ;;  %vm1074_vm13 = vweird.f32 %v3791_v38 }
 0x409   :  { %v680_v33 = vmul.f32 %v4753_v28, %v4738_v31  ;;  %3794 = vrsqrt.f32 %v4749_v3  ;;  %v1160_v13 = vadd.f32 %v1152_v37, %v763_v47  ;;  %vm1075_vm3 = vmor %vm1073_vm11, %vm1074_vm13  ;;  %vm1083_vm8 = vweird.f32 %v4751_v45 }
 0x40a   :  { %v1066_v7 = vsel %vm1065_vm0, %v3789_v23, %v1062_v34  ;;  %v1069_v17 = vmul.f32 %v3791_v38, %v1068_v41  ;;  %3796 = vrsqrt.f32 %v4751_v45  ;;  %vm686_vm0 = vweird.f32 %v4753_v28 }
 0x40b   :  { %v1110_v29 = vmul.f32 %v1066_v7, %v4629_v52  ;;  %v681_v35 = vmul.f32 %v4753_v28, %v680_v33  ;;  %v764_v52 = vadd.f32 %v4709_v11, %v724_v42  ;;  %v4787_v34 = vmul.f32 0.5, %v1160_v13  ;;  %vm4800_vm2 = vmor %vm685_vm1, %vm686_vm0 }
 0x40c   :  { %v1070_v21 = vmul.f32 0.5, %v1069_v17  ;;  %v713_v41 = vmul.f32 %v678_v39, %v4623_v5 }
 0x40d   :  { %v1121_v40 = vadd.f32 %v4639_v60, %v1110_v29  ;;  %v682_v8 = vmul.f32 0.5, %v681_v35  ;;  %v1184_v17 = vmin.f32 %v4787_v34, 0.0 }
 0x40e   :  { %v1071_v14 = vsub.f32 1.5, %v1070_v21  ;;  %v620_v43 = vpop.xlane.xlu0 %619  ;;  %v1015_v49 = vpop.xlane.xlu2 %1014 }
 0x40f   :  { %v4775_v10 = vpop.eup %3794  ;;  %v683_v54 = vsub.f32 1.5, %v682_v8  ;;  %v4780_v51 = vmax.f32 %v620_v43, 1e-24  ;;  %v4782_v19 = vmax.f32 %v1015_v49, 1e-24  ;;  %v1153_v18 = vadd.f32 %v4627_v12, %v1121_v40 }
 0x410   :  { %v3797_v15 = vpop.eup %3796  ;;  %v1072_v20 = vmul.f32 %v3791_v38, %v1071_v14  ;;  %v690_v24 = vmul.f32 %v4775_v10, %v4749_v3  ;;  %v1194_v8 = vmul.f32 1.442695, %v1184_v17  ;;  %vm696_vm13 = vweird.f32 %v4775_v10 }
 0x411   :  { %v684_v11 = vmul.f32 %v4753_v28, %v683_v54  ;;  %v1078_v56 = vmul.f32 %v3797_v15, %v4751_v45  ;;  %3798 = vrsqrt.f32 %v4780_v51  ;;  %v1161_v7 = vadd.f32 %v1153_v18, %v764_v52 }
 0x412   :  { %v1076_v37 = vsel %vm1075_vm3, %v3791_v38, %v1072_v20  ;;  %v691_v33 = vmul.f32 %v4775_v10, %v690_v24  ;;  %3800 = vrsqrt.f32 %v4782_v19  ;;  %vm1084_vm11 = vweird.f32 %v3797_v15 }
 0x413   :  { %v1111_v12 = vmul.f32 %v1076_v37, %v4641_v53  ;;  %v1079_v36 = vmul.f32 %v3797_v15, %v1078_v56  ;;  %v688_v38 = vsel %vm4800_vm2, %v4753_v28, %v684_v11  ;;  %v725_v53 = vadd.f32 %v4532_v6, %v713_v41  ;;  %vm1085_vm0 = vmor %vm1083_vm8, %vm1084_vm11 }
 0x414   :  { %v692_v42 = vmul.f32 0.5, %v691_v33  ;;  %v4811_v35 = vmul.f32 0.5, %v1161_v7  ;;  %v714_v14 = vmul.f32 %v688_v38, %v4635_v63  ;;  %vm695_vm3 = vweird.f32 %v4749_v3 }
 0x415   :  { %v1122_v5 = vadd.f32 %v4639_v60, %v1111_v12  ;;  %v1080_v57 = vmul.f32 0.5, %v1079_v36  ;;  %vm4830_vm1 = vmor %vm695_vm3, %vm696_vm13  ;;  %v765_v11 = vadd.f32 %v4645_v30, %v725_v53  ;;  %vm1093_vm11 = vweird.f32 %v4782_v19 }
 0x416   :  { %v693_v29 = vsub.f32 1.5, %v692_v42  ;;  %v1018_v31 = vpop.xlane.xlu2 %1017  ;;  %v1185_v54 = vmin.f32 %v4811_v35, 0.0  ;;  %v726_v41 = vadd.f32 %v4532_v6, %v714_v14  ;;  %vm705_vm13 = vweird.f32 %v4780_v51  ;;  %v752_v14 = vpop.permute.xlu1 %751 }
 0x417   :  { %v4813_v21 = vpop.eup %3798  ;;  %v1081_v13 = vsub.f32 1.5, %v1080_v57  ;;  %v4815_v40 = vmax.f32 %v1018_v31, 1e-24  ;;  %v1154_v39 = vadd.f32 %v4661_v58, %v1122_v5 }
 0x418   :  { %v3801_v23 = vpop.eup %3800  ;;  %v700_v28 = vmul.f32 %v4813_v21, %v4780_v51  ;;  %v694_v43 = vmul.f32 %v4775_v10, %v693_v29  ;;  %v1196_v45 = vmul.f32 1.442695, %v1185_v54  ;;  %vm706_vm8 = vweird.f32 %v4813_v21 }
 0x419   :  { %v1082_v49 = vmul.f32 %v3797_v15, %v1081_v13  ;;  %v1088_v52 = vmul.f32 %v3801_v23, %v4782_v19  ;;  %3802 = vrsqrt.f32 %v4815_v40  ;;  %v1162_v33 = vadd.f32 %v1154_v39, %v765_v11 }
 0x41a   :  { %v701_v63 = vmul.f32 %v4813_v21, %v700_v28  ;;  %3804 = vpow2.f32 %v1194_v8  ;;  %v698_v3 = vsel %vm4830_vm1, %v4775_v10, %v694_v43  ;;  %vm1094_vm2 = vweird.f32 %v3801_v23  ;;  %vm4853_vm1 = vmor %vm705_vm13, %vm706_vm8 }
 0x41b   :  { %v1086_v24 = vsel %vm1085_vm0, %v3797_v15, %v1082_v49  ;;  %v1089_v18 = vmul.f32 %v3801_v23, %v1088_v52  ;;  %3806 = vpow2.f32 %v1196_v45  ;;  %v715_v30 = vmul.f32 %v698_v3, %v4649_v32  ;;  %vm1095_vm3 = vmor %vm1093_vm11, %vm1094_vm2 }
 0x41c   :  { %v1112_v58 = vmul.f32 %v1086_v24, %v4653_v26  ;;  %v702_v56 = vmul.f32 0.5, %v701_v63  ;;  %v4842_v26 = vmul.f32 0.5, %v1162_v33  ;;  %v766_v38 = vadd.f32 %v4685_v22, %v726_v41 }
 0x41d   :  { %v1090_v37 = vmul.f32 0.5, %v1089_v18  ;;  %vm1176_vm0 = vcmp.gt.f32.partialorder %v4787_v34, 0.0  ;;  %vm1103_vm2 = vweird.f32 %v4815_v40  ;;  %vm1177_vm8 = vcmp.gt.f32.partialorder %v4811_v35, 0.0 }
 0x41e   :  { %v1123_v12 = vadd.f32 %v4639_v60, %v1112_v58  ;;  %v703_v36 = vsub.f32 1.5, %v702_v56  ;;  %v1186_v57 = vmin.f32 %v4842_v26, 0.0  ;;  %v1139_v20 = vpop.permute.xlu2 %1138  ;;  %v1141_v33 = vpop.permute.xlu1 %1140 }
 0x41f   :  { %v3803_v15 = vpop.eup %3802  ;;  %v1091_v47 = vsub.f32 1.5, %v1090_v37 }
 0x420   :  { %v704_v42 = vmul.f32 %v4813_v21, %v703_v36  ;;  %v1098_v10 = vmul.f32 %v3803_v15, %v4815_v40  ;;  %v1155_v7 = vadd.f32 %v4675_v62, %v1123_v12  ;;  %v3805_v17 = vpop.eup %3804  ;;  %v727_v62 = vadd.f32 %v4532_v6, %v715_v30 }
 0x421   :  { %v1092_v5 = vmul.f32 %v3801_v23, %v1091_v47  ;;  %v750_v31 = vpop.permute.xlu0 %749  ;;  %v3498_v19 = vadd.f32 -1.0, %v3805_v17  ;;  %v3807_v8 = vpop.eup %3806  ;;  %v1198_v43 = vmul.f32 1.442695, %v1186_v57  ;;  %vm1104_vm11 = vweird.f32 %v3803_v15 }
 0x422   :  { %v1099_v32 = vmul.f32 %v3803_v15, %v1098_v10  ;;  %v1163_v13 = vadd.f32 %v1155_v7, %v766_v38  ;;  %v708_v51 = vsel %vm4853_vm1, %v4813_v21, %v704_v42  ;;  %v767_v63 = vadd.f32 %v750_v31, %v727_v62  ;;  %vm1105_vm13 = vmor %vm1103_vm2, %vm1104_vm11  ;;  %v3632_v31 = vld [vmem:[%s6052_s10 + $0x18] sm:$0xff] }
 0x423   :  { %v1096_v29 = vsel %vm1095_vm3, %v3801_v23, %v1092_v5  ;;  %v3499_v23 = vadd.f32 -1.0, %v3807_v8  ;;  %v716_v54 = vmul.f32 %v708_v51, %v4663_v4  ;;  %v4869_v21 = vsel %vm1176_vm0, %v4787_v34, %v3498_v19  ;;  %1383 = vmatpush.bf16.msrb.mxu1 %v3632_v31  ;;  %v3631_v19 = vld [vmem:[%s6052_s10 + $0x10] sm:$0xff]  ;;  %v3629_v8 = vld [vmem:[%s6052_s10] sm:$0xff] }
 0x424   :  { %v1100_v22 = vmul.f32 0.5, %v1099_v32  ;;  %v1113_v28 = vmul.f32 %v1096_v29, %v4667_v48  ;;  %v1171_v49 = vmul.f32 0.5, %v1163_v13  ;;  %3808 = vpow2.f32 %v1198_v43  ;;  %v3630_v13 = vld [vmem:[%s6052_s10 + $0x8] sm:$0xff] }
 0x425   :  { %v4872_v48 = vsel %vm1177_vm8, %v4811_v35, %v3499_v23  ;;  %v728_v34 = vadd.f32 %v4532_v6, %v716_v54  ;;  %vm1178_vm0 = vcmp.gt.f32.partialorder %v4842_v26, 0.0 }
 0x426   :  { %v1101_v52 = vsub.f32 1.5, %v1100_v22  ;;  %v1124_v39 = vadd.f32 %v4639_v60, %v1113_v28  ;;  %v1187_v24 = vmin.f32 %v1171_v49, 0.0  ;;  %v1223_v58 = vpack.c.bf16 %v4872_v48, %v4869_v21 }
 0x427   :  { %v768_v12 = vadd.f32 %v752_v14, %v728_v34  ;;  %vm1179_vm3 = vcmp.gt.f32.partialorder %v1171_v49, 0.0  ;;  %1384 = vmatpush.bf16.msrb.mxu1 %v3631_v19 }
 0x428   :  { %v1102_v18 = vmul.f32 %v3803_v15, %v1101_v52  ;;  %v1156_v11 = vadd.f32 %v1139_v20, %v1124_v39  ;;  %v1200_v4 = vmul.f32 1.442695, %v1187_v24  ;;  %3513 = vmatmul.msk.bf16.gmra.mxu0 %vm596_vm7, %v1223_v58 }
 0x42a   :  { %v1106_v56 = vsel %vm1105_vm13, %v3803_v15, %v1102_v18  ;;  %v1164_v3 = vadd.f32 %v1156_v11, %v767_v63  ;;  %3810 = vpow2.f32 %v1200_v4  ;;  %v3809_v37 = vpop.eup %3808  ;;  %vm6112_vm13 = vcmask 523264  }
 0x42b   :  { %v1114_v35 = vmul.f32 %v1106_v56, %v4677_v46  ;;  %v3500_v42 = vadd.f32 -1.0, %v3809_v37  ;;  %1385 = vmatpush.bf16.msrb.mxu1 %v3630_v13 }
 0x42c   :  { %v1172_v45 = vmul.f32 0.5, %v1164_v3 }
 0x42d   :  { %v1125_v41 = vadd.f32 %v4639_v60, %v1114_v35  ;;  %v4886_v17 = vsel %vm1178_vm0, %v4842_v26, %v3500_v42 }
 0x42e   :  { %v1188_v47 = vmin.f32 %v1172_v45, 0.0  ;;  %vm1180_vm2 = vcmp.gt.f32.partialorder %v1172_v45, 0.0 }
 0x42f   :  { %v1157_v36 = vadd.f32 %v1141_v33, %v1125_v41  ;;  %1386 = vmatpush.bf16.msrb.mxu1 %v3629_v8 }
 0x430   :  { %v3811_v40 = vpop.eup %3810  ;;  %v1202_v7 = vmul.f32 1.442695, %v1188_v47 }
 0x431   :  { %v1165_v30 = vadd.f32 %v1157_v36, %v768_v12  ;;  %v3501_v15 = vadd.f32 -1.0, %v3811_v40 }
 0x432   :  { %3812 = vpow2.f32 %v1202_v7 }
 0x433   :  { %v1173_v10 = vmul.f32 0.5, %v1165_v30  ;;  %v4883_v6 = vsel %vm1179_vm3, %v1171_v49, %v3501_v15 }
 0x434   :  { %v1224_v60 = vpack.c.bf16 %v4883_v6, %v4886_v17 }
 0x435   :  { %v1189_v46 = vmin.f32 %v1173_v10, 0.0  ;;  %vm1181_vm1 = vcmp.gt.f32.partialorder %v1173_v10, 0.0 }
 0x437   :  { %v1204_v5 = vmul.f32 1.442695, %v1189_v46 }
 0x438   :  { %3514 = vmatmul.msk.bf16.gmra.mxu0 %vm596_vm7, %v1224_v60  ;;  %v3813_v38 = vpop.eup %3812 }
 0x439   :  { %3814 = vpow2.f32 %v1204_v5  ;;  %v3502_v53 = vadd.f32 -1.0, %v3813_v38 }
 0x43b   :  { %v4893_v62 = vsel %vm1180_vm2, %v1172_v45, %v3502_v53 }
 0x43f   :  { %v3815_v57 = vpop.eup %3814 }
 0x440   :  { %v3503_v32 = vadd.f32 -1.0, %v3815_v57 }
 0x442   :  { %v4891_v29 = vsel %vm1181_vm1, %v1173_v10, %v3503_v32  ;;  %vm6113_vm1 = vmmov %vm6112_vm13 }
 0x443   :  { %v1225_v26 = vpack.c.bf16 %v4891_v29, %v4893_v62 }
 0x448   :  { %3515 = vmatmul.msk.bf16.gmra.mxu0 %vm596_vm7, %v1225_v26 }
 0x46f   :  { %v1263_v22 = vpop.f32.mrf.mxu0 }
 0x470   :  { %v1291_v51 = vmul.f32 0.2, %v1263_v22  ;;  %vm1283_vm8 = vcmp.gt.f32.partialorder %v1263_v22, 0.0 }
 0x472   :  { %v1299_v14 = vsel %vm1283_vm8, %v1263_v22, %v1291_v51 }
 0x473   :  { %v1307_v23 = vpack.c.bf16 %v1299_v14, %v1299_v14  ;;  %v1408_v14 = vld [vmem:[%s6053_s11] sm:$0x1] }
 0x475   :  { %v1331_v39 = vunpack.c.l.b16 %v1307_v23 }
 0x477   :  { %v1265_v28 = vpop.f32.mrf.mxu0 }
 0x478   :  { %vm1284_vm11 = vcmp.gt.f32.partialorder %v1265_v28, 0.0  ;;  %v1292_v43 = vmul.f32 0.2, %v1265_v28 }
 0x47a   :  { %v1300_v49 = vsel %vm1284_vm11, %v1265_v28, %v1292_v43  ;;  %vm6114_vm11 = vmmov %vm6113_vm1 }
 0x47b   :  { %v1308_v52 = vpack.c.bf16 %v1300_v49, %v1300_v49 }
 0x47d   :  { %v1332_v63 = vunpack.c.l.b16 %v1308_v52 }
 0x47f   :  { %v4910_v54 = vpack.c.b16 %v1332_v63, %v1331_v39 }
 0x481   :  { %3532 = vmatmul.msk.bf16.vlgmr.msrb.gmra.mxu1 %vm6112_vm13, %v4910_v54 }
 0x4a5   :  { %v1268_v20 = vpop.f32.mrf.mxu0 }
 0x4a6   :  { %v1293_v24 = vmul.f32 0.2, %v1268_v20  ;;  %vm1285_vm3 = vcmp.gt.f32.partialorder %v1268_v20, 0.0 }
 0x4a8   :  { %v1301_v18 = vsel %vm1285_vm3, %v1268_v20, %v1293_v24 }
 0x4a9   :  { %v1309_v4 = vpack.c.bf16 %v1301_v18, %v1301_v18 }
 0x4ab   :  { %v1333_v34 = vunpack.c.l.b16 %v1309_v4 }
 0x4ad   :  { %v1270_v11 = vpop.f32.mrf.mxu0 }
 0x4ae   :  { %vm1286_vm0 = vcmp.gt.f32.partialorder %v1270_v11, 0.0  ;;  %v1294_v58 = vmul.f32 0.2, %v1270_v11 }
 0x4b0   :  { %v1302_v56 = vsel %vm1286_vm0, %v1270_v11, %v1294_v58  ;;  %vm6115_vm0 = vmmov %vm6113_vm1 }
 0x4b1   :  { %v1310_v3 = vpack.c.bf16 %v1302_v56, %v1302_v56 }
 0x4b3   :  { %v1334_v35 = vunpack.c.l.b16 %v1310_v3 }
 0x4b5   :  { %v4914_v45 = vpack.c.b16 %v1334_v35, %v1333_v34  ;;  %v1273_v41 = vpop.f32.mrf.mxu0 }
 0x4b6   :  { %v1295_v37 = vmul.f32 0.2, %v1273_v41  ;;  %vm1287_vm2 = vcmp.gt.f32.partialorder %v1273_v41, 0.0 }
 0x4b7   :  { %3533 = vmatmul.msk.bf16.gmra.mxu1 %vm6113_vm1, %v4914_v45  ;;  %vm6116_vm1 = vmmov %vm6115_vm0 }
 0x4b8   :  { %v1303_v33 = vsel %vm1287_vm2, %v1273_v41, %v1295_v37  ;;  %vm6117_vm2 = vmmov %vm6115_vm0 }
 0x4b9   :  { %v1311_v47 = vpack.c.bf16 %v1303_v33, %v1303_v33 }
 0x4bb   :  { %v1335_v42 = vunpack.c.l.b16 %v1311_v47 }
 0x4bd   :  { %v1275_v12 = vpop.f32.mrf.mxu0 }
 0x4be   :  { %vm1288_vm8 = vcmp.gt.f32.partialorder %v1275_v12, 0.0  ;;  %v1296_v36 = vmul.f32 0.2, %v1275_v12 }
 0x4c0   :  { %v1304_v40 = vsel %vm1288_vm8, %v1275_v12, %v1296_v36  ;;  %vm6118_vm8 = vmmov %vm6115_vm0 }
 0x4c1   :  { %v1312_v30 = vpack.c.bf16 %v1304_v40, %v1304_v40  ;;  %v1371_v22 = vsel %vm6118_vm8, %v4914_v45, 0  ;;  %vm6121_vm8 = vmmov %vm6117_vm2 }
 0x4c3   :  { %v1336_v15 = vunpack.c.l.b16 %v1312_v30 }
 0x4c5   :  { %v4918_v10 = vpack.c.b16 %v1336_v15, %v1335_v42  ;;  %v1278_v7 = vpop.f32.mrf.mxu0 }
 0x4c6   :  { %v1297_v46 = vmul.f32 0.2, %v1278_v7  ;;  %vm1289_vm13 = vcmp.gt.f32.partialorder %v1278_v7, 0.0 }
 0x4c7   :  { %3534 = vmatmul.msk.bf16.gmra.mxu1 %vm6114_vm11, %v4918_v10  ;;  %v1374_v8 = vsel %vm6117_vm2, %v4918_v10, 0  ;;  %vm6119_vm11 = vmmov %vm6115_vm0 }
 0x4c8   :  { %v1305_v60 = vsel %vm1289_vm13, %v1278_v7, %v1297_v46  ;;  %v1368_v51 = vsel %vm6119_vm11, %v4910_v54, 0  ;;  %vm6120_vm13 = vmmov %vm6115_vm0 }
 0x4c9   :  { %v1313_v57 = vpack.c.bf16 %v1305_v60, %v1305_v60 }
 0x4cb   :  { %v1337_v26 = vunpack.c.l.b16 %v1313_v57 }
 0x4cd   :  { %v1280_v5 = vpop.f32.mrf.mxu0 }
 0x4ce   :  { %vm1290_vm3 = vcmp.gt.f32.partialorder %v1280_v5, 0.0  ;;  %v1298_v38 = vmul.f32 0.2, %v1280_v5 }
 0x4d0   :  { %v1306_v32 = vsel %vm1290_vm3, %v1280_v5, %v1298_v38 }
 0x4d1   :  { %v1314_v53 = vpack.c.bf16 %v1306_v32, %v1306_v32 }
 0x4d3   :  { %v1338_v31 = vunpack.c.l.b16 %v1314_v53 }
 0x4d5   :  { %v1342_v19 = vpack.c.b16 %v1338_v31, %v1337_v26 }
 0x4d7   :  { %1962 = vrot.lane.b32.xlu0 %v1342_v19, %s4024_s24  ;;  %3535 = vmatmul.msk.bf16.gmra.mxu1 %vm6115_vm0, %v1342_v19  ;;  %v1377_v13 = vsel %vm6116_vm1, %v1342_v19, 0 }
 0x4d8   :  { %1416 = vmatpush.bf16.xpose.msrb.mxu3 %v1377_v13 }
 0x4e0   :  { %1417 = vmatpush.bf16.xpose.msrb.mxu3 %v1374_v8 }
 0x4e8   :  { %1418 = vmatpush.bf16.xpose.msrb.mxu3 %v1371_v22 }
 0x4f0   :  { %1419 = vmatpush.bf16.xpose.msrb.mxu3 %v1368_v51 }
 0x4f7   :  { %3536 = vmatmul.msk.bf16.vlgmr.msrb.gmra.mxu3 %vm6120_vm13, %v1408_v14  ;;  %vm6122_vm13 = vmmov %vm6117_vm2 }
 0x4f8   :  { %1618 = vmatpush.bf16.msra.mxu3 %v1342_v19 }
 0x4fc   :  { %1619 = vmatpush.bf16.msra.mxu3 %v4918_v10 }
 0x4fe   :  { %v1388_v28 = vpop.f32.mrf.mxu1 }
 0x4ff   :  { %1427 = vperm.xlu2 %3655, %v1388_v28  }
 0x500   :  { %1620 = vmatpush.bf16.msra.mxu3 %v4914_v45 }
 0x504   :  { %1621 = vmatpush.bf16.msra.mxu3 %v4910_v54 }
 0x506   :  { %v1390_v43 = vpop.f32.mrf.mxu1 }
 0x507   :  { %3657 = vset.pattern.permute.xlu2 %v4025_v0  ;;  %1432 = vperm.xlu1 %3658, %v1390_v43  }
 0x508   :  { %1796 = vperm.xlu0 %3652, %v1390_v43   ;;  %1792 = vperm.xlu2 %3657, %v1388_v28  }
 0x510   :  { %3659 = vset.pattern.permute.xlu2 %v4026_v1 }
 0x534   :  { %v1393_v23 = vpop.f32.mrf.mxu1 }
 0x535   :  { %1437 = vperm.xlu1 %3658, %v1393_v23   ;;  %1800 = vperm.xlu0 %3652, %v1393_v23  }
 0x53c   :  { %v1395_v49 = vpop.f32.mrf.mxu1 }
 0x53d   :  { %3660 = vset.pattern.permute.xlu1 %v4025_v0  ;;  %1442 = vperm.xlu2 %3659, %v1395_v49  }
 0x53e   :  { %1804 = vperm.xlu1 %3660, %v1395_v49   ;;  %3661 = vset.pattern.permute.xlu0 %v4026_v1 }
 0x544   :  { %v1398_v52 = vpop.f32.mrf.mxu1 }
 0x545   :  { %1447 = vperm.xlu2 %3659, %v1398_v52  }
 0x546   :  { %1808 = vperm.xlu1 %3660, %v1398_v52  }
 0x549   :  { %v1963_v39 = vpop.permute.xlu0 %1962 }
 0x54a   :  { %1984 = vmatpush.bf16.msra.mxu2 %v1963_v39 }
 0x54c   :  { %v1400_v63 = vpop.f32.mrf.mxu1 }
 0x54d   :  { %3662 = vset.pattern.permute.xlu2 %v4025_v0  ;;  %1452 = vperm.xlu0 %3661, %v1400_v63  }
 0x54e   :  { %1812 = vperm.xlu2 %3662, %v1400_v63   ;;  %3663 = vset.pattern.permute.xlu1 %v4026_v1 }
 0x554   :  { %v1403_v20 = vpop.f32.mrf.mxu1 }
 0x555   :  { %1457 = vperm.xlu1 %3663, %v1403_v20  }
 0x556   :  { %1816 = vperm.xlu2 %3662, %v1403_v20  }
 0x559   :  { %v1428_v18 = vpop.permute.xlu2 %1427 }
 0x55c   :  { %v1405_v24 = vpop.f32.mrf.mxu1 }
 0x55d   :  { %1462 = vperm.xlu0 %3661, %v1405_v24  }
 0x55e   :  { %3667 = vset.pattern.permute.xlu2 %v4026_v1 }
 0x562   :  { %v1793_v33 = vpop.permute.xlu2 %1792 }
 0x565   :  { %3664 = vset.pattern.permute.xlu0 %v4025_v0 }
 0x566   :  { %1820 = vperm.xlu0 %3664, %v1405_v24  }
 0x56e   :  { %3666 = vset.pattern.permute.xlu0 %v4026_v1 }
 0x579   :  { %v1433_v11 = vpop.permute.xlu1 %1432 }
 0x57a   :  { %v1421_v58 = vpop.f32.mrf.mxu3  ;;  %v1797_v4 = vpop.permute.xlu0 %1796 }
 0x57b   :  { %v4947_v56 = vperm.slane %v1421_v58, 0  ;;  %v4949_v3 = vperm.slane %v1421_v58, 1 }
 0x57d   :  { %v1825_v34 = vadd.f32 %v4949_v3, %v1797_v4  ;;  %v1467_v35 = vadd.f32 %v4947_v56, %v1433_v11  ;;  %v1466_v41 = vadd.f32 %v4947_v56, %v1428_v18  ;;  %v1824_v40 = vadd.f32 %v4949_v3, %v1793_v33 }
 0x57f   :  { %v1483_v37 = vmul.f32 0.2, %v1467_v35  ;;  %vm1474_vm3 = vcmp.gt.f32.partialorder %v1466_v41, 0.0  ;;  %vm1475_vm0 = vcmp.gt.f32.partialorder %v1467_v35, 0.0  ;;  %v1482_v12 = vmul.f32 0.2, %v1466_v41 }
 0x580   :  { %v1841_v36 = vmul.f32 0.2, %v1825_v34  ;;  %vm1833_vm1 = vcmp.gt.f32.partialorder %v1825_v34, 0.0  ;;  %v1840_v38 = vmul.f32 0.2, %v1824_v40  ;;  %vm1832_vm11 = vcmp.gt.f32.partialorder %v1824_v40, 0.0 }
 0x581   :  { %v1491_v47 = vsel %vm1475_vm0, %v1467_v35, %v1483_v37  ;;  %v1490_v42 = vsel %vm1474_vm3, %v1466_v41, %v1482_v12  ;;  %vm6123_vm3 = vmmov %vm6117_vm2 }
 0x582   :  { %v1423_v30 = vpop.f32.mrf.mxu3  ;;  %v4957_v15 = vsel %vm4310_vm6, %v1491_v47, -9e+15  ;;  %v4961_v7 = vsel %vm4283_vm14, %v1490_v42, -9e+15  ;;  %v1849_v5 = vsel %vm1833_vm1, %v1825_v34, %v1841_v36  ;;  %v1848_v32 = vsel %vm1832_vm11, %v1824_v40, %v1840_v38  ;;  %vm6124_vm1 = vmmov %vm6117_vm2 }
 0x583   :  { %v1509_v46 = vsel %vm6117_vm2, %v4957_v15, -inf  ;;  %v1506_v60 = vsel %vm6121_vm8, %v4961_v7, -inf  ;;  %v4969_v57 = vsel %vm4310_vm6, %v1849_v5, -9e+15  ;;  %v4975_v26 = vsel %vm4283_vm14, %v1848_v32, -9e+15  ;;  %vm6125_vm8 = vmmov %vm6124_vm1 }
 0x584   :  { %1510 = vmax.xlane.f32.xlu2 %v1509_v46  ;;  %1507 = vmax.xlane.f32.xlu1 %v1506_v60  ;;  %v1867_v53 = vsel %vm6122_vm13, %v4969_v57, -inf  ;;  %v1864_v31 = vsel %vm6123_vm3, %v4975_v26, -inf }
 0x58c   :  { %1868 = vmax.xlane.f32.xlu2 %v1867_v53 }
 0x590   :  { %1865 = vmax.xlane.f32.xlu0 %v1864_v31 }
 0x597   :  { %v1443_v19 = vpop.permute.xlu2 %1442 }
 0x598   :  { %v1469_v13 = vadd.f32 %v4947_v56, %v1443_v19 }
 0x59a   :  { %v1485_v8 = vmul.f32 0.2, %v1469_v13  ;;  %vm1477_vm0 = vcmp.gt.f32.partialorder %v1469_v13, 0.0 }
 0x59c   :  { %v1493_v22 = vsel %vm1477_vm0, %v1469_v13, %v1485_v8  ;;  %vm6126_vm0 = vmmov %vm6124_vm1 }
 0x59d   :  { %v4982_v51 = vsel %vm4346_vm12, %v1493_v22, -9e+15 }
 0x59e   :  { %v1515_v14 = vsel %vm6124_vm1, %v4982_v51, -inf  ;;  %vm6127_vm1 = vmmov %vm6126_vm0 }
 0x59f   :  { %v1448_v28 = vpop.permute.xlu2 %1447  ;;  %1516 = vmax.xlane.f32.xlu2 %v1515_v14 }
 0x5a0   :  { %v1470_v43 = vadd.f32 %v4947_v56, %v1448_v28 }
 0x5a2   :  { %v1486_v23 = vmul.f32 0.2, %v1470_v43  ;;  %vm1478_vm2 = vcmp.gt.f32.partialorder %v1470_v43, 0.0 }
 0x5a4   :  { %v1494_v49 = vsel %vm1478_vm2, %v1470_v43, %v1486_v23  ;;  %vm6128_vm2 = vmmov %vm6126_vm0 }
 0x5a5   :  { %v4989_v52 = vsel %vm4365_vm5, %v1494_v49, -9e+15 }
 0x5a6   :  { %v1518_v39 = vsel %vm6125_vm8, %v4989_v52, -inf }
 0x5a7   :  { %v1801_v63 = vpop.permute.xlu0 %1800  ;;  %1519 = vmax.xlane.f32.xlu2 %v1518_v39  ;;  %v1438_v20 = vpop.permute.xlu1 %1437 }
 0x5a8   :  { %v1826_v24 = vadd.f32 %v4949_v3, %v1801_v63  ;;  %v1468_v18 = vadd.f32 %v4947_v56, %v1438_v20  ;;  %v1813_v11 = vpop.permute.xlu2 %1812 }
 0x5a9   :  { %v1829_v58 = vadd.f32 %v4949_v3, %v1813_v11 }
 0x5aa   :  { %v1842_v4 = vmul.f32 0.2, %v1826_v24  ;;  %v1484_v34 = vmul.f32 0.2, %v1468_v18  ;;  %vm1834_vm11 = vcmp.gt.f32.partialorder %v1826_v24, 0.0  ;;  %vm1476_vm13 = vcmp.gt.f32.partialorder %v1468_v18, 0.0 }
 0x5ab   :  { %v1845_v35 = vmul.f32 0.2, %v1829_v58  ;;  %vm1837_vm3 = vcmp.gt.f32.partialorder %v1829_v58, 0.0 }
 0x5ac   :  { %v1850_v41 = vsel %vm1834_vm11, %v1826_v24, %v1842_v4  ;;  %v1492_v37 = vsel %vm1476_vm13, %v1468_v18, %v1484_v34  ;;  %vm6129_vm13 = vmmov %vm6126_vm0 }
 0x5ad   :  { %v4998_v33 = vsel %vm4303_vm4, %v1850_v41, -9e+15  ;;  %v5002_v12 = vsel %vm4303_vm4, %v1492_v37, -9e+15  ;;  %v1853_v36 = vsel %vm1837_vm3, %v1829_v58, %v1845_v35  ;;  %vm6130_vm3 = vmmov %vm6126_vm0 }
 0x5ae   :  { %v1870_v47 = vsel %vm6126_vm0, %v4998_v33, -inf  ;;  %v1512_v40 = vsel %vm6127_vm1, %v5002_v12, -inf  ;;  %v5010_v30 = vsel %vm4389_vm10, %v1853_v36, -9e+15 }
 0x5af   :  { %1871 = vmax.xlane.f32.xlu0 %v1870_v47  ;;  %1513 = vmax.xlane.f32.xlu1 %v1512_v40  ;;  %v1879_v42 = vsel %vm6128_vm2, %v5010_v30, -inf }
 0x5b0   :  { %v1817_v46 = vpop.permute.xlu2 %1816  ;;  %1880 = vmax.xlane.f32.xlu2 %v1879_v42  ;;  %v1805_v60 = vpop.permute.xlu1 %1804 }
 0x5b1   :  { %v1830_v5 = vadd.f32 %v4949_v3, %v1817_v46  ;;  %v1827_v38 = vadd.f32 %v4949_v3, %v1805_v60 }
 0x5b3   :  { %v1846_v32 = vmul.f32 0.2, %v1830_v5  ;;  %v1843_v53 = vmul.f32 0.2, %v1827_v38  ;;  %vm1838_vm8 = vcmp.gt.f32.partialorder %v1830_v5, 0.0  ;;  %vm1835_vm11 = vcmp.gt.f32.partialorder %v1827_v38, 0.0 }
 0x5b5   :  { %v1854_v31 = vsel %vm1838_vm8, %v1830_v5, %v1846_v32  ;;  %v1851_v19 = vsel %vm1835_vm11, %v1827_v38, %v1843_v53  ;;  %vm6131_vm8 = vmmov %vm6127_vm1 }
 0x5b6   :  { %v5018_v13 = vsel %vm4414_vm15, %v1854_v31, -9e+15  ;;  %v5022_v8 = vsel %vm4346_vm12, %v1851_v19, -9e+15 }
 0x5b7   :  { %v1882_v22 = vsel %vm6129_vm13, %v5018_v13, -inf  ;;  %v1873_v14 = vsel %vm6130_vm3, %v5022_v8, -inf  ;;  %vm6132_vm13 = vmmov %vm6127_vm1 }
 0x5b8   :  { %1883 = vmax.xlane.f32.xlu2 %v1882_v22  ;;  %1874 = vmax.xlane.f32.xlu1 %v1873_v14  ;;  %v1809_v28 = vpop.permute.xlu1 %1808 }
 0x5b9   :  { %v1828_v43 = vadd.f32 %v4949_v3, %v1809_v28 }
 0x5bb   :  { %v1844_v23 = vmul.f32 0.2, %v1828_v43  ;;  %vm1836_vm0 = vcmp.gt.f32.partialorder %v1828_v43, 0.0 }
 0x5bd   :  { %v1852_v49 = vsel %vm1836_vm0, %v1828_v43, %v1844_v23  ;;  %vm6133_vm0 = vmmov %vm6127_vm1 }
 0x5be   :  { %v5031_v39 = vsel %vm4365_vm5, %v1852_v49, -9e+15 }
 0x5bf   :  { %v1453_v63 = vpop.permute.xlu0 %1452  ;;  %v1876_v20 = vsel %vm6127_vm1, %v5031_v39, -inf }
 0x5c0   :  { %v1471_v24 = vadd.f32 %v4947_v56, %v1453_v63  ;;  %1877 = vmax.xlane.f32.xlu0 %v1876_v20 }
 0x5c2   :  { %v1487_v18 = vmul.f32 0.2, %v1471_v24  ;;  %vm1479_vm2 = vcmp.gt.f32.partialorder %v1471_v24, 0.0 }
 0x5c4   :  { %v1495_v11 = vsel %vm1479_vm2, %v1471_v24, %v1487_v18  ;;  %vm6134_vm2 = vmmov %vm6133_vm0 }
 0x5c5   :  { %v5038_v58 = vsel %vm4389_vm10, %v1495_v11, -9e+15 }
 0x5c6   :  { %v1521_v4 = vsel %vm6131_vm8, %v5038_v58, -inf  ;;  %vm6135_vm8 = vmmov %vm6133_vm0 }
 0x5c7   :  { %1522 = vmax.xlane.f32.xlu1 %v1521_v4  ;;  %v1458_v34 = vpop.permute.xlu1 %1457 }
 0x5c8   :  { %v1472_v35 = vadd.f32 %v4947_v56, %v1458_v34 }
 0x5ca   :  { %v1488_v41 = vmul.f32 0.2, %v1472_v35  ;;  %vm1480_vm11 = vcmp.gt.f32.partialorder %v1472_v35, 0.0 }
 0x5cc   :  { %v1496_v37 = vsel %vm1480_vm11, %v1472_v35, %v1488_v41  ;;  %vm6136_vm11 = vmmov %vm6133_vm0 }
 0x5cd   :  { %v5045_v36 = vsel %vm4414_vm15, %v1496_v37, -9e+15 }
 0x5ce   :  { %v1524_v47 = vsel %vm6132_vm13, %v5045_v36, -inf  ;;  %vm6137_vm13 = vmmov %vm6133_vm0 }
 0x5cf   :  { %v1463_v40 = vpop.permute.xlu0 %1462  ;;  %1525 = vmax.xlane.f32.xlu1 %v1524_v47 }
 0x5d0   :  { %v1473_v42 = vadd.f32 %v4947_v56, %v1463_v40 }
 0x5d2   :  { %v1489_v46 = vmul.f32 0.2, %v1473_v42  ;;  %vm1481_vm3 = vcmp.gt.f32.partialorder %v1473_v42, 0.0 }
 0x5d4   :  { %v1497_v60 = vsel %vm1481_vm3, %v1473_v42, %v1489_v46  ;;  %vm6138_vm3 = vmmov %vm6133_vm0 }
 0x5d5   :  { %v5052_v5 = vsel %vm4384_vm9, %v1497_v60, -9e+15 }
 0x5d6   :  { %v1527_v38 = vsel %vm6133_vm0, %v5052_v5, -inf }
 0x5d7   :  { %1528 = vmax.xlane.f32.xlu0 %v1527_v38 }
 0x5d8   :  { %v1821_v32 = vpop.permute.xlu0 %1820 }
 0x5d9   :  { %v1831_v53 = vadd.f32 %v4949_v3, %v1821_v32 }
 0x5db   :  { %v1847_v31 = vmul.f32 0.2, %v1831_v53  ;;  %vm1839_vm1 = vcmp.gt.f32.partialorder %v1831_v53, 0.0 }
 0x5dd   :  { %v1855_v19 = vsel %vm1839_vm1, %v1831_v53, %v1847_v31  ;;  %vm6139_vm1 = vmmov %vm6133_vm0 }
 0x5de   :  { %v5059_v56 = vsel %vm4384_vm9, %v1855_v19, -9e+15 }
 0x5df   :  { %v1885_v22 = vsel %vm6134_vm2, %v5059_v56, -inf  ;;  %vm6140_vm2 = vmmov %vm6133_vm0 }
 0x5e0   :  { %1886 = vmax.xlane.f32.xlu1 %v1885_v22 }
 0x5eb   :  { %1956 = vrot.lane.b32.xlu0 %v4910_v54, %s4024_s24 }
 0x5f7   :  { %v1511_v14 = vpop.xlane.xlu2 %1510  ;;  %v1508_v43 = vpop.xlane.xlu1 %1507 }
 0x5f8   :  { %v1531_v28 = vsub.f32 %v4957_v15, %v1511_v14  ;;  %v1530_v3 = vsub.f32 %v4961_v7, %v1508_v43 }
 0x5fa   :  { %v1540_v23 = vmul.f32 1.442695, %v1531_v28  ;;  %v1538_v49 = vmul.f32 1.442695, %v1530_v3 }
 0x5fc   :  { %3816 = vpow2.f32 %v1540_v23 }
 0x5fd   :  { %3818 = vpow2.f32 %v1538_v49 }
 0x5ff   :  { %v1869_v63 = vpop.xlane.xlu2 %1868 }
 0x600   :  { %v1889_v20 = vsub.f32 %v4969_v57, %v1869_v63 }
 0x602   :  { %v5068_v24 = vpop.eup %3816  ;;  %v1898_v18 = vmul.f32 1.442695, %v1889_v20 }
 0x603   :  { %v5070_v11 = vpop.eup %3818  ;;  %v1866_v4 = vpop.xlane.xlu0 %1865  ;;  %v1557_v54 = vsel %vm6135_vm8, %v5068_v24, 0.0  ;;  %vm6141_vm8 = vmmov %vm6133_vm0 }
 0x604   :  { %3820 = vpow2.f32 %v1898_v18  ;;  %v1888_v15 = vsub.f32 %v4975_v26, %v1866_v4  ;;  %1558 = vadd.xlane.f32.xlu1 %v1557_v54  ;;  %v1554_v7 = vsel %vm6136_vm11, %v5070_v11, 0.0  ;;  %vm6142_vm11 = vmmov %vm6133_vm0 }
 0x605   :  { %1555 = vadd.xlane.f32.xlu2 %v1554_v7 }
 0x606   :  { %v1896_v34 = vmul.f32 1.442695, %v1888_v15 }
 0x608   :  { %3822 = vpow2.f32 %v1896_v34 }
 0x60a   :  { %v5077_v57 = vpop.eup %3820 }
 0x60b   :  { %v1915_v35 = vsel %vm6137_vm13, %v5077_v57, 0.0  ;;  %vm6143_vm13 = vmmov %vm6133_vm0 }
 0x60c   :  { %1916 = vadd.xlane.f32.xlu1 %v1915_v35 }
 0x60e   :  { %v5081_v41 = vpop.eup %3822 }
 0x60f   :  { %v1912_v37 = vsel %vm6138_vm3, %v5081_v41, 0.0  ;;  %vm6144_vm3 = vmmov %vm6133_vm0 }
 0x610   :  { %1913 = vadd.xlane.f32.xlu2 %v1912_v37 }
 0x612   :  { %v1517_v26 = vpop.xlane.xlu2 %1516 }
 0x613   :  { %v1533_v3 = vsub.f32 %v4982_v51, %v1517_v26 }
 0x61a   :  { %v1520_v60 = vpop.xlane.xlu2 %1519 }
 0x61b   :  { %v1534_v19 = vsub.f32 %v4989_v52, %v1520_v60 }
 0x622   :  { %v1514_v47 = vpop.xlane.xlu1 %1513  ;;  %v1872_v38 = vpop.xlane.xlu0 %1871 }
 0x623   :  { %v1532_v40 = vsub.f32 %v5002_v12, %v1514_v47  ;;  %v1890_v52 = vsub.f32 %v4998_v33, %v1872_v38  ;;  %v1881_v23 = vpop.xlane.xlu2 %1880 }
 0x624   :  { %v1893_v4 = vsub.f32 %v5010_v30, %v1881_v23 }
 0x625   :  { %v1542_v42 = vmul.f32 1.442695, %v1532_v40  ;;  %1958 = vrot.lane.b32.xlu1 %v4914_v45, %s4024_s24  ;;  %v1546_v45 = vmul.f32 1.442695, %v1534_v19  ;;  %v1900_v63 = vmul.f32 1.442695, %v1890_v52 }
 0x626   :  { %v1906_v33 = vmul.f32 1.442695, %v1893_v4 }
 0x627   :  { %3824 = vpow2.f32 %v1542_v42 }
 0x628   :  { %1960 = vrot.lane.b32.xlu2 %v4918_v10, %s4024_s24 }
 0x62b   :  { %v1875_v46 = vpop.xlane.xlu1 %1874  ;;  %v1884_v15 = vpop.xlane.xlu2 %1883 }
 0x62c   :  { %v1891_v32 = vsub.f32 %v5022_v8, %v1875_v46  ;;  %v1894_v30 = vsub.f32 %v5018_v13, %v1884_v15 }
 0x62d   :  { %v5091_v53 = vpop.eup %3824 }
 0x62e   :  { %v1902_v31 = vmul.f32 1.442695, %v1891_v32  ;;  %v1560_v12 = vsel %vm6133_vm0, %v5091_v53, 0.0  ;;  %v1908_v60 = vmul.f32 1.442695, %v1894_v30 }
 0x62f   :  { %1561 = vadd.xlane.f32.xlu0 %v1560_v12 }
 0x630   :  { %3826 = vpow2.f32 %v1902_v31 }
 0x631   :  { %3828 = vpow2.f32 %v1546_v45 }
 0x633   :  { %v1878_v22 = vpop.xlane.xlu0 %1877 }
 0x634   :  { %v1892_v10 = vsub.f32 %v5031_v39, %v1878_v22  ;;  %v1544_v39 = vmul.f32 1.442695, %v1533_v3 }
 0x636   :  { %v5096_v14 = vpop.eup %3826  ;;  %v1904_v28 = vmul.f32 1.442695, %v1892_v10 }
 0x637   :  { %v1921_v8 = vsel %vm6139_vm1, %v5096_v14, 0.0  ;;  %v5101_v43 = vpop.eup %3828  ;;  %vm6145_vm1 = vmmov %vm6133_vm0 }
 0x638   :  { %1922 = vadd.xlane.f32.xlu0 %v1921_v8  ;;  %3830 = vpow2.f32 %v1904_v28  ;;  %v1566_v49 = vsel %vm6140_vm2, %v5101_v43, 0.0  ;;  %vm6146_vm2 = vmmov %vm6133_vm0 }
 0x639   :  { %3832 = vpow2.f32 %v1900_v63 }
 0x63a   :  { %v1523_v20 = vpop.xlane.xlu1 %1522  ;;  %3834 = vpow2.f32 %v1544_v39 }
 0x63b   :  { %v1535_v54 = vsub.f32 %v5038_v58, %v1523_v20  ;;  %3836 = vpow2.f32 %v1906_v33 }
 0x63d   :  { %v1548_v7 = vmul.f32 1.442695, %v1535_v54 }
 0x63e   :  { %v5107_v18 = vpop.eup %3830 }
 0x63f   :  { %v1924_v51 = vsel %vm6141_vm8, %v5107_v18, 0.0  ;;  %v5113_v35 = vpop.eup %3832  ;;  %3838 = vpow2.f32 %v1548_v7  ;;  %vm6147_vm8 = vmmov %vm6133_vm0 }
 0x640   :  { %1567 = vadd.xlane.f32.xlu0 %v1566_v49  ;;  %v5116_v47 = vpop.eup %3834  ;;  %v1918_v40 = vsel %vm6142_vm11, %v5113_v35, 0.0  ;;  %vm6148_vm11 = vmmov %vm6133_vm0 }
 0x641   :  { %v1563_v46 = vsel %vm6143_vm13, %v5116_v47, 0.0  ;;  %vm6149_vm13 = vmmov %vm6133_vm0 }
 0x642   :  { %v1526_v26 = vpop.xlane.xlu1 %1525 }
 0x643   :  { %v1536_v42 = vsub.f32 %v5045_v36, %v1526_v26 }
 0x645   :  { %v1550_v38 = vmul.f32 1.442695, %v1536_v42 }
 0x648   :  { %1925 = vadd.xlane.f32.xlu0 %v1924_v51 }
 0x64a   :  { %v1529_v34 = vpop.xlane.xlu0 %1528 }
 0x64b   :  { %v1537_v37 = vsub.f32 %v5052_v5, %v1529_v34  ;;  %v5124_v5 = vpop.eup %3836 }
 0x64c   :  { %v5126_v32 = vpop.eup %3838  ;;  %v1927_v19 = vsel %vm6144_vm3, %v5124_v5, 0.0  ;;  %vm6150_vm3 = vmmov %vm6133_vm0 }
 0x64d   :  { %v1552_v58 = vmul.f32 1.442695, %v1537_v37  ;;  %v1569_v45 = vsel %vm6145_vm1, %v5126_v32, 0.0  ;;  %vm6151_vm1 = vmmov %vm6133_vm0 }
 0x64f   :  { %3840 = vpow2.f32 %v1552_v58  ;;  %1919 = vadd.xlane.f32.xlu1 %v1918_v40 }
 0x650   :  { %3842 = vpow2.f32 %v1908_v60 }
 0x651   :  { %1564 = vadd.xlane.f32.xlu2 %v1563_v46  ;;  %3844 = vpow2.f32 %v1550_v38 }
 0x653   :  { %v1887_v13 = vpop.xlane.xlu1 %1886 }
 0x654   :  { %v1895_v12 = vsub.f32 %v5059_v56, %v1887_v13 }
 0x655   :  { %v5128_v31 = vpop.eup %3840 }
 0x656   :  { %v1575_v36 = vsel %vm6133_vm0, %v5128_v31, 0.0  ;;  %v5137_v22 = vpop.eup %3842  ;;  %v1910_v10 = vmul.f32 1.442695, %v1895_v12 }
 0x657   :  { %1928 = vadd.xlane.f32.xlu1 %v1927_v19  ;;  %1576 = vadd.xlane.f32.xlu0 %v1575_v36  ;;  %v5139_v8 = vpop.eup %3844  ;;  %v1930_v28 = vsel %vm6146_vm2, %v5137_v22, 0.0  ;;  %vm6152_vm2 = vmmov %vm6133_vm0 }
 0x658   :  { %3846 = vpow2.f32 %v1910_v10  ;;  %v1572_v52 = vsel %vm6147_vm8, %v5139_v8, 0.0  ;;  %vm6153_vm8 = vmmov %vm6133_vm0 }
 0x659   :  { %1570 = vadd.xlane.f32.xlu2 %v1569_v45 }
 0x65d   :  { %v1957_v30 = vpop.permute.xlu0 %1956 }
 0x65e   :  { %v5145_v56 = vpop.eup %3846 }
 0x65f   :  { %1931 = vadd.xlane.f32.xlu1 %v1930_v28  ;;  %v1933_v3 = vsel %vm6148_vm11, %v5145_v56, 0.0  ;;  %vm6154_vm11 = vmmov %vm6133_vm0 }
 0x661   :  { %1573 = vadd.xlane.f32.xlu2 %v1572_v52 }
 0x669   :  { %1934 = vadd.xlane.f32.xlu2 %v1933_v3 }
 0x677   :  { %v1559_v23 = vpop.xlane.xlu1 %1558 }
 0x678   :  { %v1556_v49 = vpop.xlane.xlu2 %1555  ;;  %3848 = vrcp.f32 %v1559_v23 }
 0x679   :  { %3850 = vrcp.f32 %v1556_v49 }
 0x67e   :  { %v3849_v63 = vpop.eup %3848 }
 0x67f   :  { %v3851_v20 = vpop.eup %3850  ;;  %v1587_v39 = vmul.f32 %v3849_v63, %v5068_v24  ;;  %v1917_v15 = vpop.xlane.xlu1 %1916 }
 0x680   :  { %v1586_v4 = vmul.f32 %v3851_v20, %v5070_v11 }
 0x682   :  { %v1594_v54 = vpack.c.bf16 %v1587_v39, %v1586_v4 }
 0x683   :  { %v1914_v51 = vpop.xlane.xlu2 %1913 }
 0x684   :  { %3537 = vmatmul.msk.bf16.vlgmr.msra.gmra.mxu3 %vm6149_vm13, %v1594_v54  ;;  %3852 = vrcp.f32 %v1914_v51  ;;  %vm6155_vm13 = vmmov %vm6133_vm0 }
 0x685   :  { %3854 = vrcp.f32 %v1917_v15 }
 0x68a   :  { %v3853_v7 = vpop.eup %3852 }
 0x68b   :  { %v1961_v33 = vpop.permute.xlu2 %1960  ;;  %v3855_v37 = vpop.eup %3854  ;;  %v1944_v26 = vmul.f32 %v3853_v7, %v5081_v41 }
 0x68c   :  { %1985 = vmatpush.bf16.msra.mxu2 %v1961_v33  ;;  %v1945_v24 = vmul.f32 %v3855_v37, %v5077_v57 }
 0x68e   :  { %v1952_v11 = vpack.c.bf16 %v1945_v24, %v1944_v26 }
 0x697   :  { %v1959_v34 = vpop.permute.xlu1 %1958 }
 0x698   :  { %1986 = vmatpush.bf16.msra.mxu2 %v1959_v34 }
 0x69c   :  { %1987 = vmatpush.bf16.msra.mxu2 %v1957_v30 }
 0x69f   :  { %3541 = vmatmul.msk.bf16.vlgmr.msra.gmra.mxu2 %vm6150_vm3, %v1952_v11 }
 0x6a2   :  { %v1562_v58 = vpop.xlane.xlu0 %1561 }
 0x6ab   :  { %v1923_v40 = vpop.xlane.xlu0 %1922 }
 0x6ac   :  { %3856 = vrcp.f32 %v1923_v40 }
 0x6ad   :  { %3858 = vrcp.f32 %v1562_v58 }
 0x6b2   :  { %v3857_v38 = vpop.eup %3856 }
 0x6b3   :  { %v1568_v46 = vpop.xlane.xlu0 %1567  ;;  %v3859_v13 = vpop.eup %3858  ;;  %v1947_v57 = vmul.f32 %v3857_v38, %v5096_v14 }
 0x6b4   :  { %v1588_v28 = vmul.f32 %v3859_v13, %v5091_v53 }
 0x6bb   :  { %v1926_v3 = vpop.xlane.xlu0 %1925 }
 0x6c2   :  { %v1920_v42 = vpop.xlane.xlu1 %1919 }
 0x6c3   :  { %3860 = vrcp.f32 %v1920_v42 }
 0x6c4   :  { %v1565_v60 = vpop.xlane.xlu2 %1564 }
 0x6c5   :  { %3862 = vrcp.f32 %v1565_v60 }
 0x6c9   :  { %v3861_v19 = vpop.eup %3860 }
 0x6ca   :  { %v1946_v41 = vmul.f32 %v3861_v19, %v5113_v35  ;;  %v1929_v12 = vpop.xlane.xlu1 %1928  ;;  %v1577_v7 = vpop.xlane.xlu0 %1576 }
 0x6cb   :  { %v3863_v36 = vpop.eup %3862  ;;  %3864 = vrcp.f32 %v1929_v12 }
 0x6cc   :  { %v1571_v45 = vpop.xlane.xlu2 %1570  ;;  %v1953_v10 = vpack.c.bf16 %v1947_v57, %v1946_v41  ;;  %v1589_v52 = vmul.f32 %v3863_v36, %v5116_v47  ;;  %3866 = vrcp.f32 %v1926_v3 }
 0x6cd   :  { %3868 = vrcp.f32 %v1571_v45 }
 0x6ce   :  { %3542 = vmatmul.msk.bf16.gmra.mxu2 %vm6133_vm0, %v1953_v10  ;;  %v1595_v23 = vpack.c.bf16 %v1589_v52, %v1588_v28  ;;  %3870 = vrcp.f32 %v1568_v46 }
 0x6d0   :  { %3538 = vmatmul.msk.bf16.gmra.mxu3 %vm6151_vm1, %v1595_v23 }
 0x6d1   :  { %v3865_v14 = vpop.eup %3864 }
 0x6d2   :  { %v3867_v49 = vpop.eup %3866  ;;  %v1949_v20 = vmul.f32 %v3865_v14, %v5124_v5  ;;  %v1932_v33 = vpop.xlane.xlu1 %1931 }
 0x6d3   :  { %v3869_v63 = vpop.eup %3868  ;;  %v1948_v53 = vmul.f32 %v3867_v49, %v5107_v18 }
 0x6d4   :  { %v1574_v35 = vpop.xlane.xlu2 %1573  ;;  %v3871_v39 = vpop.eup %3870  ;;  %v1591_v47 = vmul.f32 %v3869_v63, %v5126_v32 }
 0x6d5   :  { %v1954_v54 = vpack.c.bf16 %v1949_v20, %v1948_v53  ;;  %v1590_v51 = vmul.f32 %v3871_v39, %v5101_v43 }
 0x6d7   :  { %v1596_v15 = vpack.c.bf16 %v1591_v47, %v1590_v51 }
 0x6dc   :  { %v1935_v4 = vpop.xlane.xlu2 %1934 }
 0x6dd   :  { %3872 = vrcp.f32 %v1935_v4 }
 0x6de   :  { %3543 = vmatmul.msk.bf16.gmra.mxu2 %vm6152_vm2, %v1954_v54  ;;  %3874 = vrcp.f32 %v1932_v33 }
 0x6df   :  { %3876 = vrcp.f32 %v1574_v35 }
 0x6e0   :  { %3539 = vmatmul.msk.bf16.gmra.mxu3 %vm6153_vm8, %v1596_v15  ;;  %3878 = vrcp.f32 %v1577_v7 }
 0x6e3   :  { %v3873_v5 = vpop.eup %3872 }
 0x6e4   :  { %v3875_v34 = vpop.eup %3874  ;;  %v1951_v32 = vmul.f32 %v3873_v5, %v5145_v56 }
 0x6e5   :  { %v3877_v18 = vpop.eup %3876  ;;  %v1950_v26 = vmul.f32 %v3875_v34, %v5137_v22  ;;  %v5239_v34 = vld [vmem:[%s6054_s12] ss:$0 sm:$0xff] }
 0x6e6   :  { %v3879_v37 = vpop.eup %3878  ;;  %v1592_v43 = vmul.f32 %v3877_v18, %v5139_v8 }
 0x6e7   :  { %v1955_v30 = vpack.c.bf16 %v1951_v32, %v1950_v26  ;;  %v1593_v24 = vmul.f32 %v3879_v37, %v5128_v31 }
 0x6e9   :  { %v1597_v11 = vpack.c.bf16 %v1593_v24, %v1592_v43 }
 0x6ee   :  { %3544 = vmatmul.msk.bf16.gmra.mxu2 %vm6154_vm11, %v1955_v30 }
 0x6f0   :  { %3540 = vmatmul.msk.bf16.gmra.mxu3 %vm6155_vm13, %v1597_v11 }
 0x707   :  { %v5173_v58 = vpop.f32.mrf.mxu3 }
 0x708   :  { %v1643_v40 = vmul.f32 %v5173_v58, %v5173_v58 }
 0x70a   :  { %v1651_v56 = vsel %vm596_vm7, %v1643_v40, 0.0 }
 0x70b   :  { %1652 = vadd.xlane.f32.xlu0 %v1651_v56 }
 0x70f   :  { %v5178_v42 = vpop.f32.mrf.mxu3 }
 0x710   :  { %v1644_v22 = vmul.f32 %v5178_v42, %v5178_v42 }
 0x712   :  { %v1654_v31 = vsel %vm596_vm7, %v1644_v22, 0.0 }
 0x713   :  { %1655 = vadd.xlane.f32.xlu1 %v1654_v31 }
 0x722   :  { %v5183_v8 = vpop.f32.mrf.mxu2 }
 0x723   :  { %v2009_v46 = vmul.f32 %v5183_v8, %v5183_v8 }
 0x725   :  { %v2017_v60 = vsel %vm596_vm7, %v2009_v46, 0.0 }
 0x726   :  { %2018 = vadd.xlane.f32.xlu2 %v2017_v60 }
 0x72a   :  { %v5188_v38 = vpop.f32.mrf.mxu2 }
 0x72b   :  { %v2010_v13 = vmul.f32 %v5188_v38, %v5188_v38 }
 0x72d   :  { %v2020_v19 = vsel %vm596_vm7, %v2010_v13, 0.0 }
 0x72e   :  { %2021 = vadd.xlane.f32.xlu0 %v2020_v19 }
 0x751   :  { %v5193_v41 = vpop.f32.mrf.mxu2 }
 0x752   :  { %v2011_v57 = vmul.f32 %v5193_v41, %v5193_v41 }
 0x753   :  { %v5197_v36 = vpop.f32.mrf.mxu3 }
 0x754   :  { %v1645_v12 = vmul.f32 %v5197_v36, %v5197_v36  ;;  %v2023_v45 = vsel %vm596_vm7, %v2011_v57, 0.0 }
 0x755   :  { %2024 = vadd.xlane.f32.xlu0 %v2023_v45 }
 0x756   :  { %v1657_v10 = vsel %vm596_vm7, %v1645_v12, 0.0 }
 0x757   :  { %1658 = vadd.xlane.f32.xlu1 %v1657_v10 }
 0x759   :  { %v5203_v28 = vpop.f32.mrf.mxu2 }
 0x75a   :  { %v2012_v52 = vmul.f32 %v5203_v28, %v5203_v28 }
 0x75b   :  { %v5207_v3 = vpop.f32.mrf.mxu3 }
 0x75c   :  { %v1646_v23 = vmul.f32 %v5207_v3, %v5207_v3  ;;  %v2026_v14 = vsel %vm596_vm7, %v2012_v52, 0.0 }
 0x75e   :  { %v1660_v35 = vsel %vm596_vm7, %v1646_v23, 0.0 }
 0x75f   :  { %1661 = vadd.xlane.f32.xlu2 %v1660_v35  ;;  %2027 = vadd.xlane.f32.xlu1 %v2026_v14 }
 0x761   :  { %v5213_v49 = vpop.f32.mrf.mxu2 }
 0x762   :  { %v2013_v47 = vmul.f32 %v5213_v49, %v5213_v49 }
 0x763   :  { %v5215_v63 = vpop.f32.mrf.mxu3 }
 0x764   :  { %v1647_v20 = vmul.f32 %v5215_v63, %v5215_v63  ;;  %v2029_v33 = vsel %vm596_vm7, %v2013_v47, 0.0 }
 0x766   :  { %v1663_v39 = vsel %vm596_vm7, %v1647_v20, 0.0 }
 0x767   :  { %1664 = vadd.xlane.f32.xlu0 %v1663_v39 }
 0x769   :  { %v5220_v53 = vpop.f32.mrf.mxu2 }
 0x76a   :  { %v2014_v7 = vmul.f32 %v5220_v53, %v5220_v53 }
 0x76b   :  { %v5224_v4 = vpop.f32.mrf.mxu3 }
 0x76c   :  { %v1648_v54 = vmul.f32 %v5224_v4, %v5224_v4  ;;  %v2032_v37 = vsel %vm596_vm7, %v2014_v7, 0.0 }
 0x76e   :  { %v1666_v51 = vsel %vm596_vm7, %v1648_v54, 0.0 }
 0x76f   :  { %1667 = vadd.xlane.f32.xlu1 %v1666_v51  ;;  %2030 = vadd.xlane.f32.xlu0 %v2029_v33 }
 0x771   :  { %v5230_v15 = vpop.f32.mrf.mxu2 }
 0x772   :  { %v2015_v56 = vmul.f32 %v5230_v15, %v5230_v15 }
 0x773   :  { %v5234_v5 = vpop.f32.mrf.mxu3 }
 0x774   :  { %v1649_v18 = vmul.f32 %v5234_v5, %v5234_v5  ;;  %v2035_v22 = vsel %vm596_vm7, %v2015_v56, 0.0 }
 0x776   :  { %v1669_v32 = vsel %vm596_vm7, %v1649_v18, 0.0 }
 0x777   :  { %2137 = vrot.lane.b32.xlu2 %v5239_v34, %s4024_s24  ;;  %1670 = vadd.xlane.f32.xlu0 %v1669_v32 }
 0x778   :  { %2033 = vadd.xlane.f32.xlu1 %v2032_v37 }
 0x779   :  { %v5247_v26 = vpop.f32.mrf.mxu2 }
 0x77a   :  { %v2016_v43 = vmul.f32 %v5247_v26, %v5247_v26 }
 0x77b   :  { %v5251_v30 = vpop.f32.mrf.mxu3 }
 0x77c   :  { %v1650_v24 = vmul.f32 %v5251_v30, %v5251_v30  ;;  %v2038_v40 = vsel %vm596_vm7, %v2016_v43, 0.0 }
 0x77e   :  { %v1672_v11 = vsel %vm596_vm7, %v1650_v24, 0.0  ;;  %v1653_v31 = vpop.xlane.xlu0 %1652 }
 0x77f   :  { %2039 = vadd.xlane.f32.xlu0 %v2038_v40  ;;  %v1675_v60 = vmax.f32 %v1653_v31, 1e-24 }
 0x780   :  { %1673 = vadd.xlane.f32.xlu1 %v1672_v11 }
 0x781   :  { %3880 = vrsqrt.f32 %v1675_v60  ;;  %vm1689_vm1 = vweird.f32 %v1675_v60 }
 0x786   :  { %v1656_v46 = vpop.xlane.xlu1 %1655 }
 0x787   :  { %v1676_v13 = vmax.f32 %v1656_v46, 1e-24  ;;  %v3881_v10 = vpop.eup %3880 }
 0x788   :  { %v1684_v23 = vmul.f32 %v3881_v10, %v1675_v60  ;;  %vm1690_vm3 = vweird.f32 %v3881_v10 }
 0x789   :  { %3882 = vrsqrt.f32 %v1676_v13  ;;  %vm5281_vm2 = vmor %vm1689_vm1, %vm1690_vm3  ;;  %vm1699_vm8 = vweird.f32 %v1676_v13 }
 0x78a   :  { %v1685_v39 = vmul.f32 %v3881_v10, %v1684_v23 }
 0x78c   :  { %v1686_v33 = vmul.f32 0.5, %v1685_v39 }
 0x78e   :  { %v1687_v43 = vsub.f32 1.5, %v1686_v33 }
 0x78f   :  { %v3883_v52 = vpop.eup %3882 }
 0x790   :  { %v1694_v14 = vmul.f32 %v3883_v52, %v1676_v13  ;;  %v1688_v46 = vmul.f32 %v3881_v10, %v1687_v43  ;;  %vm1700_vm0 = vweird.f32 %v3883_v52 }
 0x791   :  { %vm5289_vm11 = vmor %vm1699_vm8, %vm1700_vm0 }
 0x792   :  { %v1695_v54 = vmul.f32 %v3883_v52, %v1694_v14  ;;  %v3634_v14 = vld [vmem:[%s6055_s13 + $0x8] sm:$0xff] }
 0x793   :  { %2258 = vmatpush.bf16.msra.mxu0 %v3634_v14 }
 0x794   :  { %v1696_v18 = vmul.f32 0.5, %v1695_v54  ;;  %v1692_v54 = vsel %vm5281_vm2, %v3881_v10, %v1688_v46 }
 0x796   :  { %v1697_v40 = vsub.f32 1.5, %v1696_v18 }
 0x799   :  { %v2019_v19 = vpop.xlane.xlu2 %2018 }
 0x79a   :  { %v2041_v12 = vmax.f32 %v2019_v19, 1e-24 }
 0x79c   :  { %3884 = vrsqrt.f32 %v2041_v12  ;;  %vm2055_vm0 = vweird.f32 %v2041_v12 }
 0x7a0   :  { %2036 = vadd.xlane.f32.xlu2 %v2035_v22 }
 0x7a1   :  { %v2022_v57 = vpop.xlane.xlu0 %2021 }
 0x7a2   :  { %v5260_v45 = vmax.f32 %v2022_v57, 1e-24  ;;  %v5263_v35 = vpop.eup %3884  ;;  %v1698_v57 = vmul.f32 %v3883_v52, %v1697_v40 }
 0x7a3   :  { %v2050_v47 = vmul.f32 %v5263_v35, %v2041_v12  ;;  %vm2056_vm13 = vweird.f32 %v5263_v35 }
 0x7a4   :  { %3886 = vrsqrt.f32 %v5260_v45  ;;  %v1702_v33 = vsel %vm5289_vm11, %v3883_v52, %v1698_v57  ;;  %vm2057_vm1 = vmor %vm2055_vm0, %vm2056_vm13  ;;  %vm2065_vm2 = vweird.f32 %v5260_v45 }
 0x7a5   :  { %v2051_v7 = vmul.f32 %v5263_v35, %v2050_v47 }
 0x7a7   :  { %v2052_v24 = vmul.f32 0.5, %v2051_v7 }
 0x7a9   :  { %v2053_v19 = vsub.f32 1.5, %v2052_v24  ;;  %v3633_v24 = vld [vmem:[%s6055_s13] sm:$0xff] }
 0x7aa   :  { %v5265_v20 = vpop.eup %3886  ;;  %2259 = vmatpush.bf16.msra.mxu0 %v3633_v24 }
 0x7ab   :  { %v2060_v51 = vmul.f32 %v5265_v20, %v5260_v45  ;;  %v2054_v60 = vmul.f32 %v5263_v35, %v2053_v19  ;;  %vm2066_vm3 = vweird.f32 %v5265_v20 }
 0x7ac   :  { %vm2067_vm8 = vmor %vm2065_vm2, %vm2066_vm3 }
 0x7ad   :  { %v2061_v32 = vmul.f32 %v5265_v20, %v2060_v51  ;;  %v2058_v12 = vsel %vm2057_vm1, %v5263_v35, %v2054_v60 }
 0x7af   :  { %v2062_v56 = vmul.f32 0.5, %v2061_v32 }
 0x7b1   :  { %v2063_v23 = vsub.f32 1.5, %v2062_v56  ;;  %v1763_v56 = vmul.f32 %v1692_v54, %v5173_v58 }
 0x7b3   :  { %v2064_v7 = vmul.f32 %v5265_v20, %v2063_v23  ;;  %v2129_v23 = vmul.f32 %v2058_v12, %v5183_v8  ;;  %v1775_v35 = vadd.f32 %v5239_v34, %v1763_v56 }
 0x7b5   :  { %v2068_v46 = vsel %vm2067_vm8, %v5265_v20, %v2064_v7  ;;  %v1783_v24 = vadd.f32 %v1775_v35, %v4716_v44 }
 0x7b6   :  { %v2130_v58 = vmul.f32 %v2068_v46, %v5188_v38 }
 0x7c8   :  { %v2025_v37 = vpop.xlane.xlu0 %2024 }
 0x7c9   :  { %v5272_v11 = vmax.f32 %v2025_v37, 1e-24 }
 0x7ca   :  { %v1659_v22 = vpop.xlane.xlu1 %1658 }
 0x7cb   :  { %3888 = vrsqrt.f32 %v5272_v11  ;;  %v5275_v31 = vmax.f32 %v1659_v22, 1e-24  ;;  %v1764_v22 = vmul.f32 %v1702_v33, %v5178_v42  ;;  %vm2075_vm1 = vweird.f32 %v5272_v11 }
 0x7cd   :  { %3890 = vrsqrt.f32 %v5275_v31  ;;  %v1776_v14 = vadd.f32 %v5239_v34, %v1764_v22  ;;  %vm1709_vm13 = vweird.f32 %v5275_v31 }
 0x7d1   :  { %v5285_v47 = vpop.eup %3888 }
 0x7d2   :  { %v2070_v13 = vmul.f32 %v5285_v47, %v5272_v11  ;;  %v1662_v10 = vpop.xlane.xlu2 %1661  ;;  %v2028_v18 = vpop.xlane.xlu1 %2027  ;;  %vm2076_vm3 = vweird.f32 %v5285_v47 }
 0x7d3   :  { %v3891_v32 = vpop.eup %3890  ;;  %v5301_v37 = vmax.f32 %v1662_v10, 1e-24  ;;  %v5303_v43 = vmax.f32 %v2028_v18, 1e-24  ;;  %vm5340_vm2 = vmor %vm2075_vm1, %vm2076_vm3 }
 0x7d4   :  { %v2071_v52 = vmul.f32 %v5285_v47, %v2070_v13  ;;  %v1704_v40 = vmul.f32 %v3891_v32, %v5275_v31  ;;  %vm1710_vm11 = vweird.f32 %v3891_v32 }
 0x7d5   :  { %3892 = vrsqrt.f32 %v5301_v37  ;;  %vm1711_vm0 = vmor %vm1709_vm13, %vm1710_vm11  ;;  %vm1719_vm13 = vweird.f32 %v5301_v37 }
 0x7d6   :  { %v2072_v19 = vmul.f32 0.5, %v2071_v52  ;;  %v1705_v45 = vmul.f32 %v3891_v32, %v1704_v40  ;;  %3894 = vrsqrt.f32 %v5303_v43  ;;  %v1784_v52 = vadd.f32 %v1776_v14, %v4718_v61 }
 0x7d8   :  { %v1706_v57 = vmul.f32 0.5, %v1705_v45  ;;  %v2073_v42 = vsub.f32 1.5, %v2072_v19 }
 0x7da   :  { %v1707_v39 = vsub.f32 1.5, %v1706_v57  ;;  %v5323_v54 = vpop.permute.xlu2 %2137  ;;  %v1665_v51 = vpop.xlane.xlu0 %1664  ;;  %v2074_v10 = vmul.f32 %v5285_v47, %v2073_v42 }
 0x7db   :  { %v3893_v60 = vpop.eup %3892  ;;  %v2140_v20 = vadd.f32 %v5323_v54, %v2129_v23  ;;  %v2141_v33 = vadd.f32 %v5323_v54, %v2130_v58  ;;  %v5327_v7 = vmax.f32 %v1665_v51, 1e-24 }
 0x7dc   :  { %v3895_v8 = vpop.eup %3894  ;;  %v1708_v13 = vmul.f32 %v3891_v32, %v1707_v39  ;;  %v1714_v38 = vmul.f32 %v3893_v60, %v5301_v37  ;;  %v2078_v57 = vsel %vm5340_vm2, %v5285_v47, %v2074_v10  ;;  %vm1720_vm8 = vweird.f32 %v3893_v60 }
 0x7dd   :  { %v2080_v18 = vmul.f32 %v3895_v8, %v5303_v43  ;;  %3896 = vrsqrt.f32 %v5327_v7  ;;  %v2148_v56 = vadd.f32 %v2140_v20, %v4716_v44  ;;  %v2149_v12 = vadd.f32 %v2141_v33, %v4718_v61  ;;  %vm1721_vm3 = vmor %vm1719_vm13, %vm1720_vm8 }
 0x7de   :  { %v1715_v40 = vmul.f32 %v3893_v60, %v1714_v38  ;;  %v1712_v31 = vsel %vm1711_vm0, %v3891_v32, %v1708_v13  ;;  %vm2086_vm11 = vweird.f32 %v3895_v8  ;;  %v2131_v47 = vmul.f32 %v2078_v57, %v5193_v41 }
 0x7df   :  { %v2081_v22 = vmul.f32 %v3895_v8, %v2080_v18  ;;  %v2156_v45 = vadd.f32 %v2148_v56, %v1783_v24  ;;  %v2157_v58 = vadd.f32 %v2149_v12, %v1784_v52  ;;  %v1765_v44 = vmul.f32 %v1712_v31, %v5197_v36 }
 0x7e0   :  { %v1716_v19 = vmul.f32 0.5, %v1715_v40  ;;  %vm2085_vm0 = vweird.f32 %v5303_v43  ;;  %v2142_v56 = vadd.f32 %v5323_v54, %v2131_v47  ;;  %vm1729_vm8 = vweird.f32 %v5327_v7 }
 0x7e1   :  { %v2082_v23 = vmul.f32 0.5, %v2081_v22  ;;  %v5348_v61 = vmul.f32 0.5, %v2156_v45  ;;  %v5356_v20 = vmul.f32 0.5, %v2157_v58  ;;  %v1777_v38 = vadd.f32 %v5239_v34, %v1765_v44  ;;  %vm2087_vm1 = vmor %vm2085_vm0, %vm2086_vm11 }
 0x7e2   :  { %v1717_v11 = vsub.f32 1.5, %v1716_v19  ;;  %v2031_v32 = vpop.xlane.xlu0 %2030  ;;  %v1668_v42 = vpop.xlane.xlu1 %1667  ;;  %v2150_v58 = vadd.f32 %v2142_v56, %v4869_v21 }
 0x7e3   :  { %v5350_v35 = vpop.eup %3896  ;;  %v2083_v14 = vsub.f32 1.5, %v2082_v23  ;;  %v5352_v39 = vmax.f32 %v2031_v32, 1e-24  ;;  %v5354_v51 = vmax.f32 %v1668_v42, 1e-24  ;;  %v2180_v24 = vmin.f32 %v5348_v61, 0.0 }
 0x7e4   :  { %v1718_v33 = vmul.f32 %v3893_v60, %v1717_v11  ;;  %v1724_v36 = vmul.f32 %v5350_v35, %v5327_v7  ;;  %v2181_v52 = vmin.f32 %v5356_v20, 0.0  ;;  %v1785_v46 = vadd.f32 %v1777_v38, %v4869_v21 }
 0x7e5   :  { %v2084_v13 = vmul.f32 %v3895_v8, %v2083_v14  ;;  %3898 = vrsqrt.f32 %v5352_v39  ;;  %v2188_v31 = vmul.f32 1.442695, %v2180_v24  ;;  %vm1730_vm2 = vweird.f32 %v5350_v35 }
 0x7e6   :  { %v1722_v10 = vsel %vm1721_vm3, %v3893_v60, %v1718_v33  ;;  %v1725_v41 = vmul.f32 %v5350_v35, %v1724_v36  ;;  %3900 = vrsqrt.f32 %v5354_v51  ;;  %v2158_v14 = vadd.f32 %v2150_v58, %v1785_v46  ;;  %vm5394_vm11 = vmor %vm1729_vm8, %vm1730_vm2 }
 0x7e7   :  { %v1766_v37 = vmul.f32 %v1722_v10, %v5207_v3  ;;  %v2088_v18 = vsel %vm2087_vm1, %v3895_v8, %v2084_v13  ;;  %3902 = vpow2.f32 %v2188_v31  ;;  %v2190_v8 = vmul.f32 1.442695, %v2181_v52 }
 0x7e8   :  { %v2132_v43 = vmul.f32 %v2088_v18, %v5203_v28  ;;  %v1726_v40 = vmul.f32 0.5, %v1725_v41  ;;  %v5401_v18 = vmul.f32 0.5, %v2158_v14  ;;  %vm2095_vm3 = vweird.f32 %v5352_v39 }
 0x7e9   :  { %v1778_v60 = vadd.f32 %v5239_v34, %v1766_v37  ;;  %vm1739_vm2 = vweird.f32 %v5354_v51  ;;  %vm2172_vm8 = vcmp.gt.f32.partialorder %v5348_v61, 0.0 }
 0x7ea   :  { %v1727_v22 = vsub.f32 1.5, %v1726_v40  ;;  %v5375_v12 = vpop.xlane.xlu0 %1670  ;;  %v2143_v45 = vadd.f32 %v5323_v54, %v2132_v43 }
 0x7eb   :  { %v3899_v19 = vpop.eup %3898  ;;  %v2034_v3 = vpop.xlane.xlu1 %2033  ;;  %v1786_v32 = vadd.f32 %v1778_v60, %v4872_v48 }
 0x7ec   :  { %v5379_v57 = vpop.eup %3900  ;;  %v2090_v28 = vmul.f32 %v3899_v19, %v5352_v39  ;;  %v5382_v23 = vmax.f32 %v2034_v3, 1e-24  ;;  %v1728_v44 = vmul.f32 %v5350_v35, %v1727_v22  ;;  %v2151_v21 = vadd.f32 %v2143_v45, %v4872_v48 }
 0x7ed   :  { %v1734_v11 = vmul.f32 %v5379_v57, %v5354_v51  ;;  %v3903_v13 = vpop.eup %3902  ;;  %vm2096_vm13 = vweird.f32 %v3899_v19  ;;  %vm1740_vm0 = vweird.f32 %v5379_v57 }
 0x7ee   :  { %v2091_v42 = vmul.f32 %v3899_v19, %v2090_v28  ;;  %3904 = vrsqrt.f32 %v5382_v23  ;;  %v1732_v38 = vsel %vm5394_vm11, %v5350_v35, %v1728_v44  ;;  %v2159_v41 = vadd.f32 %v2151_v21, %v1786_v32  ;;  %vm2097_vm1 = vmor %vm2095_vm3, %vm2096_vm13 }
 0x7ef   :  { %v1735_v47 = vmul.f32 %v5379_v57, %v1734_v11  ;;  %3906 = vpow2.f32 %v2190_v8  ;;  %v1767_v40 = vmul.f32 %v1732_v38, %v5215_v63  ;;  %v3545_v60 = vadd.f32 -1.0, %v3903_v13  ;;  %vm5421_vm11 = vmor %vm1739_vm2, %vm1740_vm0 }
 0x7f0   :  { %v2092_v36 = vmul.f32 0.5, %v2091_v42  ;;  %v2167_v39 = vmul.f32 0.5, %v2159_v41  ;;  %v2182_v8 = vmin.f32 %v5401_v18, 0.0  ;;  %vm2173_vm13 = vcmp.gt.f32.partialorder %v5356_v20, 0.0 }
 0x7f1   :  { %v1736_v10 = vmul.f32 0.5, %v1735_v47  ;;  %v1779_v28 = vadd.f32 %v5239_v34, %v1767_v40  ;;  %v5427_v44 = vsel %vm2172_vm8, %v5348_v61, %v3545_v60  ;;  %vm2105_vm0 = vweird.f32 %v5382_v23 }
 0x7f2   :  { %v2093_v37 = vsub.f32 1.5, %v2092_v36  ;;  %v2040_v7 = vpop.xlane.xlu0 %2039  ;;  %v2183_v32 = vmin.f32 %v2167_v39, 0.0  ;;  %v2192_v14 = vmul.f32 1.442695, %v2182_v8  ;;  %vm2175_vm2 = vcmp.gt.f32.partialorder %v2167_v39, 0.0 }
 0x7f3   :  { %v1737_v48 = vsub.f32 1.5, %v1736_v10  ;;  %v5405_v24 = vmax.f32 %v2040_v7, 1e-24  ;;  %v1674_v52 = vpop.xlane.xlu1 %1673  ;;  %v1787_v38 = vadd.f32 %v1779_v28, %v4886_v17  ;;  %vm2174_vm8 = vcmp.gt.f32.partialorder %v5401_v18, 0.0 }
 0x7f4   :  { %v3905_v43 = vpop.eup %3904  ;;  %v2094_v56 = vmul.f32 %v3899_v19, %v2093_v37  ;;  %v5408_v35 = vmax.f32 %v1674_v52, 1e-24  ;;  %v2194_v33 = vmul.f32 1.442695, %v2183_v32 }
 0x7f5   :  { %v3907_v31 = vpop.eup %3906  ;;  %v1738_v22 = vmul.f32 %v5379_v57, %v1737_v48  ;;  %v2100_v46 = vmul.f32 %v3905_v43, %v5382_v23  ;;  %3908 = vrsqrt.f32 %v5405_v24  ;;  %vm2106_vm3 = vweird.f32 %v3905_v43 }
 0x7f6   :  { %v2098_v3 = vsel %vm2097_vm1, %v3899_v19, %v2094_v56  ;;  %3910 = vrsqrt.f32 %v5408_v35  ;;  %v3546_v19 = vadd.f32 -1.0, %v3907_v31  ;;  %vm2107_vm1 = vmor %vm2105_vm0, %vm2106_vm3  ;;  %vm2125_vm3 = vweird.f32 %v5405_v24 }
 0x7f7   :  { %v2133_v63 = vmul.f32 %v2098_v3, %v5213_v49  ;;  %v2101_v45 = vmul.f32 %v3905_v43, %v2100_v46  ;;  %v1742_v51 = vsel %vm5421_vm11, %v5379_v57, %v1738_v22  ;;  %3912 = vpow2.f32 %v2192_v14 }
 0x7f8   :  { %v5434_v42 = vsel %vm2173_vm13, %v5356_v20, %v3546_v19  ;;  %v1768_v57 = vmul.f32 %v1742_v51, %v5224_v4  ;;  %3914 = vpow2.f32 %v2194_v33 }
 0x7f9   :  { %v2144_v49 = vadd.f32 %v5323_v54, %v2133_v63  ;;  %v2102_v11 = vmul.f32 0.5, %v2101_v45  ;;  %v2220_v61 = vpack.c.bf16 %v5434_v42, %v5427_v44 }
 0x7fa   :  { %v1780_v4 = vadd.f32 %v5239_v34, %v1768_v57 }
 0x7fb   :  { %v5436_v47 = vpop.eup %3908  ;;  %v2103_v21 = vsub.f32 1.5, %v2102_v11  ;;  %v2152_v36 = vadd.f32 %v2144_v49, %v4886_v17  ;;  %3561 = vmatmul.msk.bf16.vlgmr.msra.gmra.mxu0 %vm596_vm7, %v2220_v61  ;;  %v5454_v17 = vmax.f32 %v5375_v12, 1e-24 }
 0x7fc   :  { %v5441_v13 = vpop.eup %3910  ;;  %v2120_v37 = vmul.f32 %v5436_v47, %v5405_v24  ;;  %v1788_v46 = vadd.f32 %v1780_v4, %v4883_v6  ;;  %vm2126_vm11 = vweird.f32 %v5436_v47 }
 0x7fd   :  { %v2104_v10 = vmul.f32 %v3905_v43, %v2103_v21  ;;  %v2160_v20 = vadd.f32 %v2152_v36, %v1787_v38  ;;  %v1754_v7 = vmul.f32 %v5441_v13, %v5408_v35  ;;  %v3913_v52 = vpop.eup %3912  ;;  %3916 = vrsqrt.f32 %v5454_v17  ;;  %vm2127_vm0 = vmor %vm2125_vm3, %vm2126_vm11 }
 0x7fe   :  { %v3915_v56 = vpop.eup %3914  ;;  %v3547_v3 = vadd.f32 -1.0, %v3913_v52  ;;  %vm1760_vm13 = vweird.f32 %v5441_v13  ;;  %vm1749_vm3 = vweird.f32 %v5454_v17 }
 0x7ff   :  { %v2108_v41 = vsel %vm2107_vm1, %v3905_v43, %v2104_v10  ;;  %v2168_v48 = vmul.f32 0.5, %v2160_v20  ;;  %v2121_v43 = vmul.f32 %v5436_v47, %v2120_v37  ;;  %v1755_v60 = vmul.f32 %v5441_v13, %v1754_v7 }
 0x800   :  { %v2134_v23 = vmul.f32 %v2108_v41, %v5220_v53  ;;  %v3548_v22 = vadd.f32 -1.0, %v3915_v56  ;;  %v5467_v49 = vsel %vm2174_vm8, %v5401_v18, %v3547_v3  ;;  %vm1759_vm1 = vweird.f32 %v5408_v35 }
 0x801   :  { %v2184_v31 = vmin.f32 %v2168_v48, 0.0  ;;  %v2122_v53 = vmul.f32 0.5, %v2121_v43  ;;  %v1756_v63 = vmul.f32 0.5, %v1755_v60  ;;  %vm2176_vm11 = vcmp.gt.f32.partialorder %v2168_v48, 0.0 }
 0x802   :  { %v2145_v40 = vadd.f32 %v5323_v54, %v2134_v23  ;;  %v5463_v28 = vsel %vm2175_vm2, %v2167_v39, %v3548_v22  ;;  %vm1761_vm2 = vmor %vm1759_vm1, %vm1760_vm13 }
 0x803   :  { %v2196_v45 = vmul.f32 1.442695, %v2184_v31  ;;  %v3917_v19 = vpop.eup %3916  ;;  %v2123_v11 = vsub.f32 1.5, %v2122_v53  ;;  %v1757_v32 = vsub.f32 1.5, %v1756_v63 }
 0x804   :  { %v2153_v12 = vadd.f32 %v2145_v40, %v4883_v6  ;;  %v2221_v6 = vpack.c.bf16 %v5463_v28, %v5467_v49  ;;  %v1744_v21 = vmul.f32 %v3917_v19, %v5454_v17  ;;  %vm1750_vm13 = vweird.f32 %v3917_v19 }
 0x805   :  { %3918 = vpow2.f32 %v2196_v45  ;;  %v2124_v39 = vmul.f32 %v5436_v47, %v2123_v11  ;;  %v1758_v18 = vmul.f32 %v5441_v13, %v1757_v32 }
 0x806   :  { %v2161_v8 = vadd.f32 %v2153_v12, %v1788_v46  ;;  %v1745_v33 = vmul.f32 %v3917_v19, %v1744_v21  ;;  %v3638_v12 = vld [vmem:[%s6056_s14 + $0x18] sm:$0xff] }
 0x807   :  { %v2128_v36 = vsel %vm2127_vm0, %v5436_v47, %v2124_v39  ;;  %v1762_v57 = vsel %vm1761_vm2, %v5441_v13, %v1758_v18  ;;  %vm1751_vm0 = vmor %vm1749_vm3, %vm1750_vm13  ;;  %2381 = vmatpush.bf16.msra.mxu1 %v3638_v12 }
 0x808   :  { %v2169_v58 = vmul.f32 0.5, %v2161_v8  ;;  %v1746_v37 = vmul.f32 0.5, %v1745_v33  ;;  %v2136_v4 = vmul.f32 %v2128_v36, %v5247_v26  ;;  %v1770_v24 = vmul.f32 %v1762_v57, %v5251_v30  ;;  %v3637_v33 = vld [vmem:[%s6056_s14 + $0x10] sm:$0xff]  ;;  %v3636_v36 = vld [vmem:[%s6056_s14 + $0x8] sm:$0xff]  ;;  %v3635_v57 = vld [vmem:[%s6056_s14] sm:$0xff] }
 0x80a   :  { %v2185_v51 = vmin.f32 %v2169_v58, 0.0  ;;  %vm2177_vm8 = vcmp.gt.f32.partialorder %v2169_v58, 0.0  ;;  %v1747_v47 = vsub.f32 1.5, %v1746_v37  ;;  %v2147_v52 = vadd.f32 %v5323_v54, %v2136_v4 }
 0x80b   :  { %3562 = vmatmul.msk.bf16.gmra.mxu0 %vm596_vm7, %v2221_v6  ;;  %v3919_v61 = vpop.eup %3918  ;;  %v1782_v40 = vadd.f32 %v5239_v34, %v1770_v24  ;;  %2382 = vmatpush.bf16.msra.mxu1 %v3637_v33 }
 0x80c   :  { %v2198_v14 = vmul.f32 1.442695, %v2185_v51  ;;  %v3549_v41 = vadd.f32 -1.0, %v3919_v61  ;;  %v1748_v43 = vmul.f32 %v3917_v19, %v1747_v47  ;;  %v2155_v60 = vadd.f32 %v2147_v52, %v4891_v29 }
 0x80d   :  { %v1790_v30 = vadd.f32 %v1782_v40, %v4891_v29 }
 0x80e   :  { %3920 = vpow2.f32 %v2198_v14  ;;  %v5485_v35 = vsel %vm2176_vm11, %v2168_v48, %v3549_v41  ;;  %v1752_v31 = vsel %vm1751_vm0, %v3917_v19, %v1748_v43 }
 0x80f   :  { %v2163_v46 = vadd.f32 %v2155_v60, %v1790_v30  ;;  %v1769_v8 = vmul.f32 %v1752_v31, %v5234_v5  ;;  %2383 = vmatpush.bf16.msra.mxu1 %v3636_v36 }
 0x811   :  { %v2171_v29 = vmul.f32 0.5, %v2163_v46  ;;  %v1781_v17 = vadd.f32 %v5239_v34, %v1769_v8 }
 0x813   :  { %v2037_v38 = vpop.xlane.xlu2 %2036  ;;  %v2187_v19 = vmin.f32 %v2171_v29, 0.0  ;;  %v1789_v51 = vadd.f32 %v1781_v17, %v4893_v62  ;;  %vm2179_vm13 = vcmp.gt.f32.partialorder %v2171_v29, 0.0  ;;  %2384 = vmatpush.bf16.msra.mxu1 %v3635_v57 }
 0x814   :  { %v3921_v10 = vpop.eup %3920  ;;  %v2047_v20 = vmax.f32 %v2037_v38, 1e-24 }
 0x815   :  { %v3550_v7 = vadd.f32 -1.0, %v3921_v10  ;;  %v2202_v6 = vmul.f32 1.442695, %v2187_v19 }
 0x816   :  { %3922 = vrsqrt.f32 %v2047_v20  ;;  %vm2115_vm2 = vweird.f32 %v2047_v20 }
 0x817   :  { %v5483_v23 = vsel %vm2177_vm8, %v2169_v58, %v3550_v7  ;;  %3924 = vpow2.f32 %v2202_v6 }
 0x818   :  { %v2222_v13 = vpack.c.bf16 %v5483_v23, %v5485_v35 }
 0x81b   :  { %3563 = vmatmul.msk.bf16.gmra.mxu0 %vm596_vm7, %v2222_v13 }
 0x81c   :  { %v3923_v56 = vpop.eup %3922 }
 0x81d   :  { %v2110_v26 = vmul.f32 %v3923_v56, %v2047_v20  ;;  %vm2116_vm1 = vweird.f32 %v3923_v56  ;;  %v3925_v39 = vpop.eup %3924 }
 0x81e   :  { %vm2117_vm8 = vmor %vm2115_vm2, %vm2116_vm1  ;;  %v3552_v18 = vadd.f32 -1.0, %v3925_v39  ;;  %vm6166_vm1 = vcmask 523264  }
 0x81f   :  { %v2111_v48 = vmul.f32 %v3923_v56, %v2110_v26 }
 0x821   :  { %v2112_v22 = vmul.f32 0.5, %v2111_v48 }
 0x823   :  { %v2113_v3 = vsub.f32 1.5, %v2112_v22 }
 0x825   :  { %v2114_v53 = vmul.f32 %v3923_v56, %v2113_v3 }
 0x827   :  { %v2118_v63 = vsel %vm2117_vm8, %v3923_v56, %v2114_v53 }
 0x828   :  { %v2135_v45 = vmul.f32 %v2118_v63, %v5230_v15 }
 0x82a   :  { %v2146_v58 = vadd.f32 %v5323_v54, %v2135_v45  ;;  %v5506_v54 = vsel %vm2179_vm13, %v2171_v29, %v3552_v18 }
 0x82c   :  { %v2154_v11 = vadd.f32 %v2146_v58, %v4893_v62 }
 0x82e   :  { %v2162_v32 = vadd.f32 %v2154_v11, %v1789_v51 }
 0x830   :  { %v2170_v5 = vmul.f32 0.5, %v2162_v32 }
 0x832   :  { %v2186_v14 = vmin.f32 %v2170_v5, 0.0  ;;  %vm2178_vm11 = vcmp.gt.f32.partialorder %v2170_v5, 0.0 }
 0x834   :  { %v2200_v21 = vmul.f32 1.442695, %v2186_v14 }
 0x836   :  { %3926 = vpow2.f32 %v2200_v21 }
 0x83c   :  { %v3927_v61 = vpop.eup %3926 }
 0x83d   :  { %v3551_v34 = vadd.f32 -1.0, %v3927_v61 }
 0x83f   :  { %v5504_v15 = vsel %vm2178_vm11, %v2170_v5, %v3551_v34  ;;  %vm6167_vm11 = vmmov %vm6166_vm1 }
 0x840   :  { %v2223_v62 = vpack.c.bf16 %v5506_v54, %v5504_v15 }
 0x842   :  { %3564 = vmatmul.msk.bf16.gmra.mxu0 %vm596_vm7, %v2223_v62 }
 0x878   :  { %v2261_v38 = vpop.f32.mrf.mxu0 }
 0x879   :  { %v2289_v10 = vmul.f32 0.2, %v2261_v38  ;;  %vm2281_vm3 = vcmp.gt.f32.partialorder %v2261_v38, 0.0 }
 0x87b   :  { %v2297_v20 = vsel %vm2281_vm3, %v2261_v38, %v2289_v10 }
 0x87c   :  { %v2305_v7 = vpack.c.bf16 %v2297_v20, %v2297_v20  ;;  %v2406_v20 = vld [vmem:[%s6057_s15] sm:$0x1] }
 0x87e   :  { %v2329_v47 = vunpack.c.l.b16 %v2305_v7 }
 0x880   :  { %v2263_v41 = vpop.f32.mrf.mxu0 }
 0x881   :  { %vm2282_vm0 = vcmp.gt.f32.partialorder %v2263_v41, 0.0  ;;  %v2290_v37 = vmul.f32 0.2, %v2263_v41 }
 0x883   :  { %v2298_v4 = vsel %vm2282_vm0, %v2263_v41, %v2290_v37  ;;  %vm6168_vm0 = vmmov %vm6166_vm1 }
 0x884   :  { %v2306_v24 = vpack.c.bf16 %v2298_v4, %v2298_v4 }
 0x886   :  { %v2330_v13 = vunpack.c.l.b16 %v2306_v24 }
 0x888   :  { %v5520_v52 = vpack.c.b16 %v2330_v13, %v2329_v47  ;;  %v2266_v40 = vpop.f32.mrf.mxu0 }
 0x889   :  { %v2291_v56 = vmul.f32 0.2, %v2266_v40  ;;  %vm2283_vm2 = vcmp.gt.f32.partialorder %v2266_v40, 0.0 }
 0x88a   :  { %3581 = vmatmul.msk.bf16.vlgmr.msra.gmra.mxu1 %vm6166_vm1, %v5520_v52  ;;  %v2366_v10 = vsel %vm6168_vm0, %v5520_v52, 0 }
 0x88b   :  { %v2299_v43 = vsel %vm2283_vm2, %v2266_v40, %v2291_v56 }
 0x88c   :  { %v2307_v60 = vpack.c.bf16 %v2299_v43, %v2299_v43 }
 0x88e   :  { %v2331_v22 = vunpack.c.l.b16 %v2307_v60 }
 0x890   :  { %v2268_v26 = vpop.f32.mrf.mxu0 }
 0x891   :  { %vm2284_vm8 = vcmp.gt.f32.partialorder %v2268_v26, 0.0  ;;  %v2292_v30 = vmul.f32 0.2, %v2268_v26 }
 0x893   :  { %v2300_v48 = vsel %vm2284_vm8, %v2268_v26, %v2292_v30  ;;  %vm6169_vm8 = vmmov %vm6168_vm0 }
 0x894   :  { %v2308_v31 = vpack.c.bf16 %v2300_v48, %v2300_v48 }
 0x896   :  { %v2332_v46 = vunpack.c.l.b16 %v2308_v31 }
 0x898   :  { %v5524_v12 = vpack.c.b16 %v2332_v46, %v2331_v22  ;;  %v2271_v3 = vpop.f32.mrf.mxu0 }
 0x899   :  { %v2293_v8 = vmul.f32 0.2, %v2271_v3  ;;  %vm2285_vm13 = vcmp.gt.f32.partialorder %v2271_v3, 0.0 }
 0x89a   :  { %3582 = vmatmul.msk.bf16.gmra.mxu1 %vm6167_vm11, %v5524_v12  ;;  %vm6170_vm11 = vmmov %vm6168_vm0 }
 0x89b   :  { %v2301_v53 = vsel %vm2285_vm13, %v2271_v3, %v2293_v8  ;;  %vm6171_vm13 = vmmov %vm6168_vm0 }
 0x89c   :  { %v2309_v17 = vpack.c.bf16 %v2301_v53, %v2301_v53 }
 0x89e   :  { %v2333_v19 = vunpack.c.l.b16 %v2309_v17 }
 0x8a0   :  { %v2273_v29 = vpop.f32.mrf.mxu0 }
 0x8a1   :  { %vm2286_vm3 = vcmp.gt.f32.partialorder %v2273_v29, 0.0  ;;  %v2294_v63 = vmul.f32 0.2, %v2273_v29 }
 0x8a3   :  { %v2302_v45 = vsel %vm2286_vm3, %v2273_v29, %v2294_v63  ;;  %vm6172_vm3 = vmmov %vm6168_vm0 }
 0x8a4   :  { %v2310_v58 = vpack.c.bf16 %v2302_v45, %v2302_v45  ;;  %v2369_v38 = vsel %vm6172_vm3, %v5524_v12, 0  ;;  %vm6175_vm3 = vmmov %vm6168_vm0 }
 0x8a6   :  { %v2334_v51 = vunpack.c.l.b16 %v2310_v58 }
 0x8a8   :  { %v5528_v11 = vpack.c.b16 %v2334_v51, %v2333_v19 }
 0x8aa   :  { %3583 = vmatmul.msk.bf16.gmra.mxu1 %vm6168_vm0, %v5528_v11  ;;  %v2372_v57 = vsel %vm6171_vm13, %v5528_v11, 0 }
 0x8bf   :  { %v2276_v32 = vpop.f32.mrf.mxu0 }
 0x8c0   :  { %v2295_v6 = vmul.f32 0.2, %v2276_v32  ;;  %vm2287_vm1 = vcmp.gt.f32.partialorder %v2276_v32, 0.0 }
 0x8c2   :  { %v2303_v5 = vsel %vm2287_vm1, %v2276_v32, %v2295_v6  ;;  %vm6173_vm1 = vmmov %vm6168_vm0 }
 0x8c3   :  { %v2311_v39 = vpack.c.bf16 %v2303_v5, %v2303_v5 }
 0x8c5   :  { %v2335_v34 = vunpack.c.l.b16 %v2311_v39 }
 0x8c7   :  { %v2278_v14 = vpop.f32.mrf.mxu0 }
 0x8c8   :  { %vm2288_vm2 = vcmp.gt.f32.partialorder %v2278_v14, 0.0  ;;  %v2296_v21 = vmul.f32 0.2, %v2278_v14 }
 0x8ca   :  { %v2304_v18 = vsel %vm2288_vm2, %v2278_v14, %v2296_v21 }
 0x8cb   :  { %v2312_v61 = vpack.c.bf16 %v2304_v18, %v2304_v18 }
 0x8cd   :  { %v2336_v62 = vunpack.c.l.b16 %v2312_v61 }
 0x8cf   :  { %v2340_v33 = vpack.c.b16 %v2336_v62, %v2335_v34 }
 0x8d1   :  { %2960 = vrot.lane.b32.xlu0 %v2340_v33, %s4024_s24  ;;  %3584 = vmatmul.msk.bf16.gmra.mxu1 %vm6169_vm8, %v2340_v33  ;;  %v2375_v36 = vsel %vm6170_vm11, %v2340_v33, 0  ;;  %vm6174_vm8 = vmmov %vm6168_vm0 }
 0x8d2   :  { %2616 = vmatpush.bf16.msrb.mxu2 %v2340_v33  ;;  %2414 = vmatpush.bf16.xpose.msrb.mxu3 %v2375_v36 }
 0x8d6   :  { %2617 = vmatpush.bf16.msrb.mxu2 %v5528_v11 }
 0x8da   :  { %2618 = vmatpush.bf16.msrb.mxu2 %v5524_v12  ;;  %2415 = vmatpush.bf16.xpose.msrb.mxu3 %v2372_v57 }
 0x8de   :  { %2619 = vmatpush.bf16.msrb.mxu2 %v5520_v52 }
 0x8e2   :  { %2416 = vmatpush.bf16.xpose.msrb.mxu3 %v2369_v38 }
 0x8ea   :  { %2417 = vmatpush.bf16.xpose.msrb.mxu3 %v2366_v10 }
 0x8f1   :  { %3585 = vmatmul.msk.bf16.vlgmr.msrb.gmra.mxu3 %vm6173_vm1, %v2406_v20 }
 0x907   :  { %v2386_v41 = vpop.f32.mrf.mxu1 }
 0x908   :  { %2425 = vperm.xlu1 %3663, %v2386_v41  }
 0x90f   :  { %v2388_v37 = vpop.f32.mrf.mxu1 }
 0x910   :  { %3665 = vset.pattern.permute.xlu1 %v4025_v0  ;;  %2430 = vperm.xlu0 %3666, %v2388_v37  }
 0x911   :  { %2790 = vperm.xlu1 %3665, %v2386_v41  }
 0x917   :  { %v2391_v7 = vpop.f32.mrf.mxu1 }
 0x918   :  { %2435 = vperm.xlu2 %3667, %v2391_v7   ;;  %3668 = vset.pattern.permute.xlu0 %v4025_v0 }
 0x919   :  { %2794 = vperm.xlu1 %3665, %v2388_v37   ;;  %2798 = vperm.xlu0 %3668, %v2391_v7  }
 0x91f   :  { %v2393_v4 = vpop.f32.mrf.mxu1 }
 0x921   :  { %3669 = vset.pattern.permute.xlu1 %v4026_v1 }
 0x922   :  { %2440 = vperm.xlu1 %3669, %v2393_v4  }
 0x927   :  { %v2396_v24 = vpop.f32.mrf.mxu1 }
 0x928   :  { %2806 = vperm.xlu0 %3668, %v2396_v24  }
 0x92a   :  { %3670 = vset.pattern.permute.xlu1 %v4025_v0 }
 0x92b   :  { %2802 = vperm.xlu1 %3670, %v2393_v4  }
 0x92f   :  { %v2398_v47 = vpop.f32.mrf.mxu1 }
 0x930   :  { %2450 = vperm.xlu2 %3667, %v2398_v47   ;;  %3673 = vset.pattern.permute.xlu0 %v4026_v1 }
 0x933   :  { %3671 = vset.pattern.permute.xlu1 %v4026_v1 }
 0x934   :  { %2445 = vperm.xlu1 %3671, %v2396_v24  }
 0x938   :  { %3674 = vset.pattern.permute.xlu2 %v4025_v0 }
 0x93c   :  { %3672 = vset.pattern.permute.xlu1 %v4025_v0 }
 0x93d   :  { %2810 = vperm.xlu1 %3672, %v2398_v47  }
 0x943   :  { %v2961_v13 = vpop.permute.xlu0 %2960 }
 0x944   :  { %2982 = vmatpush.bf16.msra.mxu3 %v2961_v13 }
 0x945   :  { %3675 = vset.pattern.permute.xlu1 %v4026_v1 }
 0x94e   :  { %v2401_v40 = vpop.f32.mrf.mxu1 }
 0x94f   :  { %2814 = vperm.xlu2 %3674, %v2401_v40   ;;  %2455 = vperm.xlu0 %3673, %v2401_v40  }
 0x956   :  { %v2403_v56 = vpop.f32.mrf.mxu1 }
 0x957   :  { %2460 = vperm.xlu1 %3675, %v2403_v56   ;;  %3697 = vset.pattern.permute.xlu0 %v4025_v0 }
 0x95f   :  { %3676 = vset.pattern.permute.xlu1 %v4025_v0 }
 0x960   :  { %2818 = vperm.xlu1 %3676, %v2403_v56  }
 0x972   :  { %v2436_v6 = vpop.permute.xlu2 %2435 }
 0x974   :  { %v2419_v43 = vpop.f32.mrf.mxu3 }
 0x975   :  { %v5559_v26 = vperm.slane %v2419_v43, 0  ;;  %v5562_v22 = vperm.slane %v2419_v43, 1 }
 0x977   :  { %v2466_v61 = vadd.f32 %v5559_v26, %v2436_v6 }
 0x979   :  { %v2482_v36 = vmul.f32 0.2, %v2466_v61 }
 0x97a   :  { %v2426_v30 = vpop.permute.xlu1 %2425 }
 0x97b   :  { %v2464_v48 = vadd.f32 %v5559_v26, %v2426_v30 }
 0x97c   :  { %v2421_v60 = vpop.f32.mrf.mxu3 }
 0x97d   :  { %vm2472_vm2 = vcmp.gt.f32.partialorder %v2464_v48, 0.0  ;;  %v2480_v31 = vmul.f32 0.2, %v2464_v48 }
 0x97f   :  { %v2488_v1 = vsel %vm2472_vm2, %v2464_v48, %v2480_v31 }
 0x980   :  { %v5566_v46 = vsel %vm4283_vm14, %v2488_v1, -9e+15 }
 0x981   :  { %v2504_v0 = vsel %vm6174_vm8, %v5566_v46, -inf  ;;  %vm6176_vm8 = vmmov %vm6168_vm0 }
 0x982   :  { %v2431_v3 = vpop.permute.xlu0 %2430  ;;  %2505 = vmax.xlane.f32.xlu2 %v2504_v0 }
 0x983   :  { %v2465_v8 = vadd.f32 %v5559_v26, %v2431_v3  ;;  %v2791_v53 = vpop.permute.xlu1 %2790 }
 0x984   :  { %v2822_v29 = vadd.f32 %v5562_v22, %v2791_v53 }
 0x985   :  { %vm2473_vm11 = vcmp.gt.f32.partialorder %v2465_v8, 0.0  ;;  %v2481_v63 = vmul.f32 0.2, %v2465_v8 }
 0x986   :  { %vm2830_vm13 = vcmp.gt.f32.partialorder %v2822_v29, 0.0  ;;  %v2838_v17 = vmul.f32 0.2, %v2822_v29 }
 0x987   :  { %v2489_v45 = vsel %vm2473_vm11, %v2465_v8, %v2481_v63  ;;  %vm6177_vm11 = vmmov %vm6168_vm0 }
 0x988   :  { %v5574_v58 = vsel %vm4310_vm6, %v2489_v45, -9e+15  ;;  %v2846_v19 = vsel %vm2830_vm13, %v2822_v29, %v2838_v17 }
 0x989   :  { %v2507_v51 = vsel %vm6175_vm3, %v5574_v58, -inf  ;;  %v5580_v32 = vsel %vm4283_vm14, %v2846_v19, -9e+15  ;;  %vm2474_vm14 = vcmp.gt.f32.partialorder %v2466_v61, 0.0  ;;  %vm6179_vm3 = vmmov %vm6168_vm0 }
 0x98a   :  { %2508 = vmax.xlane.f32.xlu0 %v2507_v51  ;;  %v2862_v5 = vsel %vm6168_vm0, %v5580_v32, -inf  ;;  %v2490_v37 = vsel %vm2474_vm14, %v2466_v61, %v2482_v36  ;;  %v2451_v56 = vpop.permute.xlu2 %2450 }
 0x98b   :  { %v2799_v14 = vpop.permute.xlu0 %2798  ;;  %v2795_v21 = vpop.permute.xlu1 %2794  ;;  %2863 = vmax.xlane.f32.xlu1 %v2862_v5  ;;  %v5602_v16 = vsel %vm4303_vm4, %v2490_v37, -9e+15  ;;  %v2469_v48 = vadd.f32 %v5559_v26, %v2451_v56 }
 0x98c   :  { %v2824_v39 = vadd.f32 %v5562_v22, %v2799_v14  ;;  %v2823_v18 = vadd.f32 %v5562_v22, %v2795_v21 }
 0x98d   :  { %v2485_v53 = vmul.f32 0.2, %v2469_v48 }
 0x98e   :  { %vm2832_vm1 = vcmp.gt.f32.partialorder %v2824_v39, 0.0  ;;  %v2840_v34 = vmul.f32 0.2, %v2824_v39  ;;  %vm2831_vm2 = vcmp.gt.f32.partialorder %v2823_v18, 0.0  ;;  %v2839_v50 = vmul.f32 0.2, %v2823_v18 }
 0x990   :  { %v2848_v62 = vsel %vm2832_vm1, %v2824_v39, %v2840_v34  ;;  %v2847_v33 = vsel %vm2831_vm2, %v2823_v18, %v2839_v50  ;;  %vm6180_vm1 = vmmov %vm6179_vm3  ;;  %vm2477_vm2 = vcmp.gt.f32.partialorder %v2469_v48, 0.0 }
 0x991   :  { %v5589_v57 = vsel %vm4303_vm4, %v2848_v62, -9e+15  ;;  %v5593_v38 = vsel %vm4310_vm6, %v2847_v33, -9e+15  ;;  %vm6178_vm6 = vmmov %vm6168_vm0  ;;  %v2493_v19 = vsel %vm2477_vm2, %v2469_v48, %v2485_v53 }
 0x992   :  { %v2868_v10 = vsel %vm6176_vm8, %v5589_v57, -inf  ;;  %v2865_v20 = vsel %vm6177_vm11, %v5593_v38, -inf  ;;  %v2510_v47 = vsel %vm6178_vm6, %v5602_v16, -inf  ;;  %vm6181_vm14 = vmmov %vm6180_vm1  ;;  %v5630_v5 = vsel %vm4389_vm10, %v2493_v19, -9e+15 }
 0x993   :  { %2869 = vmax.xlane.f32.xlu0 %v2868_v10  ;;  %2866 = vmax.xlane.f32.xlu2 %v2865_v20  ;;  %vm6182_vm11 = vmmov %vm6180_vm1 }
 0x994   :  { %v2441_v41 = vpop.permute.xlu1 %2440  ;;  %v2519_v2 = vsel %vm6182_vm11, %v5630_v5, -inf  ;;  %vm6187_vm2 = vmmov %vm6180_vm1 }
 0x995   :  { %v2467_v7 = vadd.f32 %v5559_v26, %v2441_v41  ;;  %vm6191_vm11 = vmmov %vm6180_vm1 }
 0x997   :  { %vm2475_vm13 = vcmp.gt.f32.partialorder %v2467_v7, 0.0  ;;  %v2483_v4 = vmul.f32 0.2, %v2467_v7 }
 0x999   :  { %v2491_v24 = vsel %vm2475_vm13, %v2467_v7, %v2483_v4 }
 0x99a   :  { %v5608_v13 = vsel %vm4346_vm12, %v2491_v24, -9e+15  ;;  %v2807_v40 = vpop.permute.xlu0 %2806 }
 0x99b   :  { %2511 = vmax.xlane.f32.xlu2 %v2510_v47  ;;  %v2513_v43 = vsel %vm6179_vm3, %v5608_v13, -inf  ;;  %v2826_v30 = vadd.f32 %v5562_v22, %v2807_v40  ;;  %vm6185_vm3 = vmmov %vm6180_vm1 }
 0x99c   :  { %2514 = vmax.xlane.f32.xlu1 %v2513_v43 }
 0x99d   :  { %v2803_v9 = vpop.permute.xlu1 %2802  ;;  %vm2834_vm4 = vcmp.gt.f32.partialorder %v2826_v30, 0.0  ;;  %v2842_v60 = vmul.f32 0.2, %v2826_v30 }
 0x99e   :  { %v2825_v31 = vadd.f32 %v5562_v22, %v2803_v9 }
 0x99f   :  { %v2850_v1 = vsel %vm2834_vm4, %v2826_v30, %v2842_v60 }
 0x9a0   :  { %vm2833_vm0 = vcmp.gt.f32.partialorder %v2825_v31, 0.0  ;;  %v2841_v0 = vmul.f32 0.2, %v2825_v31  ;;  %v5617_v3 = vsel %vm4365_vm5, %v2850_v1, -9e+15 }
 0x9a1   :  { %v2874_v8 = vsel %vm6180_vm1, %v5617_v3, -inf }
 0x9a2   :  { %v2849_v29 = vsel %vm2833_vm0, %v2825_v31, %v2841_v0  ;;  %2875 = vmax.xlane.f32.xlu0 %v2874_v8 }
 0x9a3   :  { %v5623_v63 = vsel %vm4346_vm12, %v2849_v29, -9e+15  ;;  %vm6183_vm12 = vmmov %vm6180_vm1 }
 0x9a4   :  { %v2871_v17 = vsel %vm6181_vm14, %v5623_v63, -inf  ;;  %vm6189_vm14 = vmmov %vm6180_vm1 }
 0x9a5   :  { %2872 = vmax.xlane.f32.xlu2 %v2871_v17 }
 0x9a6   :  { %v2446_v45 = vpop.permute.xlu1 %2445 }
 0x9a7   :  { %v2468_v51 = vadd.f32 %v5559_v26, %v2446_v45 }
 0x9a9   :  { %vm2476_vm8 = vcmp.gt.f32.partialorder %v2468_v51, 0.0  ;;  %v2484_v6 = vmul.f32 0.2, %v2468_v51  ;;  %v2815_v18 = vpop.permute.xlu2 %2814 }
 0x9aa   :  { %v2828_v50 = vadd.f32 %v5562_v22, %v2815_v18 }
 0x9ab   :  { %v2492_v14 = vsel %vm2476_vm8, %v2468_v51, %v2484_v6  ;;  %vm6190_vm8 = vmmov %vm6180_vm1 }
 0x9ac   :  { %v5636_v21 = vsel %vm4365_vm5, %v2492_v14, -9e+15  ;;  %v2844_v33 = vmul.f32 0.2, %v2828_v50  ;;  %vm2836_vm6 = vcmp.gt.f32.partialorder %v2828_v50, 0.0  ;;  %vm6184_vm5 = vmmov %vm6180_vm1 }
 0x9ad   :  { %2520 = vmax.xlane.f32.xlu2 %v2519_v2  ;;  %v2516_v39 = vsel %vm6183_vm12, %v5636_v21, -inf  ;;  %vm6192_vm12 = vmmov %vm6180_vm1 }
 0x9ae   :  { %2517 = vmax.xlane.f32.xlu1 %v2516_v39  ;;  %v2852_v20 = vsel %vm2836_vm6, %v2828_v50, %v2844_v33  ;;  %vm6194_vm6 = vmmov %vm6180_vm1 }
 0x9af   :  { %v2811_v61 = vpop.permute.xlu1 %2810  ;;  %v5650_v41 = vsel %vm4414_vm15, %v2852_v20, -9e+15 }
 0x9b0   :  { %v2827_v34 = vadd.f32 %v5562_v22, %v2811_v61  ;;  %v2880_v37 = vsel %vm6185_vm3, %v5650_v41, -inf  ;;  %vm6196_vm3 = vmmov %vm6180_vm1 }
 0x9b2   :  { %vm2835_vm13 = vcmp.gt.f32.partialorder %v2827_v34, 0.0  ;;  %v2843_v62 = vmul.f32 0.2, %v2827_v34 }
 0x9b4   :  { %v2851_v36 = vsel %vm2835_vm13, %v2827_v34, %v2843_v62  ;;  %vm6193_vm13 = vmmov %vm6180_vm1 }
 0x9b5   :  { %v5644_v27 = vsel %vm4389_vm10, %v2851_v36, -9e+15  ;;  %vm6186_vm10 = vmmov %vm6180_vm1 }
 0x9b6   :  { %v2877_v10 = vsel %vm6184_vm5, %v5644_v27, -inf  ;;  %vm6195_vm5 = vmmov %vm6180_vm1 }
 0x9b7   :  { %2878 = vmax.xlane.f32.xlu1 %v2877_v10 }
 0x9bf   :  { %2881 = vmax.xlane.f32.xlu1 %v2880_v37 }
 0x9c1   :  { %v2456_v7 = vpop.permute.xlu0 %2455 }
 0x9c2   :  { %v2470_v4 = vadd.f32 %v5559_v26, %v2456_v7 }
 0x9c4   :  { %vm2478_vm4 = vcmp.gt.f32.partialorder %v2470_v4, 0.0  ;;  %v2486_v59 = vmul.f32 0.2, %v2470_v4 }
 0x9c6   :  { %v2494_v24 = vsel %vm2478_vm4, %v2470_v4, %v2486_v59  ;;  %vm6197_vm4 = vmmov %vm6180_vm1 }
 0x9c7   :  { %v5657_v47 = vsel %vm4414_vm15, %v2494_v24, -9e+15 }
 0x9c8   :  { %v2522_v40 = vsel %vm6186_vm10, %v5657_v47, -inf  ;;  %vm6198_vm10 = vmmov %vm6180_vm1 }
 0x9c9   :  { %2523 = vmax.xlane.f32.xlu2 %v2522_v40  ;;  %v2461_v56 = vpop.permute.xlu1 %2460 }
 0x9ca   :  { %v2471_v43 = vadd.f32 %v5559_v26, %v2461_v56 }
 0x9cc   :  { %vm2479_vm0 = vcmp.gt.f32.partialorder %v2471_v43, 0.0  ;;  %v2487_v30 = vmul.f32 0.2, %v2471_v43 }
 0x9ce   :  { %v2495_v9 = vsel %vm2479_vm0, %v2471_v43, %v2487_v30  ;;  %vm6199_vm0 = vmmov %vm6180_vm1 }
 0x9cf   :  { %v5664_v60 = vsel %vm4384_vm9, %v2495_v9, -9e+15 }
 0x9d0   :  { %v2525_v48 = vsel %vm6180_vm1, %v5664_v60, -inf }
 0x9d1   :  { %2526 = vmax.xlane.f32.xlu0 %v2525_v48 }
 0x9d2   :  { %v2819_v25 = vpop.permute.xlu1 %2818 }
 0x9d3   :  { %v2829_v31 = vadd.f32 %v5562_v22, %v2819_v25 }
 0x9d5   :  { %vm2837_vm15 = vcmp.gt.f32.partialorder %v2829_v31, 0.0  ;;  %v2845_v1 = vmul.f32 0.2, %v2829_v31 }
 0x9d7   :  { %v2853_v0 = vsel %vm2837_vm15, %v2829_v31, %v2845_v1  ;;  %vm6201_vm15 = vmmov %vm6199_vm0 }
 0x9d8   :  { %v5671_v26 = vsel %vm4384_vm9, %v2853_v0, -9e+15  ;;  %vm6188_vm9 = vmmov %vm6180_vm1 }
 0x9d9   :  { %v2883_v8 = vsel %vm6187_vm2, %v5671_v26, -inf  ;;  %vm6200_vm1 = vmmov %vm6199_vm0 }
 0x9da   :  { %2884 = vmax.xlane.f32.xlu2 %v2883_v8  ;;  %vm6202_vm2 = vmmov %vm6199_vm0 }
 0x9e5   :  { %2954 = vrot.lane.b32.xlu0 %v5520_v52, %s4024_s24 }
 0x9f5   :  { %v2506_v53 = vpop.xlane.xlu2 %2505 }
 0x9f6   :  { %v2528_v29 = vsub.f32 %v5566_v46, %v2506_v53 }
 0x9f8   :  { %v2536_v17 = vmul.f32 1.442695, %v2528_v29 }
 0x9fa   :  { %3928 = vpow2.f32 %v2536_v17 }
 0x9fd   :  { %v2509_v22 = vpop.xlane.xlu0 %2508 }
 0x9fe   :  { %v2529_v45 = vsub.f32 %v5574_v58, %v2509_v22  ;;  %v2864_v19 = vpop.xlane.xlu1 %2863 }
 0x9ff   :  { %v2886_v55 = vsub.f32 %v5580_v32, %v2864_v19 }
 0xa00   :  { %v5680_v51 = vpop.eup %3928  ;;  %v2538_v6 = vmul.f32 1.442695, %v2529_v45 }
 0xa01   :  { %v2894_v14 = vmul.f32 1.442695, %v2886_v55  ;;  %v2552_v2 = vsel %vm6188_vm9, %v5680_v51, 0.0  ;;  %vm6203_vm9 = vmmov %vm6199_vm0 }
 0xa02   :  { %3930 = vpow2.f32 %v2538_v6  ;;  %2553 = vadd.xlane.f32.xlu1 %v2552_v2 }
 0xa03   :  { %3932 = vpow2.f32 %v2894_v14 }
 0xa06   :  { %v2867_v52 = vpop.xlane.xlu2 %2866  ;;  %v2870_v1 = vpop.xlane.xlu0 %2869 }
 0xa07   :  { %v2887_v46 = vsub.f32 %v5593_v38, %v2867_v52 }
 0xa08   :  { %v5685_v39 = vpop.eup %3930 }
 0xa09   :  { %v5687_v18 = vpop.eup %3932  ;;  %v2896_v58 = vmul.f32 1.442695, %v2887_v46  ;;  %v2555_v32 = vsel %vm6189_vm14, %v5685_v39, 0.0  ;;  %vm6204_vm14 = vmmov %vm6199_vm0 }
 0xa0a   :  { %2556 = vadd.xlane.f32.xlu2 %v2555_v32  ;;  %v2910_v61 = vsel %vm6190_vm8, %v5687_v18, 0.0  ;;  %vm6205_vm8 = vmmov %vm6199_vm0 }
 0xa0b   :  { %2911 = vadd.xlane.f32.xlu1 %v2910_v61  ;;  %3934 = vpow2.f32 %v2896_v58 }
 0xa0e   :  { %v2512_v34 = vpop.xlane.xlu2 %2511 }
 0xa0f   :  { %v2530_v50 = vsub.f32 %v5602_v16, %v2512_v34  ;;  %v2515_v20 = vpop.xlane.xlu1 %2514 }
 0xa11   :  { %v2540_v62 = vmul.f32 1.442695, %v2530_v50  ;;  %v5694_v33 = vpop.eup %3934 }
 0xa12   :  { %v2913_v38 = vsel %vm6191_vm11, %v5694_v33, 0.0  ;;  %vm6206_vm11 = vmmov %vm6199_vm0 }
 0xa13   :  { %3936 = vpow2.f32 %v2540_v62  ;;  %2914 = vadd.xlane.f32.xlu2 %v2913_v38 }
 0xa15   :  { %v2876_v29 = vpop.xlane.xlu0 %2875 }
 0xa16   :  { %v2890_v17 = vsub.f32 %v5617_v3, %v2876_v29 }
 0xa18   :  { %v2873_v36 = vpop.xlane.xlu2 %2872  ;;  %v2902_v45 = vmul.f32 1.442695, %v2890_v17 }
 0xa19   :  { %v5698_v10 = vpop.eup %3936  ;;  %v2889_v37 = vsub.f32 %v5623_v63, %v2873_v36 }
 0xa1a   :  { %v2558_v7 = vsel %vm6192_vm12, %v5698_v10, 0.0  ;;  %vm6207_vm12 = vmmov %vm6199_vm0 }
 0xa1b   :  { %v2900_v4 = vmul.f32 1.442695, %v2889_v37  ;;  %2559 = vadd.xlane.f32.xlu0 %v2558_v7 }
 0xa1d   :  { %3938 = vpow2.f32 %v2900_v4 }
 0xa20   :  { %v2521_v19 = vpop.xlane.xlu2 %2520 }
 0xa21   :  { %v2518_v16 = vpop.xlane.xlu1 %2517 }
 0xa22   :  { %v2532_v59 = vsub.f32 %v5636_v21, %v2518_v16 }
 0xa23   :  { %v5704_v24 = vpop.eup %3938 }
 0xa24   :  { %v2544_v40 = vmul.f32 1.442695, %v2532_v59  ;;  %v2919_v56 = vsel %vm6193_vm13, %v5704_v24, 0.0  ;;  %2958 = vrot.lane.b32.xlu1 %v5528_v11, %s4024_s24  ;;  %vm6208_vm13 = vmmov %vm6199_vm0 }
 0xa25   :  { %2920 = vadd.xlane.f32.xlu0 %v2919_v56 }
 0xa26   :  { %3940 = vpow2.f32 %v2544_v40 }
 0xa2a   :  { %v2879_v63 = vpop.xlane.xlu1 %2878 }
 0xa2b   :  { %v2891_v43 = vsub.f32 %v5644_v27, %v2879_v63  ;;  %2956 = vrot.lane.b32.xlu2 %v5524_v12, %s4024_s24  ;;  %v2888_v12 = vsub.f32 %v5589_v57, %v2870_v1  ;;  %v2533_v57 = vsub.f32 %v5630_v5, %v2521_v19 }
 0xa2c   :  { %v5711_v30 = vpop.eup %3940 }
 0xa2d   :  { %v2904_v21 = vmul.f32 1.442695, %v2891_v43  ;;  %v2564_v9 = vsel %vm6194_vm6, %v5711_v30, 0.0  ;;  %v2898_v53 = vmul.f32 1.442695, %v2888_v12  ;;  %vm6209_vm6 = vmmov %vm6199_vm0 }
 0xa2e   :  { %2565 = vadd.xlane.f32.xlu0 %v2564_v9 }
 0xa2f   :  { %3942 = vpow2.f32 %v2904_v21 }
 0xa32   :  { %v2882_v48 = vpop.xlane.xlu1 %2881 }
 0xa33   :  { %v2892_v25 = vsub.f32 %v5650_v41, %v2882_v48  ;;  %v2531_v41 = vsub.f32 %v5608_v13, %v2515_v20  ;;  %v2546_v13 = vmul.f32 1.442695, %v2533_v57 }
 0xa35   :  { %v5718_v11 = vpop.eup %3942  ;;  %v2906_v31 = vmul.f32 1.442695, %v2892_v25  ;;  %v2542_v22 = vmul.f32 1.442695, %v2531_v41 }
 0xa36   :  { %v2925_v27 = vsel %vm6195_vm5, %v5718_v11, 0.0  ;;  %vm6210_vm5 = vmmov %vm6199_vm0 }
 0xa37   :  { %3944 = vpow2.f32 %v2906_v31  ;;  %2926 = vadd.xlane.f32.xlu0 %v2925_v27 }
 0xa38   :  { %3946 = vpow2.f32 %v2898_v53 }
 0xa39   :  { %3948 = vpow2.f32 %v2542_v22 }
 0xa3a   :  { %3950 = vpow2.f32 %v2902_v45 }
 0xa3b   :  { %3952 = vpow2.f32 %v2546_v13 }
 0xa3c   :  { %v2524_v52 = vpop.xlane.xlu2 %2523 }
 0xa3d   :  { %v5723_v0 = vpop.eup %3944  ;;  %v2534_v32 = vsub.f32 %v5657_v47, %v2524_v52 }
 0xa3e   :  { %v2928_v8 = vsel %vm6196_vm3, %v5723_v0, 0.0  ;;  %v5729_v6 = vpop.eup %3946  ;;  %vm6211_vm3 = vmmov %vm6199_vm0 }
 0xa3f   :  { %2929 = vadd.xlane.f32.xlu0 %v2928_v8  ;;  %v2916_v2 = vsel %vm6197_vm4, %v5729_v6, 0.0  ;;  %v5735_v3 = vpop.eup %3948  ;;  %v2548_v61 = vmul.f32 1.442695, %v2534_v32 }
 0xa40   :  { %v5737_v58 = vpop.eup %3950  ;;  %v2561_v5 = vsel %vm6198_vm10, %v5735_v3, 0.0 }
 0xa41   :  { %v5744_v50 = vpop.eup %3952 }
 0xa42   :  { %v2567_v47 = vsel %vm6200_vm1, %v5744_v50, 0.0 }
 0xa44   :  { %v2527_v55 = vpop.xlane.xlu0 %2526 }
 0xa45   :  { %v2535_v14 = vsub.f32 %v5664_v60, %v2527_v55  ;;  %v2922_v60 = vsel %vm6199_vm0, %v5737_v58, 0.0 }
 0xa47   :  { %v2550_v46 = vmul.f32 1.442695, %v2535_v14 }
 0xa49   :  { %3954 = vpow2.f32 %v2550_v46 }
 0xa4a   :  { %3956 = vpow2.f32 %v2548_v61 }
 0xa4d   :  { %v2885_v34 = vpop.xlane.xlu2 %2884 }
 0xa4e   :  { %2917 = vadd.xlane.f32.xlu1 %v2916_v2  ;;  %v2893_v38 = vsub.f32 %v5671_v26, %v2885_v34 }
 0xa4f   :  { %v5746_v62 = vpop.eup %3954 }
 0xa50   :  { %v2573_v36 = vsel %vm6201_vm15, %v5746_v62, 0.0  ;;  %v2908_v20 = vmul.f32 1.442695, %v2893_v38  ;;  %v5753_v37 = vpop.eup %3956 }
 0xa51   :  { %v2570_v7 = vsel %vm6202_vm2, %v5753_v37, 0.0 }
 0xa52   :  { %3958 = vpow2.f32 %v2908_v20 }
 0xa54   :  { %2562 = vadd.xlane.f32.xlu2 %v2561_v5 }
 0xa56   :  { %2923 = vadd.xlane.f32.xlu1 %v2922_v60 }
 0xa58   :  { %v5757_v4 = vpop.eup %3958 }
 0xa59   :  { %v2931_v26 = vsel %vm6203_vm9, %v5757_v4, 0.0 }
 0xa5c   :  { %2568 = vadd.xlane.f32.xlu2 %v2567_v47 }
 0xa5e   :  { %2574 = vadd.xlane.f32.xlu1 %v2573_v36 }
 0xa64   :  { %2571 = vadd.xlane.f32.xlu2 %v2570_v7 }
 0xa6c   :  { %2932 = vadd.xlane.f32.xlu2 %v2931_v26 }
 0xa75   :  { %v2554_v16 = vpop.xlane.xlu1 %2553 }
 0xa76   :  { %3960 = vrcp.f32 %v2554_v16 }
 0xa7c   :  { %v3961_v40 = vpop.eup %3960 }
 0xa7d   :  { %v2557_v59 = vpop.xlane.xlu2 %2556  ;;  %v2584_v63 = vmul.f32 %v3961_v40, %v5680_v51  ;;  %v2955_v51 = vpop.permute.xlu0 %2954 }
 0xa7e   :  { %3962 = vrcp.f32 %v2557_v59  ;;  %v2912_v9 = vpop.xlane.xlu1 %2911 }
 0xa7f   :  { %3964 = vrcp.f32 %v2912_v9 }
 0xa84   :  { %v3963_v56 = vpop.eup %3962 }
 0xa85   :  { %v2585_v43 = vmul.f32 %v3963_v56, %v5685_v39  ;;  %v3965_v31 = vpop.eup %3964 }
 0xa86   :  { %v2915_v48 = vpop.xlane.xlu2 %2914  ;;  %v2942_v12 = vmul.f32 %v3965_v31, %v5687_v18 }
 0xa87   :  { %v2592_v21 = vpack.c.bf16 %v2585_v43, %v2584_v63  ;;  %3966 = vrcp.f32 %v2915_v48 }
 0xa89   :  { %3586 = vmatmul.msk.bf16.vlgmr.msrb.gmra.mxu2 %vm6204_vm14, %v2592_v21 }
 0xa8d   :  { %v3967_v27 = vpop.eup %3966 }
 0xa8e   :  { %v2957_v1 = vpop.permute.xlu2 %2956  ;;  %v2943_v8 = vmul.f32 %v3967_v27, %v5694_v33  ;;  %v2560_v53 = vpop.xlane.xlu0 %2559 }
 0xa90   :  { %v2950_v39 = vpack.c.bf16 %v2943_v8, %v2942_v12 }
 0xa96   :  { %v2959_v25 = vpop.permute.xlu1 %2958 }
 0xa97   :  { %2983 = vmatpush.bf16.msra.mxu3 %v2959_v25 }
 0xa98   :  { %v2921_v29 = vpop.xlane.xlu0 %2920 }
 0xa99   :  { %3968 = vrcp.f32 %v2921_v29 }
 0xa9b   :  { %2984 = vmatpush.bf16.msra.mxu3 %v2957_v1 }
 0xa9f   :  { %2985 = vmatpush.bf16.msra.mxu3 %v2955_v51  ;;  %v3969_v22 = vpop.eup %3968 }
 0xaa0   :  { %v2945_v33 = vmul.f32 %v3969_v22, %v5704_v24 }
 0xaa1   :  { %v2566_v17 = vpop.xlane.xlu0 %2565 }
 0xaa2   :  { %3590 = vmatmul.msk.bf16.vlgmr.msra.gmra.mxu3 %vm6205_vm8, %v2950_v39 }
 0xaaa   :  { %v2927_v2 = vpop.xlane.xlu0 %2926 }
 0xab2   :  { %v2930_v20 = vpop.xlane.xlu0 %2929 }
 0xac1   :  { %v2918_v41 = vpop.xlane.xlu1 %2917 }
 0xac2   :  { %3970 = vrcp.f32 %v2918_v41 }
 0xac3   :  { %3972 = vrcp.f32 %v2560_v53 }
 0xac7   :  { %v2563_v19 = vpop.xlane.xlu2 %2562 }
 0xac8   :  { %v3971_v45 = vpop.eup %3970  ;;  %3974 = vrcp.f32 %v2563_v19 }
 0xac9   :  { %v2944_v18 = vmul.f32 %v3971_v45, %v5729_v6  ;;  %v2924_v55 = vpop.xlane.xlu1 %2923  ;;  %v3973_v14 = vpop.eup %3972 }
 0xaca   :  { %3976 = vrcp.f32 %v2924_v55  ;;  %v2586_v46 = vmul.f32 %v3973_v14, %v5698_v10 }
 0xacb   :  { %v2951_v57 = vpack.c.bf16 %v2945_v33, %v2944_v18  ;;  %3978 = vrcp.f32 %v2927_v2 }
 0xacd   :  { %3591 = vmatmul.msk.bf16.gmra.mxu3 %vm6206_vm11, %v2951_v57 }
 0xace   :  { %v3975_v13 = vpop.eup %3974 }
 0xacf   :  { %v2569_v52 = vpop.xlane.xlu2 %2568  ;;  %v2587_v32 = vmul.f32 %v3975_v13, %v5735_v3 }
 0xad0   :  { %v3977_v60 = vpop.eup %3976  ;;  %3980 = vrcp.f32 %v2569_v52 }
 0xad1   :  { %v2593_v5 = vpack.c.bf16 %v2587_v32, %v2586_v46  ;;  %v3979_v24 = vpop.eup %3978  ;;  %3982 = vrcp.f32 %v2566_v17  ;;  %v2946_v6 = vmul.f32 %v3977_v60, %v5737_v58  ;;  %v2575_v26 = vpop.xlane.xlu1 %2574 }
 0xad2   :  { %v2947_v34 = vmul.f32 %v3979_v24, %v5718_v11  ;;  %3984 = vrcp.f32 %v2930_v20 }
 0xad3   :  { %3587 = vmatmul.msk.bf16.gmra.mxu2 %vm6207_vm12, %v2593_v5 }
 0xad4   :  { %v2952_v47 = vpack.c.bf16 %v2947_v34, %v2946_v6 }
 0xad6   :  { %v3981_v38 = vpop.eup %3980 }
 0xad7   :  { %v2572_v61 = vpop.xlane.xlu2 %2571  ;;  %v3983_v36 = vpop.eup %3982  ;;  %v2589_v10 = vmul.f32 %v3981_v38, %v5744_v50  ;;  %v5851_v38 = vld [vmem:[%s6058_s16] ss:$0 sm:$0xff] }
 0xad8   :  { %v2588_v7 = vmul.f32 %v3983_v36, %v5711_v30  ;;  %v3985_v11 = vpop.eup %3984 }
 0xad9   :  { %v2948_v40 = vmul.f32 %v3985_v11, %v5723_v0 }
 0xada   :  { %v2594_v16 = vpack.c.bf16 %v2589_v10, %v2588_v7 }
 0xadd   :  { %3592 = vmatmul.msk.bf16.gmra.mxu3 %vm6208_vm13, %v2952_v47 }
 0xadf   :  { %v2933_v3 = vpop.xlane.xlu2 %2932 }
 0xae0   :  { %3986 = vrcp.f32 %v2933_v3 }
 0xae1   :  { %3988 = vrcp.f32 %v2575_v26 }
 0xae2   :  { %3990 = vrcp.f32 %v2572_v61 }
 0xae3   :  { %3588 = vmatmul.msk.bf16.gmra.mxu2 %vm6209_vm6, %v2594_v16 }
 0xae6   :  { %v3987_v58 = vpop.eup %3986 }
 0xae7   :  { %v2949_v59 = vmul.f32 %v3987_v58, %v5757_v4  ;;  %v3989_v56 = vpop.eup %3988 }
 0xae8   :  { %v3991_v63 = vpop.eup %3990  ;;  %v2591_v43 = vmul.f32 %v3989_v56, %v5746_v62 }
 0xae9   :  { %v2953_v50 = vpack.c.bf16 %v2949_v59, %v2948_v40  ;;  %v2590_v30 = vmul.f32 %v3991_v63, %v5753_v37 }
 0xaeb   :  { %v2595_v21 = vpack.c.bf16 %v2591_v43, %v2590_v30 }
 0xaed   :  { %3593 = vmatmul.msk.bf16.gmra.mxu3 %vm6210_vm5, %v2953_v50 }
 0xaf3   :  { %3589 = vmatmul.msk.bf16.gmra.mxu2 %vm6211_vm3, %v2595_v21 }
 0xb0c   :  { %v5785_v9 = vpop.f32.mrf.mxu2 }
 0xb0d   :  { %v2641_v48 = vmul.f32 %v5785_v9, %v5785_v9 }
 0xb0f   :  { %v2649_v4 = vsel %vm596_vm7, %v2641_v48, 0.0 }
 0xb10   :  { %2650 = vadd.xlane.f32.xlu1 %v2649_v4 }
 0xb14   :  { %v5790_v0 = vpop.f32.mrf.mxu2 }
 0xb15   :  { %v2642_v25 = vmul.f32 %v5790_v0, %v5790_v0 }
 0xb17   :  { %v2652_v37 = vsel %vm596_vm7, %v2642_v25, 0.0 }
 0xb18   :  { %2653 = vadd.xlane.f32.xlu0 %v2652_v37 }
 0xb25   :  { %v5795_v62 = vpop.f32.mrf.mxu3 }
 0xb26   :  { %v3007_v31 = vmul.f32 %v5795_v62, %v5795_v62 }
 0xb28   :  { %v3015_v27 = vsel %vm596_vm7, %v3007_v31, 0.0 }
 0xb29   :  { %3016 = vadd.xlane.f32.xlu2 %v3015_v27 }
 0xb2d   :  { %v5800_v1 = vpop.f32.mrf.mxu3 }
 0xb2e   :  { %v3008_v12 = vmul.f32 %v5800_v1, %v5800_v1 }
 0xb30   :  { %v3018_v8 = vsel %vm596_vm7, %v3008_v12, 0.0 }
 0xb31   :  { %3019 = vadd.xlane.f32.xlu1 %v3018_v8 }
 0xb50   :  { %v5805_v51 = vpop.f32.mrf.mxu3 }
 0xb51   :  { %v3009_v39 = vmul.f32 %v5805_v51, %v5805_v51 }
 0xb53   :  { %v3021_v53 = vsel %vm596_vm7, %v3009_v39, 0.0  ;;  %v3640_v39 = vld [vmem:[%s6060_s17 + $0x8] sm:$0xff] }
 0xb54   :  { %3022 = vadd.xlane.f32.xlu1 %v3021_v53  ;;  %3212 = vmatpush.bf16.msrb.mxu0 %v3640_v39 }
 0xb56   :  { %v5810_v29 = vpop.f32.mrf.mxu2 }
 0xb57   :  { %v2643_v41 = vmul.f32 %v5810_v29, %v5810_v29 }
 0xb58   :  { %v5814_v17 = vpop.f32.mrf.mxu3 }
 0xb59   :  { %v2655_v22 = vsel %vm596_vm7, %v2643_v41, 0.0  ;;  %v3010_v45 = vmul.f32 %v5814_v17, %v5814_v17 }
 0xb5a   :  { %2656 = vadd.xlane.f32.xlu0 %v2655_v22 }
 0xb5b   :  { %v3024_v33 = vsel %vm596_vm7, %v3010_v45, 0.0 }
 0xb5e   :  { %v5819_v19 = vpop.f32.mrf.mxu2 }
 0xb5f   :  { %v2644_v18 = vmul.f32 %v5819_v19, %v5819_v19 }
 0xb60   :  { %v5824_v55 = vpop.f32.mrf.mxu3 }
 0xb61   :  { %v2658_v57 = vsel %vm596_vm7, %v2644_v18, 0.0  ;;  %v3011_v46 = vmul.f32 %v5824_v55, %v5824_v55 }
 0xb62   :  { %2659 = vadd.xlane.f32.xlu2 %v2658_v57  ;;  %3025 = vadd.xlane.f32.xlu0 %v3024_v33  ;;  %v3639_v57 = vld [vmem:[%s6060_s17] sm:$0xff] }
 0xb63   :  { %v3027_v6 = vsel %vm596_vm7, %v3011_v46, 0.0  ;;  %3213 = vmatpush.bf16.msrb.mxu0 %v3639_v57 }
 0xb66   :  { %v5827_v14 = vpop.f32.mrf.mxu2 }
 0xb67   :  { %v2645_v2 = vmul.f32 %v5827_v14, %v5827_v14 }
 0xb68   :  { %v5831_v13 = vpop.f32.mrf.mxu3 }
 0xb69   :  { %v2661_v52 = vsel %vm596_vm7, %v2645_v2, 0.0  ;;  %v3012_v61 = vmul.f32 %v5831_v13, %v5831_v13 }
 0xb6a   :  { %2662 = vadd.xlane.f32.xlu1 %v2661_v52 }
 0xb6b   :  { %v3030_v36 = vsel %vm596_vm7, %v3012_v61, 0.0 }
 0xb6e   :  { %v5836_v32 = vpop.f32.mrf.mxu2 }
 0xb6f   :  { %v2646_v5 = vmul.f32 %v5836_v32, %v5836_v32 }
 0xb70   :  { %v5840_v60 = vpop.f32.mrf.mxu3 }
 0xb71   :  { %v2664_v24 = vsel %vm596_vm7, %v2646_v5, 0.0  ;;  %v3013_v58 = vmul.f32 %v5840_v60, %v5840_v60 }
 0xb72   :  { %2665 = vadd.xlane.f32.xlu0 %v2664_v24  ;;  %3028 = vadd.xlane.f32.xlu1 %v3027_v6 }
 0xb73   :  { %v3033_v59 = vsel %vm596_vm7, %v3013_v58, 0.0 }
 0xb76   :  { %v5846_v34 = vpop.f32.mrf.mxu2 }
 0xb77   :  { %v2647_v47 = vmul.f32 %v5846_v34, %v5846_v34 }
 0xb78   :  { %v5857_v10 = vpop.f32.mrf.mxu3 }
 0xb79   :  { %v2667_v20 = vsel %vm596_vm7, %v2647_v47, 0.0  ;;  %v3014_v3 = vmul.f32 %v5857_v10, %v5857_v10 }
 0xb7a   :  { %3135 = vrot.lane.b32.xlu2 %v5851_v38, %s4024_s24  ;;  %3031 = vadd.xlane.f32.xlu0 %v3030_v36 }
 0xb7b   :  { %2668 = vadd.xlane.f32.xlu1 %v2667_v20  ;;  %v3036_v16 = vsel %vm596_vm7, %v3014_v3, 0.0 }
 0xb7e   :  { %v5863_v7 = vpop.f32.mrf.mxu2 }
 0xb7f   :  { %v2648_v26 = vmul.f32 %v5863_v7, %v5863_v7 }
 0xb81   :  { %v2670_v11 = vsel %vm596_vm7, %v2648_v26, 0.0 }
 0xb82   :  { %2671 = vadd.xlane.f32.xlu0 %v2670_v11 }
 0xb83   :  { %3037 = vadd.xlane.f32.xlu1 %v3036_v16  ;;  %v2651_v40 = vpop.xlane.xlu1 %2650 }
 0xb84   :  { %v2673_v56 = vmax.f32 %v2651_v40, 1e-24 }
 0xb86   :  { %3992 = vrsqrt.f32 %v2673_v56  ;;  %vm2687_vm10 = vweird.f32 %v2673_v56 }
 0xb8b   :  { %v2654_v63 = vpop.xlane.xlu0 %2653 }
 0xb8c   :  { %v2674_v50 = vmax.f32 %v2654_v63, 1e-24  ;;  %v3993_v4 = vpop.eup %3992 }
 0xb8d   :  { %v2682_v37 = vmul.f32 %v3993_v4, %v2673_v56  ;;  %vm2688_vm4 = vweird.f32 %v3993_v4 }
 0xb8e   :  { %3994 = vrsqrt.f32 %v2674_v50  ;;  %vm2689_vm0 = vmor %vm2687_vm10, %vm2688_vm4  ;;  %vm2697_vm15 = vweird.f32 %v2674_v50 }
 0xb8f   :  { %v2683_v12 = vmul.f32 %v3993_v4, %v2682_v37 }
 0xb91   :  { %v2684_v41 = vmul.f32 0.5, %v2683_v12 }
 0xb93   :  { %v2685_v52 = vsub.f32 1.5, %v2684_v41 }
 0xb94   :  { %v3995_v25 = vpop.eup %3994 }
 0xb95   :  { %v2692_v31 = vmul.f32 %v3995_v25, %v2674_v50  ;;  %v2686_v6 = vmul.f32 %v3993_v4, %v2685_v52  ;;  %vm2698_vm1 = vweird.f32 %v3995_v25 }
 0xb96   :  { %vm2699_vm2 = vmor %vm2697_vm15, %vm2698_vm1 }
 0xb97   :  { %v2693_v53 = vmul.f32 %v3995_v25, %v2692_v31  ;;  %v2690_v11 = vsel %vm2689_vm0, %v3993_v4, %v2686_v6 }
 0xb98   :  { %v2761_v63 = vmul.f32 %v2690_v11, %v5785_v9 }
 0xb99   :  { %v2694_v2 = vmul.f32 0.5, %v2693_v53 }
 0xb9a   :  { %v2773_v53 = vadd.f32 %v5851_v38, %v2761_v63 }
 0xb9b   :  { %v2695_v24 = vsub.f32 1.5, %v2694_v2 }
 0xb9c   :  { %v3017_v30 = vpop.xlane.xlu2 %3016  ;;  %v2781_v52 = vadd.f32 %v2773_v53, %v5427_v44 }
 0xb9d   :  { %v3039_v21 = vmax.f32 %v3017_v30, 1e-24  ;;  %v2696_v26 = vmul.f32 %v3995_v25, %v2695_v24 }
 0xb9f   :  { %3996 = vrsqrt.f32 %v3039_v21  ;;  %v2700_v30 = vsel %vm2699_vm2, %v3995_v25, %v2696_v26  ;;  %vm3053_vm8 = vweird.f32 %v3039_v21 }
 0xba0   :  { %v2762_v9 = vmul.f32 %v2700_v30, %v5790_v0 }
 0xba3   :  { %3034 = vadd.xlane.f32.xlu2 %v3033_v59 }
 0xba4   :  { %v3020_v43 = vpop.xlane.xlu1 %3019 }
 0xba5   :  { %v5872_v48 = vmax.f32 %v3020_v43, 1e-24  ;;  %v5875_v27 = vpop.eup %3996 }
 0xba6   :  { %v3048_v22 = vmul.f32 %v5875_v27, %v3039_v21  ;;  %vm3054_vm9 = vweird.f32 %v5875_v27 }
 0xba7   :  { %3998 = vrsqrt.f32 %v5872_v48  ;;  %vm3055_vm11 = vmor %vm3053_vm8, %vm3054_vm9  ;;  %vm3063_vm12 = vweird.f32 %v5872_v48 }
 0xba8   :  { %v3049_v46 = vmul.f32 %v5875_v27, %v3048_v22 }
 0xbaa   :  { %v3050_v61 = vmul.f32 0.5, %v3049_v46 }
 0xbac   :  { %v3051_v58 = vsub.f32 1.5, %v3050_v61 }
 0xbad   :  { %v5877_v8 = vpop.eup %3998 }
 0xbae   :  { %v3058_v45 = vmul.f32 %v5877_v8, %v5872_v48  ;;  %v3052_v43 = vmul.f32 %v5875_v27, %v3051_v58  ;;  %vm3064_vm14 = vweird.f32 %v5877_v8 }
 0xbaf   :  { %vm3065_vm13 = vmor %vm3063_vm12, %vm3064_vm14 }
 0xbb0   :  { %v3059_v5 = vmul.f32 %v5877_v8, %v3058_v45  ;;  %v3056_v22 = vsel %vm3055_vm11, %v5875_v27, %v3052_v43 }
 0xbb1   :  { %v3127_v57 = vmul.f32 %v3056_v22, %v5795_v62 }
 0xbb2   :  { %v3060_v47 = vmul.f32 0.5, %v3059_v5 }
 0xbb4   :  { %v3061_v59 = vsub.f32 1.5, %v3060_v47 }
 0xbb6   :  { %v3062_v37 = vmul.f32 %v5877_v8, %v3061_v59 }
 0xbb8   :  { %v3066_v21 = vsel %vm3065_vm13, %v5877_v8, %v3062_v37 }
 0xbb9   :  { %v3128_v48 = vmul.f32 %v3066_v21, %v5800_v1 }
 0xbc7   :  { %v3023_v18 = vpop.xlane.xlu1 %3022 }
 0xbc8   :  { %v5885_v33 = vmax.f32 %v3023_v18, 1e-24  ;;  %v2774_v18 = vadd.f32 %v5851_v38, %v2762_v9 }
 0xbca   :  { %4000 = vrsqrt.f32 %v5885_v33  ;;  %vm3073_vm3 = vweird.f32 %v5885_v33  ;;  %v2782_v61 = vadd.f32 %v2774_v18, %v5434_v42 }
 0xbcd   :  { %v2657_v36 = vpop.xlane.xlu0 %2656 }
 0xbce   :  { %v2675_v20 = vmax.f32 %v2657_v36, 1e-24 }
 0xbd0   :  { %v5893_v3 = vpop.eup %4000  ;;  %4002 = vrsqrt.f32 %v2675_v20  ;;  %vm2707_vm4 = vweird.f32 %v2675_v20 }
 0xbd1   :  { %v3068_v16 = vmul.f32 %v5893_v3, %v5885_v33  ;;  %vm3074_vm6 = vweird.f32 %v5893_v3 }
 0xbd2   :  { %vm3075_vm10 = vmor %vm3073_vm3, %vm3074_vm6 }
 0xbd3   :  { %v3069_v40 = vmul.f32 %v5893_v3, %v3068_v16 }
 0xbd5   :  { %v3070_v56 = vmul.f32 0.5, %v3069_v40  ;;  %v2660_v31 = vpop.xlane.xlu2 %2659  ;;  %v3026_v4 = vpop.xlane.xlu0 %3025 }
 0xbd6   :  { %v4003_v12 = vpop.eup %4002  ;;  %v5903_v50 = vmax.f32 %v2660_v31, 1e-24  ;;  %v5905_v39 = vmax.f32 %v3026_v4, 1e-24 }
 0xbd7   :  { %v2702_v25 = vmul.f32 %v4003_v12, %v2675_v20  ;;  %v3071_v41 = vsub.f32 1.5, %v3070_v56  ;;  %vm2708_vm5 = vweird.f32 %v4003_v12 }
 0xbd8   :  { %4004 = vrsqrt.f32 %v5903_v50  ;;  %vm2709_vm0 = vmor %vm2707_vm4, %vm2708_vm5  ;;  %vm2717_vm2 = vweird.f32 %v5903_v50  ;;  %vm3083_vm9 = vweird.f32 %v5905_v39 }
 0xbd9   :  { %v2703_v45 = vmul.f32 %v4003_v12, %v2702_v25  ;;  %4006 = vrsqrt.f32 %v5905_v39  ;;  %v3072_v2 = vmul.f32 %v5893_v3, %v3071_v41 }
 0xbdb   :  { %v2704_v0 = vmul.f32 0.5, %v2703_v45  ;;  %v3076_v26 = vsel %vm3075_vm10, %v5893_v3, %v3072_v2 }
 0xbdc   :  { %v3129_v30 = vmul.f32 %v3076_v26, %v5805_v51 }
 0xbdd   :  { %v2705_v46 = vsub.f32 1.5, %v2704_v0  ;;  %v5920_v27 = vpop.permute.xlu2 %3135  ;;  %v2663_v8 = vpop.xlane.xlu1 %2662 }
 0xbde   :  { %v4005_v5 = vpop.eup %4004  ;;  %v3138_v24 = vadd.f32 %v5920_v27, %v3127_v57  ;;  %v3139_v62 = vadd.f32 %v5920_v27, %v3128_v48  ;;  %v5925_v6 = vmax.f32 %v2663_v8, 1e-24  ;;  %v3140_v51 = vadd.f32 %v5920_v27, %v3129_v30 }
 0xbdf   :  { %v4007_v1 = vpop.eup %4006  ;;  %v2706_v47 = vmul.f32 %v4003_v12, %v2705_v46  ;;  %v2712_v36 = vmul.f32 %v4005_v5, %v5903_v50  ;;  %vm2718_vm1 = vweird.f32 %v4005_v5 }
 0xbe0   :  { %v3078_v33 = vmul.f32 %v4007_v1, %v5905_v39  ;;  %v3146_v16 = vadd.f32 %v3138_v24, %v5427_v44  ;;  %v3147_v11 = vadd.f32 %v3139_v62, %v5434_v42  ;;  %4008 = vrsqrt.f32 %v5925_v6  ;;  %vm2719_vm14 = vmor %vm2717_vm2, %vm2718_vm1 }
 0xbe1   :  { %v2710_v58 = vsel %vm2709_vm0, %v4003_v12, %v2706_v47  ;;  %v2713_v59 = vmul.f32 %v4005_v5, %v2712_v36  ;;  %vm3084_vm15 = vweird.f32 %v4007_v1  ;;  %vm2727_vm13 = vweird.f32 %v5925_v6 }
 0xbe2   :  { %v3079_v40 = vmul.f32 %v4007_v1, %v3078_v33  ;;  %v3154_v20 = vadd.f32 %v3146_v16, %v2781_v52  ;;  %v3155_v63 = vadd.f32 %v3147_v11, %v2782_v61  ;;  %v2763_v43 = vmul.f32 %v2710_v58, %v5810_v29  ;;  %vm3085_vm8 = vmor %vm3083_vm9, %vm3084_vm15 }
 0xbe3   :  { %v2714_v56 = vmul.f32 0.5, %v2713_v59  ;;  %v3148_v52 = vadd.f32 %v3140_v51, %v5467_v49 }
 0xbe4   :  { %v3080_v37 = vmul.f32 0.5, %v3079_v40  ;;  %v3162_v3 = vmul.f32 0.5, %v3154_v20  ;;  %v3163_v31 = vmul.f32 0.5, %v3155_v63  ;;  %v2775_v29 = vadd.f32 %v5851_v38, %v2763_v43 }
 0xbe5   :  { %v2715_v4 = vsub.f32 1.5, %v2714_v56  ;;  %v2666_v44 = vpop.xlane.xlu0 %2665  ;;  %v3029_v42 = vpop.xlane.xlu1 %3028 }
 0xbe6   :  { %v3081_v12 = vsub.f32 1.5, %v3080_v37  ;;  %v5938_v9 = vmax.f32 %v2666_v44, 1e-24  ;;  %v3043_v25 = vmax.f32 %v3029_v42, 1e-24  ;;  %v3170_v53 = vpack.c.bf16 %v3163_v31, %v3162_v3  ;;  %v5940_v41 = vpop.eup %4008 }
 0xbe7   :  { %v2716_v22 = vmul.f32 %v4005_v5, %v2715_v4  ;;  %v2722_v45 = vmul.f32 %v5940_v41, %v5925_v6  ;;  %v2783_v2 = vadd.f32 %v2775_v29, %v5467_v49  ;;  %vm2728_vm11 = vweird.f32 %v5940_v41 }
 0xbe8   :  { %v3082_v21 = vmul.f32 %v4007_v1, %v3081_v12  ;;  %4010 = vrsqrt.f32 %v5938_v9  ;;  %3602 = vmatmul.msk.bf16.vlgmr.msrb.gmra.mxu0 %vm596_vm7, %v3170_v53  ;;  %vm2729_vm5 = vmor %vm2727_vm13, %vm2728_vm11  ;;  %vm3093_vm3 = vweird.f32 %v3043_v25  ;;  %vm2737_vm4 = vweird.f32 %v5938_v9 }
 0xbe9   :  { %v2720_v18 = vsel %vm2719_vm14, %v4005_v5, %v2716_v22  ;;  %4012 = vrsqrt.f32 %v3043_v25  ;;  %v2723_v0 = vmul.f32 %v5940_v41, %v2722_v45  ;;  %v3156_v36 = vadd.f32 %v3148_v52, %v2783_v2 }
 0xbea   :  { %v2764_v50 = vmul.f32 %v2720_v18, %v5819_v19  ;;  %v3086_v39 = vsel %vm3085_vm8, %v4007_v1, %v3082_v21 }
 0xbeb   :  { %v3130_v57 = vmul.f32 %v3086_v39, %v5814_v17  ;;  %v2724_v46 = vmul.f32 0.5, %v2723_v0  ;;  %v3164_v40 = vmul.f32 0.5, %v3156_v36 }
 0xbec   :  { %v2776_v48 = vadd.f32 %v5851_v38, %v2764_v50 }
 0xbed   :  { %v3032_v8 = vpop.xlane.xlu0 %3031  ;;  %v3141_v5 = vadd.f32 %v5920_v27, %v3130_v57  ;;  %v2725_v26 = vsub.f32 1.5, %v2724_v46 }
 0xbee   :  { %v4011_v24 = vpop.eup %4010  ;;  %v3044_v62 = vmax.f32 %v3032_v8, 1e-24  ;;  %v2784_v61 = vadd.f32 %v2776_v48, %v5463_v28  ;;  %v2669_v49 = vpop.xlane.xlu1 %2668 }
 0xbef   :  { %v4013_v19 = vpop.eup %4012  ;;  %v2732_v1 = vmul.f32 %v4011_v24, %v5938_v9  ;;  %v3149_v47 = vadd.f32 %v3141_v5, %v5463_v28  ;;  %v2726_v63 = vmul.f32 %v5940_v41, %v2725_v26  ;;  %vm2738_vm6 = vweird.f32 %v4011_v24 }
 0xbf0   :  { %v3088_v17 = vmul.f32 %v4013_v19, %v3043_v25  ;;  %4014 = vrsqrt.f32 %v3044_v62  ;;  %vm3094_vm12 = vweird.f32 %v4013_v19  ;;  %vm2739_vm0 = vmor %vm2737_vm4, %vm2738_vm6  ;;  %vm3103_vm15 = vweird.f32 %v3044_v62 }
 0xbf1   :  { %v2733_v33 = vmul.f32 %v4011_v24, %v2732_v1  ;;  %v3157_v11 = vadd.f32 %v3149_v47, %v2784_v61  ;;  %v2730_v4 = vsel %vm2729_vm5, %v5940_v41, %v2726_v63  ;;  %vm3095_vm10 = vmor %vm3093_vm3, %vm3094_vm12  ;;  %v2679_v57 = vmax.f32 %v2669_v49, 1e-24 }
 0xbf2   :  { %v3089_v16 = vmul.f32 %v4013_v19, %v3088_v17  ;;  %v2765_v51 = vmul.f32 %v2730_v4, %v5827_v14 }
 0xbf3   :  { %v2734_v58 = vmul.f32 0.5, %v2733_v33  ;;  %v3165_v20 = vmul.f32 0.5, %v3157_v11  ;;  %vm2747_vm5 = vweird.f32 %v2679_v57 }
 0xbf4   :  { %v3090_v59 = vmul.f32 0.5, %v3089_v16  ;;  %v2777_v50 = vadd.f32 %v5851_v38, %v2765_v51 }
 0xbf5   :  { %v2735_v30 = vsub.f32 1.5, %v2734_v58  ;;  %v3171_v28 = vpack.c.bf16 %v3165_v20, %v3164_v40  ;;  %v2672_v22 = vpop.xlane.xlu0 %2671 }
 0xbf6   :  { %v4015_v56 = vpop.eup %4014  ;;  %v3091_v43 = vsub.f32 1.5, %v3090_v59  ;;  %v3038_v29 = vpop.xlane.xlu1 %3037  ;;  %v2680_v45 = vmax.f32 %v2672_v22, 1e-24  ;;  %v2785_v48 = vadd.f32 %v2777_v50, %v5485_v35 }
 0xbf7   :  { %v2736_v37 = vmul.f32 %v4011_v24, %v2735_v30  ;;  %v3098_v3 = vmul.f32 %v4015_v56, %v3044_v62  ;;  %vm3104_vm1 = vweird.f32 %v4015_v56  ;;  %v3046_v18 = vmax.f32 %v3038_v29, 1e-24 }
 0xbf8   :  { %v3092_v31 = vmul.f32 %v4013_v19, %v3091_v43  ;;  %3603 = vmatmul.msk.bf16.gmra.mxu0 %vm596_vm7, %v3171_v28  ;;  %vm3105_vm2 = vmor %vm3103_vm15, %vm3104_vm1  ;;  %4016 = vrsqrt.f32 %v2680_v45  ;;  %vm2757_vm8 = vweird.f32 %v2680_v45 }
 0xbf9   :  { %v3099_v44 = vmul.f32 %v4015_v56, %v3098_v3  ;;  %v2740_v12 = vsel %vm2739_vm0, %v4011_v24, %v2736_v37  ;;  %4018 = vrsqrt.f32 %v3046_v18  ;;  %vm3123_vm12 = vweird.f32 %v3046_v18 }
 0xbfa   :  { %v3096_v42 = vsel %vm3095_vm10, %v4013_v19, %v3092_v31  ;;  %v2766_v25 = vmul.f32 %v2740_v12, %v5836_v32  ;;  %4020 = vrsqrt.f32 %v2679_v57 }
 0xbfb   :  { %v3131_v53 = vmul.f32 %v3096_v42, %v5824_v55  ;;  %v3100_v6 = vmul.f32 0.5, %v3099_v44 }
 0xbfc   :  { %v2778_v55 = vadd.f32 %v5851_v38, %v2766_v25 }
 0xbfd   :  { %v3101_v21 = vsub.f32 1.5, %v3100_v6  ;;  %v3142_v41 = vadd.f32 %v5920_v27, %v3131_v53 }
 0xbfe   :  { %v2786_v2 = vadd.f32 %v2778_v55, %v5483_v23  ;;  %v4017_v8 = vpop.eup %4016 }
 0xbff   :  { %v3102_v9 = vmul.f32 %v4015_v56, %v3101_v21  ;;  %v3150_v14 = vadd.f32 %v3142_v41, %v5485_v35  ;;  %v4019_v24 = vpop.eup %4018  ;;  %v2752_v61 = vmul.f32 %v4017_v8, %v2680_v45  ;;  %vm2758_vm9 = vweird.f32 %v4017_v8 }
 0xc00   :  { %v3118_v19 = vmul.f32 %v4019_v24, %v3046_v18  ;;  %v4021_v47 = vpop.eup %4020  ;;  %vm3124_vm14 = vweird.f32 %v4019_v24  ;;  %vm2759_vm11 = vmor %vm2757_vm8, %vm2758_vm9 }
 0xc01   :  { %v3106_v39 = vsel %vm3105_vm2, %v4015_v56, %v3102_v9  ;;  %v3158_v46 = vadd.f32 %v3150_v14, %v2785_v48  ;;  %v2742_v17 = vmul.f32 %v4021_v47, %v2679_v57  ;;  %v2753_v36 = vmul.f32 %v4017_v8, %v2752_v61  ;;  %vm3125_vm6 = vmor %vm3123_vm12, %vm3124_vm14 }
 0xc02   :  { %v3132_v0 = vmul.f32 %v3106_v39, %v5831_v13  ;;  %v3119_v35 = vmul.f32 %v4019_v24, %v3118_v19  ;;  %vm2748_vm13 = vweird.f32 %v4021_v47 }
 0xc03   :  { %v3166_v62 = vmul.f32 0.5, %v3158_v46  ;;  %v2743_v26 = vmul.f32 %v4021_v47, %v2742_v17  ;;  %v2754_v33 = vmul.f32 0.5, %v2753_v36  ;;  %vm2749_vm3 = vmor %vm2747_vm5, %vm2748_vm13 }
 0xc04   :  { %v3143_v32 = vadd.f32 %v5920_v27, %v3132_v0  ;;  %v3120_v16 = vmul.f32 0.5, %v3119_v35 }
 0xc05   :  { %v2744_v11 = vmul.f32 0.5, %v2743_v26  ;;  %v2755_v58 = vsub.f32 1.5, %v2754_v33 }
 0xc06   :  { %v3151_v52 = vadd.f32 %v3143_v32, %v5483_v23  ;;  %v3121_v59 = vsub.f32 1.5, %v3120_v16 }
 0xc07   :  { %v2745_v40 = vsub.f32 1.5, %v2744_v11  ;;  %v2756_v20 = vmul.f32 %v4017_v8, %v2755_v58 }
 0xc08   :  { %v3159_v5 = vadd.f32 %v3151_v52, %v2786_v2  ;;  %v3122_v63 = vmul.f32 %v4019_v24, %v3121_v59 }
 0xc09   :  { %v2746_v56 = vmul.f32 %v4021_v47, %v2745_v40  ;;  %v2760_v43 = vsel %vm2759_vm11, %v4017_v8, %v2756_v20 }
 0xc0a   :  { %v3167_v13 = vmul.f32 0.5, %v3159_v5  ;;  %v3126_v28 = vsel %vm3125_vm6, %v4019_v24, %v3122_v63  ;;  %v2768_v31 = vmul.f32 %v2760_v43, %v5863_v7 }
 0xc0b   :  { %v3134_v4 = vmul.f32 %v3126_v28, %v5857_v10  ;;  %v2750_v44 = vsel %vm2749_vm3, %v4021_v47, %v2746_v56  ;;  %v3703_v28 = vld [vmem:[%s6061_s20] ss:$0 sm:$0xff] }
 0xc0c   :  { %v3172_v1 = vpack.c.bf16 %v3167_v13, %v3166_v62  ;;  %v2767_v53 = vmul.f32 %v2750_v44, %v5846_v34  ;;  %v2780_v6 = vadd.f32 %v5851_v38, %v2768_v31 }
 0xc0d   :  { %v3145_v22 = vadd.f32 %v5920_v27, %v3134_v4 }
 0xc0e   :  { %3604 = vmatmul.msk.bf16.gmra.mxu0 %vm596_vm7, %v3172_v1  ;;  %v2779_v21 = vadd.f32 %v5851_v38, %v2767_v53  ;;  %v2788_v10 = vadd.f32 %v2780_v6, %v5506_v54 }
 0xc0f   :  { %v3153_v25 = vadd.f32 %v3145_v22, %v5506_v54  ;;  %v3641_v54 = vld [vmem:[%s6062_s19] sm:$0xff] }
 0xc10   :  { %v2787_v34 = vadd.f32 %v2779_v21, %v5504_v15 }
 0xc11   :  { %v3161_v9 = vadd.f32 %v3153_v25, %v2788_v10 }
 0xc13   :  { %v3169_v39 = vmul.f32 0.5, %v3161_v9 }
 0xc16   :  { %v3035_v23 = vpop.xlane.xlu2 %3034 }
 0xc17   :  { %v3045_v49 = vmax.f32 %v3035_v23, 1e-24 }
 0xc19   :  { %4022 = vrsqrt.f32 %v3045_v49  ;;  %vm3113_vm10 = vweird.f32 %v3045_v49 }
 0xc1f   :  { %v4023_v30 = vpop.eup %4022 }
 0xc20   :  { %v3108_v37 = vmul.f32 %v4023_v30, %v3045_v49  ;;  %vm3114_vm4 = vweird.f32 %v4023_v30 }
 0xc21   :  { %vm3115_vm0 = vmor %vm3113_vm10, %vm3114_vm4 }
 0xc22   :  { %v3109_v3 = vmul.f32 %v4023_v30, %v3108_v37 }
 0xc24   :  { %v3110_v42 = vmul.f32 0.5, %v3109_v3 }
 0xc26   :  { %v3111_v12 = vsub.f32 1.5, %v3110_v42 }
 0xc28   :  { %v3112_v51 = vmul.f32 %v4023_v30, %v3111_v12 }
 0xc2a   :  { %v3116_v29 = vsel %vm3115_vm0, %v4023_v30, %v3112_v51 }
 0xc2b   :  { %v3133_v7 = vmul.f32 %v3116_v29, %v5840_v60  ;;  %v3642_v60 = vld [vmem:[%s6062_s19 + $0x8] sm:$0xff] }
 0xc2c   :  { %3301 = vmatpush.bf16.msrb.mxu1 %v3642_v60 }
 0xc2d   :  { %v3144_v41 = vadd.f32 %v5920_v27, %v3133_v7 }
 0xc2f   :  { %v3152_v45 = vadd.f32 %v3144_v41, %v5504_v15  ;;  %v3702_v15 = vld [vmem:[%s6059_s18] ss:$0 sm:$0xff] }
 0xc30   :  { %3302 = vmatpush.bf16.msrb.mxu1 %v3641_v54 }
 0xc31   :  { %v3160_v18 = vadd.f32 %v3152_v45, %v2787_v34 }
 0xc33   :  { %v3168_v50 = vmul.f32 0.5, %v3160_v18 }
 0xc35   :  { %v3173_v55 = vpack.c.bf16 %v3169_v39, %v3168_v50 }
 0xc37   :  { %3605 = vmatmul.msk.bf16.gmra.mxu0 %vm596_vm7, %v3173_v55 }
 0xc65   :  { %v3215_v38 = vpop.f32.mrf.mxu0 }
 0xc66   :  { %v3216_v27 = vadd.f32 %v3702_v15, %v3215_v38 }
 0xc68   :  { %v3243_v14 = vmul.f32 0.01, %v3216_v27  ;;  %vm3235_vm1 = vcmp.gt.f32.partialorder %v3216_v27, 0.0 }
 0xc6a   :  { %v3251_v48 = vsel %vm3235_vm1, %v3216_v27, %v3243_v14  ;;  %vm6212_vm1 = vcmask 523264  }
 0xc6d   :  { %v3217_v0 = vpop.f32.mrf.mxu0 }
 0xc6e   :  { %v3218_v57 = vadd.f32 %v3702_v15, %v3217_v0 }
 0xc70   :  { %vm3236_vm15 = vcmp.gt.f32.partialorder %v3218_v57, 0.0  ;;  %v3244_v32 = vmul.f32 0.01, %v3218_v57 }
 0xc72   :  { %v3252_v2 = vsel %vm3236_vm15, %v3218_v57, %v3244_v32  ;;  %vm6213_vm15 = vmmov %vm6212_vm1 }
 0xc73   :  { %v3259_v52 = vpack.c.bf16 %v3252_v2, %v3251_v48 }
 0xc75   :  { %v3220_v46 = vpop.f32.mrf.mxu0  ;;  %3614 = vmatmul.msk.bf16.vlgmr.msrb.gmra.mxu1 %vm596_vm7, %v3259_v52 }
 0xc76   :  { %v3221_v8 = vadd.f32 %v3702_v15, %v3220_v46  ;;  %v3356_v46 = vld [vmem:[%s6064_s2] sm:$0xff] }
 0xc78   :  { %v3245_v24 = vmul.f32 0.01, %v3221_v8  ;;  %vm3237_vm2 = vcmp.gt.f32.partialorder %v3221_v8, 0.0 }
 0xc7a   :  { %v3253_v61 = vsel %vm3237_vm2, %v3221_v8, %v3245_v24  ;;  %vm3437_vm2 = vcmask 130048  }
 0xc7d   :  { %v3222_v5 = vpop.f32.mrf.mxu0 }
 0xc7e   :  { %v3223_v62 = vadd.f32 %v3702_v15, %v3222_v5 }
 0xc80   :  { %vm3238_vm9 = vcmp.gt.f32.partialorder %v3223_v62, 0.0  ;;  %v3246_v13 = vmul.f32 0.01, %v3223_v62 }
 0xc82   :  { %v3254_v19 = vsel %vm3238_vm9, %v3223_v62, %v3246_v13  ;;  %vm3441_vm9 = vcmask 7168  }
 0xc83   :  { %v3260_v1 = vpack.c.bf16 %v3254_v19, %v3253_v61 }
 0xc85   :  { %3615 = vmatmul.msk.bf16.gmra.mxu1 %vm596_vm7, %v3260_v1 }
 0xc8b   :  { %v3225_v47 = vpop.f32.mrf.mxu0 }
 0xc8c   :  { %v3226_v17 = vadd.f32 %v3702_v15, %v3225_v47 }
 0xc8e   :  { %v3247_v35 = vmul.f32 0.01, %v3226_v17  ;;  %vm3239_vm14 = vcmp.gt.f32.partialorder %v3226_v17, 0.0 }
 0xc90   :  { %v3255_v16 = vsel %vm3239_vm14, %v3226_v17, %v3247_v35 }
 0xc93   :  { %v3227_v36 = vpop.f32.mrf.mxu0 }
 0xc94   :  { %v3228_v26 = vadd.f32 %v3702_v15, %v3227_v36 }
 0xc96   :  { %vm3240_vm8 = vcmp.gt.f32.partialorder %v3228_v26, 0.0  ;;  %v3248_v33 = vmul.f32 0.01, %v3228_v26 }
 0xc98   :  { %v3256_v23 = vsel %vm3240_vm8, %v3228_v26, %v3248_v33  ;;  %v3380_v26 = vld [vmem:[%s6065_s3] sm:$0xff] }
 0xc99   :  { %v3261_v49 = vpack.c.bf16 %v3256_v23, %v3255_v16 }
 0xc9b   :  { %3616 = vmatmul.msk.bf16.gmra.mxu1 %vm596_vm7, %v3261_v49 }
 0xcb4   :  { %v3230_v11 = vpop.f32.mrf.mxu0 }
 0xcb5   :  { %v3231_v58 = vadd.f32 %v3702_v15, %v3230_v11 }
 0xcb7   :  { %v3249_v40 = vmul.f32 0.01, %v3231_v58  ;;  %vm3241_vm11 = vcmp.gt.f32.partialorder %v3231_v58, 0.0 }
 0xcb9   :  { %v3257_v30 = vsel %vm3241_vm11, %v3231_v58, %v3249_v40 }
 0xcbc   :  { %v3232_v59 = vpop.f32.mrf.mxu0 }
 0xcbd   :  { %v3233_v20 = vadd.f32 %v3702_v15, %v3232_v59 }
 0xcbf   :  { %vm3242_vm12 = vcmp.gt.f32.partialorder %v3233_v20, 0.0  ;;  %v3250_v63 = vmul.f32 0.01, %v3233_v20 }
 0xcc1   :  { %v3258_v56 = vsel %vm3242_vm12, %v3233_v20, %v3250_v63 }
 0xcc2   :  { %v3262_v43 = vpack.c.bf16 %v3258_v56, %v3257_v30 }
 0xcc4   :  { %3617 = vmatmul.msk.bf16.gmra.mxu1 %vm596_vm7, %v3262_v43 }
 0xcf2   :  { %v3304_v37 = vpop.f32.mrf.mxu1 }
 0xcf3   :  { %v3305_v3 = vadd.f32 %v3703_v28, %v3304_v37 }
 0xcf5   :  { %v3332_v31 = vmul.f32 0.01, %v3305_v3  ;;  %vm3324_vm13 = vcmp.gt.f32.partialorder %v3305_v3, 0.0 }
 0xcf7   :  { %v3340_v4 = vsel %vm3324_vm13, %v3305_v3, %v3332_v31 }
 0xcf8   :  { %3348 = vst [vmem:[%s6063_s22] sm:$0xff] %v3340_v4 }
 0xcfa   :  { %v3306_v44 = vpop.f32.mrf.mxu1 }
 0xcfb   :  { %v3307_v42 = vadd.f32 %v3703_v28, %v3306_v44 }
 0xcfd   :  { %v3333_v12 = vmul.f32 0.01, %v3307_v42  ;;  %vm3325_vm6 = vcmp.gt.f32.partialorder %v3307_v42, 0.0 }
 0xcff   :  { %v3341_v53 = vsel %vm3325_vm6, %v3307_v42, %v3333_v12 }
 0xd00   :  { %3349 = vst [vmem:[%s6063_s22 + $0x8] sm:$0xff] %v3341_v53  ;;  %v3692_v52 = vpack.i.bf16 %v3340_v4, %v3341_v53 }
 0xd02   :  { %v3309_v6 = vpop.f32.mrf.mxu1 }
 0xd03   :  { %v3310_v22 = vadd.f32 %v3703_v28, %v3309_v6 }
 0xd05   :  { %vm3326_vm7 = vcmp.gt.f32.partialorder %v3310_v22, 0.0  ;;  %v3334_v51 = vmul.f32 0.01, %v3310_v22 }
 0xd07   :  { %v3342_v29 = vsel %vm3326_vm7, %v3310_v22, %v3334_v51 }
 0xd08   :  { %3350 = vst [vmem:[%s6063_s22 + $0x10] sm:$0xff] %v3342_v29 }
 0xd0a   :  { %v3311_v21 = vpop.f32.mrf.mxu1 }
 0xd0b   :  { %v3312_v7 = vadd.f32 %v3703_v28, %v3311_v21 }
 0xd0d   :  { %v3335_v10 = vmul.f32 0.01, %v3312_v7  ;;  %vm3327_vm5 = vcmp.gt.f32.partialorder %v3312_v7, 0.0 }
 0xd0f   :  { %v3343_v25 = vsel %vm3327_vm5, %v3312_v7, %v3335_v10 }
 0xd10   :  { %3351 = vst [vmem:[%s6063_s22 + $0x18] sm:$0xff] %v3343_v25  ;;  %v3687_v2 = vpack.i.bf16 %v3342_v29, %v3343_v25 }
 0xd18   :  { %v3314_v41 = vpop.f32.mrf.mxu1 }
 0xd19   :  { %v3315_v34 = vadd.f32 %v3703_v28, %v3314_v41 }
 0xd1b   :  { %vm3328_vm3 = vcmp.gt.f32.partialorder %v3315_v34, 0.0  ;;  %v3336_v45 = vmul.f32 0.01, %v3315_v34 }
 0xd1d   :  { %v3344_v9 = vsel %vm3328_vm3, %v3315_v34, %v3336_v45 }
 0xd1e   :  { %3352 = vst [vmem:[%s6063_s22 + $0x20] sm:$0xff] %v3344_v9 }
 0xd20   :  { %v3316_v18 = vpop.f32.mrf.mxu1 }
 0xd21   :  { %v3317_v50 = vadd.f32 %v3703_v28, %v3316_v18 }
 0xd23   :  { %vm3329_vm4 = vcmp.gt.f32.partialorder %v3317_v50, 0.0  ;;  %v3337_v39 = vmul.f32 0.01, %v3317_v50 }
 0xd25   :  { %v3345_v55 = vsel %vm3329_vm4, %v3317_v50, %v3337_v39 }
 0xd26   :  { %3353 = vst [vmem:[%s6063_s22 + $0x28] sm:$0xff] %v3345_v55  ;;  %v3677_v60 = vpack.i.bf16 %v3344_v9, %v3345_v55 }
 0xd28   :  { %3678 = vrot.lane.b32.xlu1 %v3677_v60, %s4029_s6 }
 0xd41   :  { %v3319_v54 = vpop.f32.mrf.mxu1 }
 0xd42   :  { %v3320_v38 = vadd.f32 %v3703_v28, %v3319_v54 }
 0xd44   :  { %vm3330_vm10 = vcmp.gt.f32.partialorder %v3320_v38, 0.0  ;;  %v3338_v15 = vmul.f32 0.01, %v3320_v38 }
 0xd46   :  { %v3346_v27 = vsel %vm3330_vm10, %v3320_v38, %v3338_v15 }
 0xd47   :  { %3354 = vst [vmem:[%s6063_s22 + $0x30] sm:$0xff] %v3346_v27 }
 0xd49   :  { %v3321_v0 = vpop.f32.mrf.mxu1 }
 0xd4a   :  { %v3322_v14 = vadd.f32 %v3703_v28, %v3321_v0 }
 0xd4c   :  { %vm3331_vm0 = vcmp.gt.f32.partialorder %v3322_v14, 0.0  ;;  %v3339_v57 = vmul.f32 0.01, %v3322_v14 }
 0xd4e   :  { %v3347_v32 = vsel %vm3331_vm0, %v3322_v14, %v3339_v57 }
 0xd4f   :  { %3355 = vst [vmem:[%s6063_s22 + $0x38] sm:$0xff] %v3347_v32  ;;  %3368 = vmatpush.msra.mxu2 %v3347_v32  ;;  %v3682_v48 = vpack.i.bf16 %v3346_v27, %v3347_v32 }
 0xd51   :  { %3683 = vrot.lane.b32.xlu0 %v3682_v48, %s4029_s6  ;;  %3369 = vmatpush.msra.mxu2 %v3346_v27 }
 0xd53   :  { %3370 = vmatpush.msra.mxu2 %v3345_v55 }
 0xd55   :  { %3371 = vmatpush.msra.mxu2 %v3344_v9 }
 0xd57   :  { %3372 = vmatpush.msra.mxu2 %v3343_v25 }
 0xd59   :  { %3688 = vrot.lane.b32.xlu0 %v3687_v2, %s4029_s6  ;;  %3373 = vmatpush.msra.mxu2 %v3342_v29 }
 0xd5b   :  { %3374 = vmatpush.msra.mxu2 %v3341_v53 }
 0xd5d   :  { %3375 = vmatpush.msra.mxu2 %v3340_v4 }
 0xd5e   :  { %3618 = vmatmul.msk.f32.vlgmr.msra.gmra.mxu2 %vm6212_vm1, %v3356_v46 }
 0xd61   :  { %3693 = vrot.lane.b32.xlu0 %v3692_v52, %s4029_s6 }
 0xd9a   :  { %v3679_v24 = vpop.permute.xlu1 %3678 }
 0xd9b   :  { %v3680_v13 = vunpack.i.l.bf16 %v3679_v24  ;;  %v3681_v61 = vunpack.i.h.bf16 %v3679_v24 }
 0xdc3   :  { %v3684_v8 = vpop.permute.xlu0 %3683 }
 0xdc4   :  { %v3685_v5 = vunpack.i.l.bf16 %v3684_v8  ;;  %v3686_v62 = vunpack.i.h.bf16 %v3684_v8 }
 0xdc6   :  { %3424 = vmatpush.msrb.mxu3 %v3685_v5 }
 0xdc8   :  { %3425 = vmatpush.msrb.mxu3 %v3686_v62 }
 0xdca   :  { %3426 = vmatpush.msrb.mxu3 %v3680_v13 }
 0xdcb   :  { %v3689_v19 = vpop.permute.xlu0 %3688 }
 0xdcc   :  { %v3690_v1 = vunpack.i.l.bf16 %v3689_v19  ;;  %3427 = vmatpush.msrb.mxu3 %v3681_v61  ;;  %v3691_v47 = vunpack.i.h.bf16 %v3689_v19 }
 0xdce   :  { %3428 = vmatpush.msrb.mxu3 %v3690_v1 }
 0xdd0   :  { %3429 = vmatpush.msrb.mxu3 %v3691_v47 }
 0xdd3   :  { %v3694_v17 = vpop.permute.xlu0 %3693 }
 0xdd4   :  { %v3695_v36 = vunpack.i.l.bf16 %v3694_v17  ;;  %v3696_v35 = vunpack.i.h.bf16 %v3694_v17 }
 0xdd6   :  { %3430 = vmatpush.msrb.mxu3 %v3695_v36 }
 0xdd8   :  { %3431 = vmatpush.msrb.mxu3 %v3696_v35 }
 0xdd9   :  { %3619 = vmatmul.msk.f32.vlgmr.msrb.gmra.mxu3 %vm6213_vm15, %v3380_v26 }
 0xde1   :  { %v3377_v33 = vpop.f32.mrf.mxu2 }
 0xe5c   :  { %v3433_v16 = vpop.f32.mrf.mxu3 }
 0xe5d   :  { %v3436_v23 = vmul.f32 %v3433_v16, %v3377_v33 }
 0xe5f   :  { %v3438_v49 = vsel %vm3437_vm2, %v3436_v23, 0.0 }
 0xe60   :  { %3439 = vadd.xlane.f32.xlu1 %v3438_v49 }
 0xed3   :  { %v3440_v11 = vpop.xlane.xlu1 %3439 }
 0xed4   :  { %3442 = vst.msk [vmem:[%s6066_s21] sm:$0xff] %vm3441_vm9, %v3440_v11 }

</bundles_post_ra>
